<compile_context>
chip_gen: v6e
topology: v6e:2x2x1
jax: 0.10.0
libtpu: 0.0.40
codegen_flags: <defaults>
</compile_context>

<pallas_src>
import jax
import jax.numpy as jnp
from jax.experimental import pallas as pl
from jax.experimental.pallas import tpu as pltpu


def _round_up(x, m):
    return ((x + m - 1) // m) * m


def _mlp_kernel(x_ref, w1_ref, b1_ref, w2_ref, b2_ref, w3_ref, b3_ref, o_ref):
    # x arrives as f32; cast to bf16 in-kernel (VPU slack; MXU is the binding unit).
    x = x_ref[...].astype(jnp.bfloat16)                                   # (TM, d_in)
    # Linear(d_in -> 1024) + ReLU   (bf16 MXU, f32 accumulate)
    h1 = jnp.dot(x, w1_ref[...], preferred_element_type=jnp.float32) + b1_ref[...]
    h1 = jnp.maximum(h1, 0.0).astype(jnp.bfloat16)
    # Linear(1024 -> 512) + ReLU
    h2 = jnp.dot(h1, w2_ref[...], preferred_element_type=jnp.float32) + b2_ref[...]
    h2 = jnp.maximum(h2, 0.0).astype(jnp.bfloat16)
    # Linear(512 -> 128-padded num_domains) + Sigmoid.  Lane-dense bf16 store; the
    # padded columns (sigmoid(0)=0.5) are sliced off in the wrapper.
    logits = jnp.dot(h2, w3_ref[...], preferred_element_type=jnp.float32) + b3_ref[...]
    o_ref[...] = jax.nn.sigmoid(logits).astype(o_ref.dtype)


def prepare_params(params):
    """One-time parameter prep (hoisted out of the per-call path): cast weights to
    bf16, biases to f32, and zero-pad the final layer to 128 output lanes."""
    num_domains = params["w3"].shape[1]
    h2_dim = params["w2"].shape[1]
    n_out_pad = _round_up(max(num_domains, 1), 128)
    w3 = jnp.zeros((h2_dim, n_out_pad), jnp.bfloat16).at[:, :num_domains].set(
        params["w3"].astype(jnp.bfloat16))
    b3 = jnp.zeros((1, n_out_pad), jnp.float32).at[:, :num_domains].set(
        params["b3"].astype(jnp.float32))
    return {
        "w1": params["w1"].astype(jnp.bfloat16),
        "b1": params["b1"].astype(jnp.float32).reshape(1, -1),
        "w2": params["w2"].astype(jnp.bfloat16),
        "b2": params["b2"].astype(jnp.float32).reshape(1, -1),
        "w3": w3,
        "b3": b3,
        "num_domains": num_domains,
    }


def _pick_tm(n):
    if n >= 1024:
        return 512                               # amortize per-grid-step overhead
    if n >= 32:
        # >= 2 grid steps so both v7x TensorCores get work (axis is "parallel").
        return _round_up(pl.cdiv(n, 2), 16)
    return 16                                    # tiny batch: one bf16-native tile


def _vmem_limit_bytes():
    try:
        cap = int(pltpu.get_tpu_info().vmem_capacity_bytes)
        # ~75% of physical VMEM (=> ~96 MiB on v5e/v6e, ~48 MiB on v7x), capped.
        # v5e's 16 MiB default scoped limit is otherwise too tight for large tiles.
        return min(100 << 20, (cap * 3) // 4)
    except Exception:
        return None


def domain_classifier_fc(x_nchw, prepped):
    """x_nchw: (N, C, H, W) float32; prepped: output of prepare_params()."""
    n = x_nchw.shape[0]
    d_in = x_nchw.shape[1] * x_nchw.shape[2] * x_nchw.shape[3]
    num_domains = prepped["num_domains"]
    w1, b1 = prepped["w1"], prepped["b1"]
    w2, b2 = prepped["w2"], prepped["b2"]
    w3, b3 = prepped["w3"], prepped["b3"]
    n_out_pad = w3.shape[1]
    assert w1.shape[0] == d_in

    # Flatten (== nn.Flatten on NCHW).  No pad, no cast: the kernel casts to bf16 and
    # Pallas masks the partial last tile.
    x_flat = x_nchw.reshape(n, d_in)

    tm = _pick_tm(n)
    grid = (pl.cdiv(n, tm),)

    cp_kwargs = dict(dimension_semantics=("parallel",))
    lim = _vmem_limit_bytes()
    if lim is not None:
        cp_kwargs["vmem_limit_bytes"] = lim

    # TODO(synk): add a K-dim grid + f32 VMEM accumulator for the first matmul once
    # the bf16 w1 block no longer fits the generation-aware scoped VMEM budget
    # (~32 MiB default on v6e/v7x, 16 MiB on v5e), i.e. flattened d_in >~ 8K.
    def run(single_buffer_weights):
        if single_buffer_weights:
            # Constant (0,0) blocks never re-DMA: single-buffer them to halve their
            # VMEM footprint (matters most on v7x's 64 MiB VMEM).
            resident = lambda s: pl.BlockSpec(s, lambda i: (0, 0),
                                              pipeline_mode=pl.Buffered(1))
        else:
            resident = lambda s: pl.BlockSpec(s, lambda i: (0, 0))
        return pl.pallas_call(
            _mlp_kernel,
            out_shape=jax.ShapeDtypeStruct((n, n_out_pad), jnp.bfloat16),
            grid=grid,
            in_specs=[
                pl.BlockSpec((tm, d_in), lambda i: (i, 0)),   # x tile (pipelined)
                resident(w1.shape), resident(b1.shape),       # VMEM-resident weights
                resident(w2.shape), resident(b2.shape),
                resident(w3.shape), resident(b3.shape),
            ],
            out_specs=pl.BlockSpec((tm, n_out_pad), lambda i: (i, 0)),
            compiler_params=pltpu.CompilerParams(**cp_kwargs),
        )(x_flat, w1, b1, w2, b2, w3, b3)

    try:
        out = run(True)
    except Exception:
        # pipeline_mode / Buffered(1) unsupported on this JAX build: default buffering.
        out = run(False)

    return out[:, :num_domains].astype(jnp.float32)


def init_params(key, d_in, h1=1024, h2=512, num_domains=2):
    """Deterministic synthetic params. Stored as (in, out) = transpose of nn.Linear.weight."""
    k1, k2, k3, k4, k5, k6 = jax.random.split(key, 6)
    s1 = 1.0 / jnp.sqrt(d_in)
    s2 = 1.0 / jnp.sqrt(h1)
    s3 = 1.0 / jnp.sqrt(h2)
    return {
        "w1": jax.random.uniform(k1, (d_in, h1), jnp.float32, -s1, s1),
        "b1": jax.random.uniform(k2, (1, h1), jnp.float32, -s1, s1),
        "w2": jax.random.uniform(k3, (h1, h2), jnp.float32, -s2, s2),
        "b2": jax.random.uniform(k4, (1, h2), jnp.float32, -s2, s2),
        "w3": jax.random.uniform(k5, (h2, num_domains), jnp.float32, -s3, s3),
        "b3": jax.random.uniform(k6, (1, num_domains), jnp.float32, -s3, s3),
    }


if __name__ == "__main__":
    # Small input consistent with the module: (C,H,W)=(32,4,4) -> flattened dim 512.
    batch, C, H, W = 2, 32, 4, 4
    num_domains = 2

    key = jax.random.PRNGKey(0)
    kx, kp = jax.random.split(key)
    x = jax.random.normal(kx, (batch, C, H, W), jnp.float32)
    params = init_params(kp, C * H * W, h1=1024, h2=512, num_domains=num_domains)
    prepped = prepare_params(params)     # one-time cast/pad (hoisted out of hot path)

    out = domain_classifier_fc(x, prepped)
    out = jax.block_until_ready(out)

    # Pure-JAX reference with the same bf16-weight / f32-accumulate math.
    xf = x.reshape(batch, -1).astype(jnp.bfloat16)
    r1 = jnp.maximum(
        jnp.dot(xf, params["w1"].astype(jnp.bfloat16),
                preferred_element_type=jnp.float32) + params["b1"], 0.0
    ).astype(jnp.bfloat16)
    r2 = jnp.maximum(
        jnp.dot(r1, params["w2"].astype(jnp.bfloat16),
                preferred_element_type=jnp.float32) + params["b2"], 0.0
    ).astype(jnp.bfloat16)
    ref = jax.nn.sigmoid(
        jnp.dot(r2, params["w3"].astype(jnp.bfloat16),
                preferred_element_type=jnp.float32) + params["b3"])

    assert out.shape == (batch, num_domains)
    assert out.dtype == jnp.float32
    # bf16 output store: sigmoid outputs in [0,1], abs error <= ~4e-3.
    assert jnp.allclose(out, ref, atol=1e-2, rtol=1e-2)

    print("KERNEL_OK")
</pallas_src>

<mosaic_0001>
module attributes {stable_mosaic.version = 11 : i64} {
  func.func @_mlp_kernel(%arg0: i32, %arg1: memref<16x512xf32, #tpu.memory_space<vmem>>, %arg2: memref<512x1024xbf16, #tpu.memory_space<vmem>>, %arg3: memref<1x1024xf32, #tpu.memory_space<vmem>>, %arg4: memref<1024x512xbf16, #tpu.memory_space<vmem>>, %arg5: memref<1x512xf32, #tpu.memory_space<vmem>>, %arg6: memref<512x128xbf16, #tpu.memory_space<vmem>>, %arg7: memref<1x128xf32, #tpu.memory_space<vmem>>, %arg8: memref<16x128xbf16, #tpu.memory_space<vmem>>) attributes {dimension_semantics = [#tpu.dimension_semantics<parallel>], iteration_bounds = array<i64: 1>, scalar_prefetch = 0 : i64, scratch_operands = 0 : i64, tpu.core_type = #tpu.core_type<tc>, window_params = [{transform_indices = @transform_0, window_bounds = array<i64: 16, 512>}, {pipeline_mode = #tpu.pipeline_mode<synchronous>, transform_indices = @transform_1, window_bounds = array<i64: 512, 1024>}, {pipeline_mode = #tpu.pipeline_mode<synchronous>, transform_indices = @transform_2, window_bounds = array<i64: 1, 1024>}, {pipeline_mode = #tpu.pipeline_mode<synchronous>, transform_indices = @transform_3, window_bounds = array<i64: 1024, 512>}, {pipeline_mode = #tpu.pipeline_mode<synchronous>, transform_indices = @transform_4, window_bounds = array<i64: 1, 512>}, {pipeline_mode = #tpu.pipeline_mode<synchronous>, transform_indices = @transform_5, window_bounds = array<i64: 512, 128>}, {pipeline_mode = #tpu.pipeline_mode<synchronous>, transform_indices = @transform_6, window_bounds = array<i64: 1, 128>}, {transform_indices = @transform_7, window_bounds = array<i64: 16, 128>}]} {
    %c0 = arith.constant 0 : index
    %c0_0 = arith.constant 0 : index
    %0 = vector.load %arg1[%c0, %c0_0] : memref<16x512xf32, #tpu.memory_space<vmem>>, vector<16x512xf32>
    %1 = arith.truncf %0 : vector<16x512xf32> to vector<16x512xbf16>
    %c0_1 = arith.constant 0 : index
    %c0_2 = arith.constant 0 : index
    %2 = vector.load %arg2[%c0_1, %c0_2] : memref<512x1024xbf16, #tpu.memory_space<vmem>>, vector<512x1024xbf16>
    %cst = arith.constant dense<0.000000e+00> : vector<16x1024xf32>
    %3 = tpu.matmul %1, %2, %cst {dimension_numbers = #tpu.dot_dimension_numbers<[1], [0], [0], [1], [0, 0, 1, 1], [], []>} : vector<16x512xbf16>, vector<512x1024xbf16>, vector<16x1024xf32> -> vector<16x1024xf32>
    %c0_3 = arith.constant 0 : index
    %c0_4 = arith.constant 0 : index
    %4 = vector.load %arg3[%c0_3, %c0_4] : memref<1x1024xf32, #tpu.memory_space<vmem>>, vector<1x1024xf32>
    %5 = vector.broadcast %4 : vector<1x1024xf32> to vector<16x1024xf32>
    %6 = arith.addf %3, %5 : vector<16x1024xf32>
    %cst_5 = arith.constant 0.000000e+00 : f32
    %7 = vector.broadcast %cst_5 : f32 to vector<16x1024xf32>
    %8 = arith.maximumf %6, %7 : vector<16x1024xf32>
    %9 = arith.truncf %8 : vector<16x1024xf32> to vector<16x1024xbf16>
    %c0_6 = arith.constant 0 : index
    %c0_7 = arith.constant 0 : index
    %10 = vector.load %arg4[%c0_6, %c0_7] : memref<1024x512xbf16, #tpu.memory_space<vmem>>, vector<1024x512xbf16>
    %cst_8 = arith.constant dense<0.000000e+00> : vector<16x512xf32>
    %11 = tpu.matmul %9, %10, %cst_8 {dimension_numbers = #tpu.dot_dimension_numbers<[1], [0], [0], [1], [0, 0, 1, 1], [], []>} : vector<16x1024xbf16>, vector<1024x512xbf16>, vector<16x512xf32> -> vector<16x512xf32>
    %c0_9 = arith.constant 0 : index
    %c0_10 = arith.constant 0 : index
    %12 = vector.load %arg5[%c0_9, %c0_10] : memref<1x512xf32, #tpu.memory_space<vmem>>, vector<1x512xf32>
    %13 = vector.broadcast %12 : vector<1x512xf32> to vector<16x512xf32>
    %14 = arith.addf %11, %13 : vector<16x512xf32>
    %cst_11 = arith.constant 0.000000e+00 : f32
    %15 = vector.broadcast %cst_11 : f32 to vector<16x512xf32>
    %16 = arith.maximumf %14, %15 : vector<16x512xf32>
    %17 = arith.truncf %16 : vector<16x512xf32> to vector<16x512xbf16>
    %c0_12 = arith.constant 0 : index
    %c0_13 = arith.constant 0 : index
    %18 = vector.load %arg6[%c0_12, %c0_13] : memref<512x128xbf16, #tpu.memory_space<vmem>>, vector<512x128xbf16>
    %cst_14 = arith.constant dense<0.000000e+00> : vector<16x128xf32>
    %19 = tpu.matmul %17, %18, %cst_14 {dimension_numbers = #tpu.dot_dimension_numbers<[1], [0], [0], [1], [0, 0, 1, 1], [], []>} : vector<16x512xbf16>, vector<512x128xbf16>, vector<16x128xf32> -> vector<16x128xf32>
    %c0_15 = arith.constant 0 : index
    %c0_16 = arith.constant 0 : index
    %20 = vector.load %arg7[%c0_15, %c0_16] : memref<1x128xf32, #tpu.memory_space<vmem>>, vector<1x128xf32>
    %21 = vector.broadcast %20 : vector<1x128xf32> to vector<16x128xf32>
    %22 = arith.addf %19, %21 : vector<16x128xf32>
    %23 = arith.negf %22 : vector<16x128xf32>
    %24 = math.exp %23 : vector<16x128xf32>
    %cst_17 = arith.constant 1.000000e+00 : f32
    %25 = vector.broadcast %cst_17 : f32 to vector<16x128xf32>
    %26 = arith.addf %25, %24 : vector<16x128xf32>
    %27 = arith.divf %25, %26 : vector<16x128xf32>
    %28 = arith.truncf %27 : vector<16x128xf32> to vector<16x128xbf16>
    %c0_18 = arith.constant 0 : index
    %c0_19 = arith.constant 0 : index
    %29 = vector.load %arg8[%c0_18, %c0_19] : memref<16x128xbf16, #tpu.memory_space<vmem>>, vector<16x128xbf16>
    tpu.vector_store %arg8[%c0_18, %c0_19], %28 {strides = array<i32>} : memref<16x128xbf16, #tpu.memory_space<vmem>>, vector<16x128xbf16>,
    return
  }
  func.func @transform_0(%arg0: i32) -> (i32, i32) {
    %c0_i32 = arith.constant 0 : i32
    %c0_i32_0 = arith.constant 0 : i32
    return %arg0, %c0_i32 : i32, i32
  }
  func.func @transform_1(%arg0: i32) -> (i32, i32) {
    %c0_i32 = arith.constant 0 : i32
    %c0_i32_0 = arith.constant 0 : i32
    %c0_i32_1 = arith.constant 0 : i32
    return %c0_i32, %c0_i32_0 : i32, i32
  }
  func.func @transform_2(%arg0: i32) -> (i32, i32) {
    %c0_i32 = arith.constant 0 : i32
    %c0_i32_0 = arith.constant 0 : i32
    %c0_i32_1 = arith.constant 0 : i32
    return %c0_i32, %c0_i32_0 : i32, i32
  }
  func.func @transform_3(%arg0: i32) -> (i32, i32) {
    %c0_i32 = arith.constant 0 : i32
    %c0_i32_0 = arith.constant 0 : i32
    %c0_i32_1 = arith.constant 0 : i32
    return %c0_i32, %c0_i32_0 : i32, i32
  }
  func.func @transform_4(%arg0: i32) -> (i32, i32) {
    %c0_i32 = arith.constant 0 : i32
    %c0_i32_0 = arith.constant 0 : i32
    %c0_i32_1 = arith.constant 0 : i32
    return %c0_i32, %c0_i32_0 : i32, i32
  }
  func.func @transform_5(%arg0: i32) -> (i32, i32) {
    %c0_i32 = arith.constant 0 : i32
    %c0_i32_0 = arith.constant 0 : i32
    %c0_i32_1 = arith.constant 0 : i32
    return %c0_i32, %c0_i32_0 : i32, i32
  }
  func.func @transform_6(%arg0: i32) -> (i32, i32) {
    %c0_i32 = arith.constant 0 : i32
    %c0_i32_0 = arith.constant 0 : i32
    %c0_i32_1 = arith.constant 0 : i32
    return %c0_i32, %c0_i32_0 : i32, i32
  }
  func.func @transform_7(%arg0: i32) -> (i32, i32) {
    %c0_i32 = arith.constant 0 : i32
    %c0_i32_0 = arith.constant 0 : i32
    return %arg0, %c0_i32 : i32, i32
  }
}

module attributes {stable_mosaic.version = 11 : i64} {
  func.func @_mlp_kernel(%arg0: i32, %arg1: memref<16x512xf32, #tpu.memory_space<vmem>>, %arg2: memref<512x1024xbf16, #tpu.memory_space<vmem>>, %arg3: memref<1x1024xf32, #tpu.memory_space<vmem>>, %arg4: memref<1024x512xbf16, #tpu.memory_space<vmem>>, %arg5: memref<1x512xf32, #tpu.memory_space<vmem>>, %arg6: memref<512x128xbf16, #tpu.memory_space<vmem>>, %arg7: memref<1x128xf32, #tpu.memory_space<vmem>>, %arg8: memref<16x128xbf16, #tpu.memory_space<vmem>>) attributes {dimension_semantics = [#tpu.dimension_semantics<parallel>], iteration_bounds = array<i64: 1>, scalar_prefetch = 0 : i64, scratch_operands = 0 : i64, tpu.core_type = #tpu.core_type<tc>, window_params = [{transform_indices = @transform_0, window_bounds = array<i64: 16, 512>}, {pipeline_mode = #tpu.pipeline_mode<synchronous>, transform_indices = @transform_1, window_bounds = array<i64: 512, 1024>}, {pipeline_mode = #tpu.pipeline_mode<synchronous>, transform_indices = @transform_2, window_bounds = array<i64: 1, 1024>}, {pipeline_mode = #tpu.pipeline_mode<synchronous>, transform_indices = @transform_3, window_bounds = array<i64: 1024, 512>}, {pipeline_mode = #tpu.pipeline_mode<synchronous>, transform_indices = @transform_4, window_bounds = array<i64: 1, 512>}, {pipeline_mode = #tpu.pipeline_mode<synchronous>, transform_indices = @transform_5, window_bounds = array<i64: 512, 128>}, {pipeline_mode = #tpu.pipeline_mode<synchronous>, transform_indices = @transform_6, window_bounds = array<i64: 1, 128>}, {transform_indices = @transform_7, window_bounds = array<i64: 16, 128>}]} {
    %c0 = arith.constant 0 : index
    %c0_0 = arith.constant 0 : index
    %0 = vector.load %arg1[%c0, %c0_0] : memref<16x512xf32, #tpu.memory_space<vmem>>, vector<16x512xf32>
    %1 = arith.truncf %0 : vector<16x512xf32> to vector<16x512xbf16>
    %c0_1 = arith.constant 0 : index
    %c0_2 = arith.constant 0 : index
    %2 = vector.load %arg2[%c0_1, %c0_2] : memref<512x1024xbf16, #tpu.memory_space<vmem>>, vector<512x1024xbf16>
    %cst = arith.constant dense<0.000000e+00> : vector<16x1024xf32>
    %3 = tpu.matmul %1, %2, %cst {dimension_numbers = #tpu.dot_dimension_numbers<[1], [0], [0], [1], [0, 0, 1, 1], [], []>} : vector<16x512xbf16>, vector<512x1024xbf16>, vector<16x1024xf32> -> vector<16x1024xf32>
    %c0_3 = arith.constant 0 : index
    %c0_4 = arith.constant 0 : index
    %4 = vector.load %arg3[%c0_3, %c0_4] : memref<1x1024xf32, #tpu.memory_space<vmem>>, vector<1x1024xf32>
    %5 = vector.broadcast %4 : vector<1x1024xf32> to vector<16x1024xf32>
    %6 = arith.addf %3, %5 : vector<16x1024xf32>
    %cst_5 = arith.constant 0.000000e+00 : f32
    %7 = vector.broadcast %cst_5 : f32 to vector<16x1024xf32>
    %8 = arith.maximumf %6, %7 : vector<16x1024xf32>
    %9 = arith.truncf %8 : vector<16x1024xf32> to vector<16x1024xbf16>
    %c0_6 = arith.constant 0 : index
    %c0_7 = arith.constant 0 : index
    %10 = vector.load %arg4[%c0_6, %c0_7] : memref<1024x512xbf16, #tpu.memory_space<vmem>>, vector<1024x512xbf16>
    %cst_8 = arith.constant dense<0.000000e+00> : vector<16x512xf32>
    %11 = tpu.matmul %9, %10, %cst_8 {dimension_numbers = #tpu.dot_dimension_numbers<[1], [0], [0], [1], [0, 0, 1, 1], [], []>} : vector<16x1024xbf16>, vector<1024x512xbf16>, vector<16x512xf32> -> vector<16x512xf32>
    %c0_9 = arith.constant 0 : index
    %c0_10 = arith.constant 0 : index
    %12 = vector.load %arg5[%c0_9, %c0_10] : memref<1x512xf32, #tpu.memory_space<vmem>>, vector<1x512xf32>
    %13 = vector.broadcast %12 : vector<1x512xf32> to vector<16x512xf32>
    %14 = arith.addf %11, %13 : vector<16x512xf32>
    %cst_11 = arith.constant 0.000000e+00 : f32
    %15 = vector.broadcast %cst_11 : f32 to vector<16x512xf32>
    %16 = arith.maximumf %14, %15 : vector<16x512xf32>
    %17 = arith.truncf %16 : vector<16x512xf32> to vector<16x512xbf16>
    %c0_12 = arith.constant 0 : index
    %c0_13 = arith.constant 0 : index
    %18 = vector.load %arg6[%c0_12, %c0_13] : memref<512x128xbf16, #tpu.memory_space<vmem>>, vector<512x128xbf16>
    %cst_14 = arith.constant dense<0.000000e+00> : vector<16x128xf32>
    %19 = tpu.matmul %17, %18, %cst_14 {dimension_numbers = #tpu.dot_dimension_numbers<[1], [0], [0], [1], [0, 0, 1, 1], [], []>} : vector<16x512xbf16>, vector<512x128xbf16>, vector<16x128xf32> -> vector<16x128xf32>
    %c0_15 = arith.constant 0 : index
    %c0_16 = arith.constant 0 : index
    %20 = vector.load %arg7[%c0_15, %c0_16] : memref<1x128xf32, #tpu.memory_space<vmem>>, vector<1x128xf32>
    %21 = vector.broadcast %20 : vector<1x128xf32> to vector<16x128xf32>
    %22 = arith.addf %19, %21 : vector<16x128xf32>
    %23 = arith.negf %22 : vector<16x128xf32>
    %24 = math.exp %23 : vector<16x128xf32>
    %cst_17 = arith.constant 1.000000e+00 : f32
    %25 = vector.broadcast %cst_17 : f32 to vector<16x128xf32>
    %26 = arith.addf %25, %24 : vector<16x128xf32>
    %27 = arith.divf %25, %26 : vector<16x128xf32>
    %28 = arith.truncf %27 : vector<16x128xf32> to vector<16x128xbf16>
    %c0_18 = arith.constant 0 : index
    %c0_19 = arith.constant 0 : index
    %29 = vector.load %arg8[%c0_18, %c0_19] : memref<16x128xbf16, #tpu.memory_space<vmem>>, vector<16x128xbf16>
    tpu.vector_store %arg8[%c0_18, %c0_19], %28 {strides = array<i32>} : memref<16x128xbf16, #tpu.memory_space<vmem>>, vector<16x128xbf16>,
    return
  }
  func.func @transform_0(%arg0: i32) -> (i32, i32) {
    %c0_i32 = arith.constant 0 : i32
    %c0_i32_0 = arith.constant 0 : i32
    return %arg0, %c0_i32 : i32, i32
  }
  func.func @transform_1(%arg0: i32) -> (i32, i32) {
    %c0_i32 = arith.constant 0 : i32
    %c0_i32_0 = arith.constant 0 : i32
    %c0_i32_1 = arith.constant 0 : i32
    return %c0_i32, %c0_i32_0 : i32, i32
  }
  func.func @transform_2(%arg0: i32) -> (i32, i32) {
    %c0_i32 = arith.constant 0 : i32
    %c0_i32_0 = arith.constant 0 : i32
    %c0_i32_1 = arith.constant 0 : i32
    return %c0_i32, %c0_i32_0 : i32, i32
  }
  func.func @transform_3(%arg0: i32) -> (i32, i32) {
    %c0_i32 = arith.constant 0 : i32
    %c0_i32_0 = arith.constant 0 : i32
    %c0_i32_1 = arith.constant 0 : i32
    return %c0_i32, %c0_i32_0 : i32, i32
  }
  func.func @transform_4(%arg0: i32) -> (i32, i32) {
    %c0_i32 = arith.constant 0 : i32
    %c0_i32_0 = arith.constant 0 : i32
    %c0_i32_1 = arith.constant 0 : i32
    return %c0_i32, %c0_i32_0 : i32, i32
  }
  func.func @transform_5(%arg0: i32) -> (i32, i32) {
    %c0_i32 = arith.constant 0 : i32
    %c0_i32_0 = arith.constant 0 : i32
    %c0_i32_1 = arith.constant 0 : i32
    return %c0_i32, %c0_i32_0 : i32, i32
  }
  func.func @transform_6(%arg0: i32) -> (i32, i32) {
    %c0_i32 = arith.constant 0 : i32
    %c0_i32_0 = arith.constant 0 : i32
    %c0_i32_1 = arith.constant 0 : i32
    return %c0_i32, %c0_i32_0 : i32, i32
  }
  func.func @transform_7(%arg0: i32) -> (i32, i32) {
    %c0_i32 = arith.constant 0 : i32
    %c0_i32_0 = arith.constant 0 : i32
    return %arg0, %c0_i32 : i32, i32
  }
}

</mosaic_0001>

<bundles_post_ra>
// kernel: tpu_custom_call.1
= control target key start
LH: loop header
LB: loop body
LE: loop exit
PB: predicated region body
PF: predicated region fallthrough
CT: control target
= control target key end

     0   :  { %12 = vsyncpa [#allocation3], 0  ;;  %s5896_s0 = inlined_call_operand.hbm [shape: f32[2,512], index: 0, kind: input, shape index: {}]   ;;  %s5897_s1 = inlined_call_operand.hbm [shape: bf16[512,1024], index: 1, kind: input, shape index: {}]   ;;  %s5898_s2 = inlined_call_operand.hbm [shape: f32[1,1024], index: 2, kind: input, shape index: {}]   ;;  %s5899_s3 = inlined_call_operand.hbm [shape: bf16[1024,512], index: 3, kind: input, shape index: {}]   ;;  %s5900_s4 = inlined_call_operand.vmem [shape: f32[1,512], index: 4, kind: input, shape index: {}]   ;;  %s5901_s5 = inlined_call_operand.hbm [shape: bf16[512,128], index: 5, kind: input, shape index: {}]   ;;  %s5902_s6 = inlined_call_operand.vmem [shape: f32[1,128], index: 6, kind: input, shape index: {}]   ;;  %s5903_s7 = inlined_call_operand.hbm [shape: bf16[2,128], index: 7, kind: output, shape index: {}]  }
   0x1   :  { %13 = vsyncpa [#allocation6], 0 }
   0x2   :  { %14 = vsyncpa [#allocation9], 0 }
   0x3   :  { %15 = vsyncpa [#allocation4], 0 }
   0x4   :  { %20 = vsyncadd [#allocation3], 896  ;;  %s5674_s24 = smov [#allocation5]  }
   0x5   :  { %s33_s25 = sshll.u32 %s5674_s24, 4  ;;  %s34_s25 = int_to_ptr.vmem [resolvable:$true] %s33_s25 }
   0x6   :  { %s5554_s26 = scalar_lea.vmem %s34_s25, 32768  ;;  %p5559_p1 = scmp.lt.s32.totalorder %s34_s25, %s34_s25 }
   0x7   :  { %p5555_p0 = scmp.ne.s32.totalorder %s34_s25, %s5554_s26  ;;  %p5560_p2 = scmp.lt.s32.totalorder %s5554_s26, %s5554_s26 }
   0x9   :  { %p5561_p3 = por %p5560_p2, %p5559_p1 }
   0xb   :  { %p5562_p4 = pnand %p5561_p3, %p5555_p0 }
   0xd   :  { %5565 = shalt.err (!%p5562_p4)
}
   0xe   :  { %s5675_s27 = smov 512   ;;  %s5676_s28 = smov 32  }
   0xf   :  { %39 = dma.hbm_to_vmem [thread:$0]  %s5897_s1, 32768, %s34_s25, [#allocation6], %s5675_s27, %s5675_s27, %s5676_s28  }
  0x10   :  { %s5677_s8 = smov [#allocation8]  }
  0x11   :  { %s55_s9 = sshll.u32 %s5677_s8, 4  ;;  %s56_s9 = int_to_ptr.vmem [resolvable:$true] %s55_s9 }
  0x12   :  { %s5574_s10 = scalar_lea.vmem %s56_s9, 32768  ;;  %p5579_p6 = scmp.lt.s32.totalorder %s56_s9, %s56_s9 }
  0x13   :  { %p5575_p5 = scmp.ne.s32.totalorder %s56_s9, %s5574_s10  ;;  %p5580_p7 = scmp.lt.s32.totalorder %s5574_s10, %s5574_s10 }
  0x15   :  { %p5581_p8 = por %p5580_p7, %p5579_p6 }
  0x17   :  { %p5582_p9 = pnand %p5581_p8, %p5575_p5 }
  0x19   :  { %5585 = shalt.err (!%p5582_p9)
}
  0x1a   :  { %s5678_s11 = smov 256   ;;  %s5679_s12 = smov 16  }
  0x1b   :  { %61 = dma.hbm_to_vmem [thread:$0]  %s5899_s3, 32768, %s56_s9, [#allocation9], %s5678_s11, %s5678_s11, %s5679_s12  }
  0x1c   :  { %s5680_s15 = smov [#allocation2]  }
  0x1d   :  { %s21_s16 = sshll.u32 %s5680_s15, 4  ;;  %s22_s16 = int_to_ptr.vmem [resolvable:$true] %s21_s16 }
  0x1e   :  { %s5594_s1 = scalar_lea.vmem %s22_s16, 128  ;;  %s5598_s17 = scalar_lea.vmem %s22_s16, 1024 }
  0x1f   :  { %p5595_p10 = scmp.ne.s32.totalorder %s22_s16, %s5594_s1  ;;  %p5599_p11 = scmp.lt.s32.totalorder %s22_s16, %s22_s16 }
  0x20   :  { %p5600_p12 = scmp.lt.s32.totalorder %s5598_s17, %s5594_s1 }
  0x22   :  { %p5601_p13 = por %p5600_p12, %p5599_p11 }
  0x24   :  { %p5602_p0 = pnand %p5601_p13, %p5595_p10 }
  0x26   :  { %5605 = shalt.err (!%p5602_p0)
}
  0x27   :  { %s5681_s18 = smov 128   ;;  %s5682_s19 = smov 8  }
  0x28   :  { %27 = dma.hbm_to_vmem [thread:$0]  %s5896_s0, 128, %s22_s16, [#allocation3], %s5681_s18, %s5681_s18, %s5682_s19  }
  0x29   :  { %s5683_s22 = smov [#allocation7]   ;;  %s5684_s3 = smov [#allocation10]  }
  0x2a   :  { %s46_s23 = sshll.u32 %s5683_s22, 4  ;;  %s69_s24 = sshll.u32 %s5684_s3, 4  ;;  %s47_s23 = int_to_ptr.vmem [resolvable:$true] %s46_s23  ;;  %s70_s24 = int_to_ptr.vmem [resolvable:$true] %s69_s24 }
  0x2b   :  { %s5614_s25 = scalar_lea.vmem %s47_s23, 128  ;;  %p5619_p2 = scmp.lt.s32.totalorder %s47_s23, %s47_s23 }
  0x2c   :  { %p5615_p1 = scmp.ne.s32.totalorder %s47_s23, %s5614_s25  ;;  %p5620_p3 = scmp.lt.s32.totalorder %s5614_s25, %s5614_s25 }
  0x2e   :  { %p5621_p4 = por %p5620_p3, %p5619_p2 }
  0x30   :  { %p5622_p5 = pnand %p5621_p4, %p5615_p1 }
  0x32   :  { %5625 = shalt.err (!%p5622_p5)
}
  0x33   :  { %49 = dma.hbm_to_vmem [thread:$0]  %s5898_s2, 128, %s47_s23, [#allocation6]  }
  0x34   :  { %s5634_s28 = scalar_lea.vmem %s70_s24, 4096  ;;  %p5639_p7 = scmp.lt.s32.totalorder %s70_s24, %s70_s24 }
  0x35   :  { %p5635_p6 = scmp.ne.s32.totalorder %s70_s24, %s5634_s28  ;;  %p5640_p8 = scmp.lt.s32.totalorder %s5634_s28, %s5634_s28 }
  0x37   :  { %p5641_p9 = por %p5640_p8, %p5639_p7 }
  0x39   :  { %p5642_p10 = pnand %p5641_p9, %p5635_p6 }
  0x3b   :  { %5645 = shalt.err (!%p5642_p10)
}
  0x3c   :  { %s5685_s0 = smov 64   ;;  %s5686_s29 = smov 4  }
  0x3d   :  { %75 = dma.hbm_to_vmem [thread:$0]  %s5901_s5, 4096, %s70_s24, [#allocation9], %s5685_s0, %s5685_s0, %s5686_s29  }
  0x3e   :  { %5666 = dma.done.wait [#allocation3], 1024  }
  0x3f   :  { %5667 = vsyncadd [#allocation3], 4294966272 }
  0x40   :  { %5668 = dma.done.wait [#allocation6], 32896  }
  0x41   :  { %5669 = vsyncadd [#allocation6], 4294934400 }
  0x42   :  { %5670 = dma.done.wait [#allocation9], 36864  }
  0x43   :  { %5671 = vsyncadd [#allocation9], 4294930432  ;;  %v250_v0 = vld [vmem:[#allocation5 + $0x1c0] sm:$0xff]  ;;  %v5687_v40 = vmov 1983009808   ;;  %v117_v42 = vlaneseq }
  0x44   :  { %v254_v1 = vld [vmem:[#allocation5 + $0x1e0] sm:$0xff]  ;;  %v115_v41 = vunpack.c.l.s4 %v5687_v40 }
  0x45   :  { %v378_v2 = vld [vmem:[#allocation5 + $0x5c0] sm:$0xff]  ;;  %v4554_v3 = vcombine.high %v250_v0, %v254_v1  ;;  %v4553_v5 = vcombine.low %v250_v0, %v254_v1  ;;  %v5747_v52 = vshrl.u32 %v117_v42, 7 }
  0x46   :  { %v382_v4 = vld [vmem:[#allocation5 + $0x5e0] sm:$0xff]  ;;  %v116_v51 = vunpack.c.0.s8 %v115_v41 }
  0x47   :  { %v242_v6 = vld [vmem:[#allocation5 + $0x180] sm:$0xff]  ;;  %v4682_v8 = vcombine.high %v378_v2, %v382_v4  ;;  %v4681_v9 = vcombine.low %v378_v2, %v382_v4  ;;  %1772 = vmatprep.subr.bf16.mxu0 %v4554_v3  ;;  %v5112_v3 = vld [vmem:[#allocation2 + $0x10] ss:$8 sps:$4 sm:$0xff]  }
  0x48   :  { %v246_v7 = vld [vmem:[#allocation5 + $0x1a0] sm:$0xff]  ;;  %1773 = vmatpush1.bf16.msra.mxu0 %v4553_v5  ;;  %v119_v63 = vsub.s32 %v116_v51, %v5747_v52 }
  0x49   :  { %v4546_v10 = vcombine.high %v242_v6, %v246_v7  ;;  %v370_v11 = vld [vmem:[#allocation5 + $0x580] sm:$0xff]  ;;  %1815 = vmatprep.subr.bf16.mxu1 %v4682_v8  ;;  %v4545_v18 = vcombine.low %v242_v6, %v246_v7  ;;  %v5116_v7 = vld [vmem:[#allocation2 + $0x30] ss:$8 sps:$4 sm:$0xff]  }
  0x4a   :  { %v374_v12 = vld [vmem:[#allocation5 + $0x5a0] sm:$0xff]  ;;  %1816 = vmatpush1.bf16.msra.mxu1 %v4681_v9  ;;  %v5119_v9 = vld [vmem:[#allocation2 + $0x14] ss:$8 sps:$4 sm:$0xff]  }
  0x4b   :  { %v234_v13 = vld [vmem:[#allocation5 + $0x140] sm:$0xff]  ;;  %v4674_v14 = vcombine.high %v370_v11, %v374_v12  ;;  %1774 = vmatprep.subr.bf16.mxu0 %v4546_v10  ;;  %v4673_v19 = vcombine.low %v370_v11, %v374_v12 }
  0x4c   :  { %v238_v15 = vld [vmem:[#allocation5 + $0x160] sm:$0xff]  ;;  %1775 = vmatpush1.bf16.msra.mxu0 %v4545_v18 }
  0x4d   :  { %v362_v16 = vld [vmem:[#allocation5 + $0x540] sm:$0xff]  ;;  %v4538_v20 = vcombine.high %v234_v13, %v238_v15  ;;  %1817 = vmatprep.subr.bf16.mxu1 %v4674_v14  ;;  %v4537_v26 = vcombine.low %v234_v13, %v238_v15  ;;  %v5752_v13 = vrot.slane %v5112_v3, %v119_v63 }
  0x4e   :  { %v366_v17 = vld [vmem:[#allocation5 + $0x560] sm:$0xff]  ;;  %1818 = vmatpush1.bf16.msra.mxu1 %v4673_v19 }
  0x4f   :  { %v4666_v21 = vcombine.high %v362_v16, %v366_v17  ;;  %v226_v22 = vld [vmem:[#allocation5 + $0x100] sm:$0xff]  ;;  %1776 = vmatprep.subr.bf16.mxu0 %v4538_v20  ;;  %v4665_v27 = vcombine.low %v362_v16, %v366_v17  ;;  %v5121_v16 = vld [vmem:[#allocation2 + $0x34] ss:$8 sps:$4 sm:$0xff]   ;;  %v5756_v20 = vrot.slane %v5116_v7, %v119_v63 }
  0x50   :  { %v230_v23 = vld [vmem:[#allocation5 + $0x120] sm:$0xff]  ;;  %1777 = vmatpush1.bf16.msra.mxu0 %v4537_v26  ;;  %v5766_v26 = vrot.slane %v5121_v16, %v119_v63 }
  0x51   :  { %v354_v24 = vld [vmem:[#allocation5 + $0x500] sm:$0xff]  ;;  %v4530_v28 = vcombine.high %v226_v22, %v230_v23  ;;  %1819 = vmatprep.subr.bf16.mxu1 %v4666_v21  ;;  %v4529_v34 = vcombine.low %v226_v22, %v230_v23  ;;  %v5760_v22 = vrot.slane %v5119_v9, %v119_v63 }
  0x52   :  { %v358_v25 = vld [vmem:[#allocation5 + $0x520] sm:$0xff]  ;;  %1820 = vmatpush1.bf16.msra.mxu1 %v4665_v27 }
  0x53   :  { %v4658_v29 = vcombine.high %v354_v24, %v358_v25  ;;  %v218_v30 = vld [vmem:[#allocation5 + $0xc0] sm:$0xff]  ;;  %1778 = vmatprep.subr.bf16.mxu0 %v4530_v28  ;;  %v4657_v35 = vcombine.low %v354_v24, %v358_v25 }
  0x54   :  { %v222_v31 = vld [vmem:[#allocation5 + $0xe0] sm:$0xff]  ;;  %1779 = vmatpush1.bf16.msra.mxu0 %v4529_v34 }
  0x55   :  { %v346_v32 = vld [vmem:[#allocation5 + $0x4c0] sm:$0xff]  ;;  %v4522_v36 = vcombine.high %v218_v30, %v222_v31  ;;  %1821 = vmatprep.subr.bf16.mxu1 %v4658_v29  ;;  %v4521_v45 = vcombine.low %v218_v30, %v222_v31 }
  0x56   :  { %v350_v33 = vld [vmem:[#allocation5 + $0x4e0] sm:$0xff]  ;;  %1822 = vmatpush1.bf16.msra.mxu1 %v4657_v35 }
  0x57   :  { %v4650_v37 = vcombine.high %v346_v32, %v350_v33  ;;  %v210_v38 = vld [vmem:[#allocation5 + $0x80] sm:$0xff]  ;;  %1780 = vmatprep.subr.bf16.mxu0 %v4522_v36  ;;  %v4649_v46 = vcombine.low %v346_v32, %v350_v33 }
  0x58   :  { %v214_v39 = vld [vmem:[#allocation5 + $0xa0] sm:$0xff]  ;;  %1781 = vmatpush1.bf16.msra.mxu0 %v4521_v45 }
  0x59   :  { %v338_v43 = vld [vmem:[#allocation5 + $0x480] sm:$0xff]  ;;  %v4514_v47 = vcombine.high %v210_v38, %v214_v39  ;;  %1823 = vmatprep.subr.bf16.mxu1 %v4650_v37  ;;  %v4513_v55 = vcombine.low %v210_v38, %v214_v39 }
  0x5a   :  { %v342_v44 = vld [vmem:[#allocation5 + $0x4a0] sm:$0xff]  ;;  %1824 = vmatpush1.bf16.msra.mxu1 %v4649_v46 }
  0x5b   :  { %v4642_v48 = vcombine.high %v338_v43, %v342_v44  ;;  %v202_v49 = vld [vmem:[#allocation5 + $0x40] sm:$0xff]  ;;  %1782 = vmatprep.subr.bf16.mxu0 %v4514_v47  ;;  %v4641_v58 = vcombine.low %v338_v43, %v342_v44 }
  0x5c   :  { %v206_v50 = vld [vmem:[#allocation5 + $0x60] sm:$0xff]  ;;  %1783 = vmatpush1.bf16.msra.mxu0 %v4513_v55 }
  0x5d   :  { %v330_v53 = vld [vmem:[#allocation5 + $0x440] sm:$0xff]  ;;  %v4506_v59 = vcombine.high %v202_v49, %v206_v50  ;;  %1825 = vmatprep.subr.bf16.mxu1 %v4642_v48  ;;  %v4505_v0 = vcombine.low %v202_v49, %v206_v50 }
  0x5e   :  { %v334_v54 = vld [vmem:[#allocation5 + $0x460] sm:$0xff]  ;;  %1826 = vmatpush1.bf16.msra.mxu1 %v4641_v58 }
  0x5f   :  { %v194_v56 = vld [vmem:[#allocation5] sm:$0xff]  ;;  %v4634_v62 = vcombine.high %v330_v53, %v334_v54  ;;  %1784 = vmatprep.subr.bf16.mxu0 %v4506_v59  ;;  %v4633_v5 = vcombine.low %v330_v53, %v334_v54 }
  0x60   :  { %v198_v57 = vld [vmem:[#allocation5 + $0x20] sm:$0xff]  ;;  %1785 = vmatpush1.bf16.msra.mxu0 %v4505_v0 }
  0x61   :  { %v322_v60 = vld [vmem:[#allocation5 + $0x400] sm:$0xff]  ;;  %v4498_v6 = vcombine.high %v194_v56, %v198_v57  ;;  %1827 = vmatprep.subr.bf16.mxu1 %v4634_v62  ;;  %v4497_v17 = vcombine.low %v194_v56, %v198_v57 }
  0x62   :  { %v326_v61 = vld [vmem:[#allocation5 + $0x420] sm:$0xff]  ;;  %1828 = vmatpush1.bf16.msra.mxu1 %v4633_v5 }
  0x63   :  { %v314_v1 = vld [vmem:[#allocation5 + $0x3c0] sm:$0xff]  ;;  %v4626_v10 = vcombine.high %v322_v60, %v326_v61  ;;  %v4625_v23 = vcombine.low %v322_v60, %v326_v61  ;;  %1786 = vmatprep.subr.bf16.mxu0 %v4498_v6 }
  0x64   :  { %v5110_v2 = vld [vmem:[#allocation2] ss:$8 sps:$4 sm:$0xff]   ;;  %v5118_v8 = vld [vmem:[#allocation2 + $0x4] ss:$8 sps:$4 sm:$0xff]   ;;  %1787 = vmatpush1.bf16.msra.mxu0 %v4497_v17 }
  0x65   :  { %v5114_v4 = vld [vmem:[#allocation2 + $0x20] ss:$8 sps:$4 sm:$0xff]   ;;  %v5750_v12 = vrot.slane %v5110_v2, %v119_v63  ;;  %v5120_v15 = vld [vmem:[#allocation2 + $0x24] ss:$8 sps:$4 sm:$0xff]   ;;  %v5758_v21 = vrot.slane %v5118_v8, %v119_v63  ;;  %1829 = vmatprep.subr.bf16.mxu1 %v4626_v10 }
  0x66   :  { %v318_v11 = vld [vmem:[#allocation5 + $0x3e0] sm:$0xff]  ;;  %v5754_v14 = vrot.slane %v5114_v4, %v119_v63  ;;  %v5764_v25 = vrot.slane %v5120_v15, %v119_v63  ;;  %1830 = vmatpush1.bf16.msra.mxu1 %v4625_v23 }
  0x67   :  { %v442_v18 = vld [vmem:[#allocation5 + $0x7c0] sm:$0xff]  ;;  %v143_v24 = vcombine.high %v5750_v12, %v5752_v13  ;;  %v4618_v27 = vcombine.high %v314_v1, %v318_v11  ;;  %v145_v29 = vcombine.high %v5758_v21, %v5760_v22  ;;  %v4617_v37 = vcombine.low %v314_v1, %v318_v11 }
  0x68   :  { %v446_v19 = vld [vmem:[#allocation5 + $0x7e0] sm:$0xff]  ;;  %v179_v28 = vcombine.high %v5754_v14, %v5756_v20  ;;  %v181_v33 = vcombine.high %v5764_v25, %v5766_v26 }
  0x69   :  { %v4746_v30 = vcombine.high %v442_v18, %v446_v19  ;;  %v306_v31 = vld [vmem:[#allocation5 + $0x380] sm:$0xff]  ;;  %1788 = vmatprep.subr.bf16.mxu0 %v4618_v27  ;;  %v4745_v39 = vcombine.low %v442_v18, %v446_v19 }
  0x6a   :  { %v310_v32 = vld [vmem:[#allocation5 + $0x3a0] sm:$0xff]  ;;  %v5774_v36 = vpack.c.bf16 %v179_v28, %v143_v24  ;;  %v5776_v38 = vpack.c.bf16 %v181_v33, %v145_v29  ;;  %1789 = vmatpush2.bf16.msra.mxu0 %v4617_v37  ;;  %v255_v37 = vld [vmem:[#allocation5 + $0x1e8] sm:$0xff] }
  0x6b   :  { %v434_v34 = vld [vmem:[#allocation5 + $0x780] sm:$0xff]  ;;  %v4610_v40 = vcombine.high %v306_v31, %v310_v32  ;;  %1831 = vmatprep.subr.bf16.mxu1 %v4746_v30  ;;  %v4609_v46 = vcombine.low %v306_v31, %v310_v32 }
  0x6c   :  { %v438_v35 = vld [vmem:[#allocation5 + $0x7a0] sm:$0xff]  ;;  %1804 = vmatprep.mubr.bf16.mxu0 %v5774_v36  ;;  %1847 = vmatprep.mubr.bf16.mxu1 %v5776_v38 }
  0x6d   :  { %v4738_v41 = vcombine.high %v434_v34, %v438_v35  ;;  %v298_v42 = vld [vmem:[#allocation5 + $0x340] sm:$0xff]  ;;  %1832 = vmatpush2.bf16.msra.mxu1 %v4745_v39  ;;  %1790 = vmatprep.subr.bf16.mxu0 %v4610_v40  ;;  %v4737_v47 = vcombine.low %v434_v34, %v438_v35  ;;  %v251_v35 = vld [vmem:[#allocation5 + $0x1c8] sm:$0xff]  ;;  %v142_v39 = vcombine.low %v5750_v12, %v5752_v13 }
  0x6e   :  { %v302_v43 = vld [vmem:[#allocation5 + $0x360] sm:$0xff]  ;;  %1791 = vmatpush2.bf16.msra.mxu0 %v4609_v46  ;;  %v178_v40 = vcombine.low %v5754_v14, %v5756_v20  ;;  %v243_v12 = vld [vmem:[#allocation5 + $0x188] sm:$0xff] }
  0x6f   :  { %v426_v44 = vld [vmem:[#allocation5 + $0x740] sm:$0xff]  ;;  %v4602_v48 = vcombine.high %v298_v42, %v302_v43  ;;  %1833 = vmatprep.subr.bf16.mxu1 %v4738_v41  ;;  %v4601_v55 = vcombine.low %v298_v42, %v302_v43  ;;  %v379_v41 = vld [vmem:[#allocation5 + $0x5c8] sm:$0xff] }
  0x70   :  { %v430_v45 = vld [vmem:[#allocation5 + $0x760] sm:$0xff]  ;;  %v383_v42 = vld [vmem:[#allocation5 + $0x5e8] sm:$0xff] }
  0x71   :  { %v4730_v49 = vcombine.high %v426_v44, %v430_v45  ;;  %v290_v50 = vld [vmem:[#allocation5 + $0x300] sm:$0xff]  ;;  %1834 = vmatpush2.bf16.msra.mxu1 %v4737_v47  ;;  %1792 = vmatprep.subr.bf16.mxu0 %v4602_v48  ;;  %v4729_v56 = vcombine.low %v426_v44, %v430_v45  ;;  %v144_v44 = vcombine.low %v5758_v21, %v5760_v22  ;;  %v247_v13 = vld [vmem:[#allocation5 + $0x1a8] sm:$0xff] }
  0x72   :  { %v294_v51 = vld [vmem:[#allocation5 + $0x320] sm:$0xff]  ;;  %1793 = vmatpush2.bf16.msra.mxu0 %v4601_v55  ;;  %v180_v45 = vcombine.low %v5764_v25, %v5766_v26  ;;  %v4556_v47 = vcombine.high %v251_v35, %v255_v37  ;;  %v4684_v48 = vcombine.high %v379_v41, %v383_v42  ;;  %v371_v14 = vld [vmem:[#allocation5 + $0x588] sm:$0xff]  ;;  %v4683_v21 = vcombine.low %v379_v41, %v383_v42 }
  0x73   :  { %v418_v53 = vld [vmem:[#allocation5 + $0x700] sm:$0xff]  ;;  %v4594_v57 = vcombine.high %v290_v50, %v294_v51  ;;  %1835 = vmatprep.subr.bf16.mxu1 %v4730_v49  ;;  %v4593_v63 = vcombine.low %v290_v50, %v294_v51  ;;  %v5788_v49 = vpack.c.bf16 %v178_v40, %v142_v39  ;;  %v375_v20 = vld [vmem:[#allocation5 + $0x5a8] sm:$0xff]  ;;  %v4555_v51 = vcombine.low %v251_v35, %v255_v37 }
  0x74   :  { %v422_v54 = vld [vmem:[#allocation5 + $0x720] sm:$0xff]  ;;  %v5790_v50 = vpack.c.bf16 %v180_v45, %v144_v44  ;;  %v4548_v22 = vcombine.high %v243_v12, %v247_v13  ;;  %v4676_v25 = vcombine.high %v371_v14, %v375_v20  ;;  %v235_v26 = vld [vmem:[#allocation5 + $0x148] sm:$0xff] }
  0x75   :  { %v4722_v58 = vcombine.high %v418_v53, %v422_v54  ;;  %v282_v59 = vld [vmem:[#allocation5 + $0x2c0] sm:$0xff]  ;;  %1836 = vmatpush2.bf16.msra.mxu1 %v4729_v56  ;;  %1794 = vmatprep.subr.bf16.mxu0 %v4594_v57  ;;  %v4721_v0 = vcombine.low %v418_v53, %v422_v54  ;;  %v239_v53 = vld [vmem:[#allocation5 + $0x168] sm:$0xff]  ;;  %v4547_v56 = vcombine.low %v243_v12, %v247_v13 }
  0x76   :  { %v286_v60 = vld [vmem:[#allocation5 + $0x2e0] sm:$0xff]  ;;  %1795 = vmatpush2.bf16.msra.mxu0 %v4593_v63  ;;  %v363_v54 = vld [vmem:[#allocation5 + $0x548] sm:$0xff]  ;;  %v4675_v57 = vcombine.low %v371_v14, %v375_v20 }
  0x77   :  { %v410_v61 = vld [vmem:[#allocation5 + $0x6c0] sm:$0xff]  ;;  %v4586_v1 = vcombine.high %v282_v59, %v286_v60  ;;  %1837 = vmatprep.subr.bf16.mxu1 %v4722_v58  ;;  %v4585_v7 = vcombine.low %v282_v59, %v286_v60  ;;  %v367_v55 = vld [vmem:[#allocation5 + $0x568] sm:$0xff]  ;;  %v4540_v58 = vcombine.high %v235_v26, %v239_v53 }
  0x78   :  { %v414_v62 = vld [vmem:[#allocation5 + $0x6e0] sm:$0xff]  ;;  %v4668_v59 = vcombine.high %v363_v54, %v367_v55  ;;  %v227_v60 = vld [vmem:[#allocation5 + $0x108] sm:$0xff] }
  0x79   :  { %v4714_v2 = vcombine.high %v410_v61, %v414_v62  ;;  %v274_v3 = vld [vmem:[#allocation5 + $0x280] sm:$0xff]  ;;  %1838 = vmatpush2.bf16.msra.mxu1 %v4721_v0  ;;  %1796 = vmatprep.subr.bf16.mxu0 %v4586_v1  ;;  %v4713_v8 = vcombine.low %v410_v61, %v414_v62  ;;  %v231_v61 = vld [vmem:[#allocation5 + $0x128] sm:$0xff]  ;;  %v4539_v0 = vcombine.low %v235_v26, %v239_v53 }
  0x7a   :  { %v278_v4 = vld [vmem:[#allocation5 + $0x2a0] sm:$0xff]  ;;  %1797 = vmatpush2.bf16.msra.mxu0 %v4585_v7  ;;  %v355_v62 = vld [vmem:[#allocation5 + $0x508] sm:$0xff]  ;;  %v4667_v1 = vcombine.low %v363_v54, %v367_v55 }
  0x7b   :  { %v402_v5 = vld [vmem:[#allocation5 + $0x680] sm:$0xff]  ;;  %v4578_v9 = vcombine.high %v274_v3, %v278_v4  ;;  %1839 = vmatprep.subr.bf16.mxu1 %v4714_v2  ;;  %v4577_v18 = vcombine.low %v274_v3, %v278_v4  ;;  %v359_v63 = vld [vmem:[#allocation5 + $0x528] sm:$0xff]  ;;  %v4532_v2 = vcombine.high %v227_v60, %v231_v61 }
  0x7c   :  { %v406_v6 = vld [vmem:[#allocation5 + $0x6a0] sm:$0xff]  ;;  %v219_v3 = vld [vmem:[#allocation5 + $0xc8] sm:$0xff] }
  0x7d   :  { %v4706_v10 = vcombine.high %v402_v5, %v406_v6  ;;  %v266_v11 = vld [vmem:[#allocation5 + $0x240] sm:$0xff]  ;;  %1840 = vmatpush2.bf16.msra.mxu1 %v4713_v8  ;;  %1798 = vmatprep.subr.bf16.mxu0 %v4578_v9  ;;  %v4705_v19 = vcombine.low %v402_v5, %v406_v6  ;;  %v223_v4 = vld [vmem:[#allocation5 + $0xe8] sm:$0xff]  ;;  %v4660_v6 = vcombine.high %v355_v62, %v359_v63 }
  0x7e   :  { %v270_v15 = vld [vmem:[#allocation5 + $0x260] sm:$0xff]  ;;  %1799 = vmatpush2.bf16.msra.mxu0 %v4577_v18  ;;  %v347_v5 = vld [vmem:[#allocation5 + $0x4c8] sm:$0xff]  ;;  %v4531_v8 = vcombine.low %v227_v60, %v231_v61  ;;  %v4659_v9 = vcombine.low %v355_v62, %v359_v63 }
  0x7f   :  { %v394_v16 = vld [vmem:[#allocation5 + $0x640] sm:$0xff]  ;;  %v4570_v23 = vcombine.high %v266_v11, %v270_v15  ;;  %1841 = vmatprep.subr.bf16.mxu1 %v4706_v10  ;;  %v4569_v31 = vcombine.low %v266_v11, %v270_v15  ;;  %v351_v7 = vld [vmem:[#allocation5 + $0x4e8] sm:$0xff]  ;;  %v4524_v10 = vcombine.high %v219_v3, %v223_v4 }
  0x80   :  { %v398_v17 = vld [vmem:[#allocation5 + $0x660] sm:$0xff]  ;;  %v211_v11 = vld [vmem:[#allocation5 + $0x88] sm:$0xff] }
  0x81   :  { %v4698_v24 = vcombine.high %v394_v16, %v398_v17  ;;  %v258_v27 = vld [vmem:[#allocation5 + $0x200] sm:$0xff]  ;;  %1842 = vmatpush2.bf16.msra.mxu1 %v4705_v19  ;;  %1800 = vmatprep.subr.bf16.mxu0 %v4570_v23  ;;  %v4697_v32 = vcombine.low %v394_v16, %v398_v17  ;;  %v215_v15 = vld [vmem:[#allocation5 + $0xa8] sm:$0xff]  ;;  %v4652_v17 = vcombine.high %v347_v5, %v351_v7 }
  0x82   :  { %v262_v28 = vld [vmem:[#allocation5 + $0x220] sm:$0xff]  ;;  %1801 = vmatpush2.bf16.msra.mxu0 %v4569_v31  ;;  %v339_v16 = vld [vmem:[#allocation5 + $0x488] sm:$0xff]  ;;  %v4523_v19 = vcombine.low %v219_v3, %v223_v4  ;;  %v4651_v23 = vcombine.low %v347_v5, %v351_v7 }
  0x83   :  { %v386_v29 = vld [vmem:[#allocation5 + $0x600] sm:$0xff]  ;;  %v4562_v33 = vcombine.high %v258_v27, %v262_v28  ;;  %1843 = vmatprep.subr.bf16.mxu1 %v4698_v24  ;;  %v4561_v43 = vcombine.low %v258_v27, %v262_v28  ;;  %v343_v18 = vld [vmem:[#allocation5 + $0x4a8] sm:$0xff]  ;;  %v4516_v24 = vcombine.high %v211_v11, %v215_v15 }
  0x84   :  { %v390_v30 = vld [vmem:[#allocation5 + $0x620] sm:$0xff]  ;;  %v203_v27 = vld [vmem:[#allocation5 + $0x48] sm:$0xff] }
  0x85   :  { %v4690_v34 = vcombine.high %v386_v29, %v390_v30  ;;  %1844 = vmatpush2.bf16.msra.mxu1 %v4697_v32  ;;  %1802 = vmatprep.subr.bf16.mxu0 %v4562_v33  ;;  %v4689_v46 = vcombine.low %v386_v29, %v390_v30  ;;  %v207_v28 = vld [vmem:[#allocation5 + $0x68] sm:$0xff]  ;;  %v4644_v30 = vcombine.high %v339_v16, %v343_v18 }
  0x86   :  { %1803 = vmatpush2.bf16.msra.mxu0 %v4561_v43  ;;  %v331_v29 = vld [vmem:[#allocation5 + $0x448] sm:$0xff]  ;;  %v4515_v32 = vcombine.low %v211_v11, %v215_v15  ;;  %v4643_v33 = vcombine.low %v339_v16, %v343_v18  ;;  %v4507_v42 = vcombine.low %v203_v27, %v207_v28 }
  0x87   :  { %1845 = vmatprep.subr.bf16.mxu1 %v4690_v34  ;;  %1858 = vmatprep.subr.bf16.mxu0 %v4556_v47  ;;  %v335_v31 = vld [vmem:[#allocation5 + $0x468] sm:$0xff]  ;;  %v4508_v34 = vcombine.high %v203_v27, %v207_v28 }
  0x88   :  { %v195_v35 = vld [vmem:[#allocation5 + $0x8] sm:$0xff]  ;;  %v4636_v40 = vcombine.high %v331_v29, %v335_v31  ;;  %v4635_v43 = vcombine.low %v331_v29, %v335_v31 }
  0x89   :  { %1846 = vmatpush2.bf16.msra.mxu1 %v4689_v46  ;;  %1805 = vmatmul.mubr.bf16.vlgmr.msra.gmra.mxu0 %v5788_v49  ;;  %v199_v37 = vld [vmem:[#allocation5 + $0x28] sm:$0xff] }
  0x8a   :  { %1901 = vmatprep.subr.bf16.mxu1 %v4684_v48  ;;  %1859 = vmatpush1.bf16.msra.mxu0 %v4555_v51  ;;  %v323_v39 = vld [vmem:[#allocation5 + $0x408] sm:$0xff]  ;;  %v4500_v44 = vcombine.high %v195_v35, %v199_v37  ;;  %v4499_v13 = vcombine.low %v195_v35, %v199_v37 }
  0x8b   :  { %1860 = vmatprep.subr.bf16.mxu0 %v4548_v22  ;;  %1890 = vmatprep.mubr.bf16.mxu0 %v5774_v36  ;;  %v327_v41 = vld [vmem:[#allocation5 + $0x428] sm:$0xff] }
  0x8c   :  { %1848 = vmatmul.mubr.bf16.vlgmr.msra.gmra.mxu1 %v5790_v50  ;;  %v315_v45 = vld [vmem:[#allocation5 + $0x3c8] sm:$0xff]  ;;  %v4628_v48 = vcombine.high %v323_v39, %v327_v41  ;;  %v4627_v14 = vcombine.low %v323_v39, %v327_v41 }
  0x8d   :  { %1902 = vmatpush1.bf16.msra.mxu1 %v4683_v21  ;;  %1933 = vmatprep.mubr.bf16.mxu1 %v5776_v38  ;;  %v319_v46 = vld [vmem:[#allocation5 + $0x3e8] sm:$0xff] }
  0x8e   :  { %1903 = vmatprep.subr.bf16.mxu1 %v4676_v25  ;;  %1861 = vmatpush1.bf16.msra.mxu0 %v4547_v56  ;;  %v443_v47 = vld [vmem:[#allocation5 + $0x7c8] sm:$0xff]  ;;  %v4620_v20 = vcombine.high %v315_v45, %v319_v46  ;;  %v4619_v53 = vcombine.low %v315_v45, %v319_v46 }
  0x8f   :  { %1862 = vmatprep.subr.bf16.mxu0 %v4540_v58  ;;  %v447_v12 = vld [vmem:[#allocation5 + $0x7e8] sm:$0xff] }
  0x90   :  { %v307_v51 = vld [vmem:[#allocation5 + $0x388] sm:$0xff]  ;;  %v4748_v25 = vcombine.high %v443_v47, %v447_v12  ;;  %v4747_v54 = vcombine.low %v443_v47, %v447_v12 }
  0x91   :  { %1904 = vmatpush1.bf16.msra.mxu1 %v4675_v57  ;;  %v311_v21 = vld [vmem:[#allocation5 + $0x3a8] sm:$0xff] }
  0x92   :  { %1905 = vmatprep.subr.bf16.mxu1 %v4668_v59  ;;  %1863 = vmatpush1.bf16.msra.mxu0 %v4539_v0  ;;  %v435_v22 = vld [vmem:[#allocation5 + $0x788] sm:$0xff]  ;;  %v4612_v55 = vcombine.high %v307_v51, %v311_v21  ;;  %v4611_v61 = vcombine.low %v307_v51, %v311_v21  ;;  %v384_v21 = vld [vmem:[#allocation5 + $0x5f0] sm:$0xff] }
  0x93   :  { %1864 = vmatprep.subr.bf16.mxu0 %v4532_v2  ;;  %v439_v26 = vld [vmem:[#allocation5 + $0x7a8] sm:$0xff] }
  0x94   :  { %v299_v56 = vld [vmem:[#allocation5 + $0x348] sm:$0xff]  ;;  %v4740_v59 = vcombine.high %v435_v22, %v439_v26  ;;  %v4739_v62 = vcombine.low %v435_v22, %v439_v26 }
  0x95   :  { %1906 = vmatpush1.bf16.msra.mxu1 %v4667_v1  ;;  %v303_v57 = vld [vmem:[#allocation5 + $0x368] sm:$0xff] }
  0x96   :  { %1907 = vmatprep.subr.bf16.mxu1 %v4660_v6  ;;  %1865 = vmatpush1.bf16.msra.mxu0 %v4531_v8  ;;  %v427_v58 = vld [vmem:[#allocation5 + $0x748] sm:$0xff]  ;;  %v4604_v63 = vcombine.high %v299_v56, %v303_v57  ;;  %v4603_v5 = vcombine.low %v299_v56, %v303_v57  ;;  %v376_v57 = vld [vmem:[#allocation5 + $0x5b0] sm:$0xff] }
  0x97   :  { %1866 = vmatprep.subr.bf16.mxu0 %v4524_v10  ;;  %v431_v60 = vld [vmem:[#allocation5 + $0x768] sm:$0xff] }
  0x98   :  { %v291_v0 = vld [vmem:[#allocation5 + $0x308] sm:$0xff]  ;;  %v4732_v3 = vcombine.high %v427_v58, %v431_v60  ;;  %v4731_v6 = vcombine.low %v427_v58, %v431_v60 }
  0x99   :  { %1908 = vmatpush1.bf16.msra.mxu1 %v4659_v9  ;;  %v295_v1 = vld [vmem:[#allocation5 + $0x328] sm:$0xff] }
  0x9a   :  { %1909 = vmatprep.subr.bf16.mxu1 %v4652_v17  ;;  %1867 = vmatpush1.bf16.msra.mxu0 %v4523_v19  ;;  %v419_v2 = vld [vmem:[#allocation5 + $0x708] sm:$0xff]  ;;  %v4596_v7 = vcombine.high %v291_v0, %v295_v1  ;;  %v4595_v16 = vcombine.low %v291_v0, %v295_v1  ;;  %v364_v0 = vld [vmem:[#allocation5 + $0x550] sm:$0xff] }
  0x9b   :  { %1868 = vmatprep.subr.bf16.mxu0 %v4516_v24  ;;  %v423_v4 = vld [vmem:[#allocation5 + $0x728] sm:$0xff]  ;;  %v368_v1 = vld [vmem:[#allocation5 + $0x570] sm:$0xff] }
  0x9c   :  { %v283_v8 = vld [vmem:[#allocation5 + $0x2c8] sm:$0xff]  ;;  %v4724_v11 = vcombine.high %v419_v2, %v423_v4  ;;  %v4723_v17 = vcombine.low %v419_v2, %v423_v4  ;;  %v232_v4 = vld [vmem:[#allocation5 + $0x130] sm:$0xff] }
  0x9d   :  { %1910 = vmatpush1.bf16.msra.mxu1 %v4651_v23  ;;  %v287_v9 = vld [vmem:[#allocation5 + $0x2e8] sm:$0xff] }
  0x9e   :  { %1911 = vmatprep.subr.bf16.mxu1 %v4644_v30  ;;  %1869 = vmatpush1.bf16.msra.mxu0 %v4515_v32  ;;  %v411_v10 = vld [vmem:[#allocation5 + $0x6c8] sm:$0xff]  ;;  %v4588_v18 = vcombine.high %v283_v8, %v287_v9  ;;  %v4587_v29 = vcombine.low %v283_v8, %v287_v9  ;;  %v356_v8 = vld [vmem:[#allocation5 + $0x510] sm:$0xff] }
  0x9f   :  { %1870 = vmatprep.subr.bf16.mxu0 %v4508_v34  ;;  %v415_v15 = vld [vmem:[#allocation5 + $0x6e8] sm:$0xff]  ;;  %v360_v9 = vld [vmem:[#allocation5 + $0x530] sm:$0xff] }
  0xa0   :  { %v275_v19 = vld [vmem:[#allocation5 + $0x288] sm:$0xff]  ;;  %v4716_v27 = vcombine.high %v411_v10, %v415_v15  ;;  %v4715_v30 = vcombine.low %v411_v10, %v415_v15  ;;  %v224_v15 = vld [vmem:[#allocation5 + $0xf0] sm:$0xff] }
  0xa1   :  { %1912 = vmatpush1.bf16.msra.mxu1 %v4643_v33  ;;  %v279_v23 = vld [vmem:[#allocation5 + $0x2a8] sm:$0xff] }
  0xa2   :  { %1913 = vmatprep.subr.bf16.mxu1 %v4636_v40  ;;  %1871 = vmatpush1.bf16.msra.mxu0 %v4507_v42  ;;  %v403_v24 = vld [vmem:[#allocation5 + $0x688] sm:$0xff]  ;;  %v4580_v31 = vcombine.high %v275_v19, %v279_v23  ;;  %v4579_v39 = vcombine.low %v275_v19, %v279_v23  ;;  %v348_v19 = vld [vmem:[#allocation5 + $0x4d0] sm:$0xff] }
  0xa3   :  { %1872 = vmatprep.subr.bf16.mxu0 %v4500_v44  ;;  %v407_v28 = vld [vmem:[#allocation5 + $0x6a8] sm:$0xff]  ;;  %v352_v23 = vld [vmem:[#allocation5 + $0x4f0] sm:$0xff] }
  0xa4   :  { %v267_v32 = vld [vmem:[#allocation5 + $0x248] sm:$0xff]  ;;  %v4708_v35 = vcombine.high %v403_v24, %v407_v28  ;;  %v4707_v40 = vcombine.low %v403_v24, %v407_v28  ;;  %v216_v28 = vld [vmem:[#allocation5 + $0xb0] sm:$0xff] }
  0xa5   :  { %1914 = vmatpush1.bf16.msra.mxu1 %v4635_v43  ;;  %v271_v33 = vld [vmem:[#allocation5 + $0x268] sm:$0xff] }
  0xa6   :  { %1915 = vmatprep.subr.bf16.mxu1 %v4628_v48  ;;  %1873 = vmatpush1.bf16.msra.mxu0 %v4499_v13  ;;  %v395_v34 = vld [vmem:[#allocation5 + $0x648] sm:$0xff]  ;;  %v4572_v41 = vcombine.high %v267_v32, %v271_v33  ;;  %v4571_v47 = vcombine.low %v267_v32, %v271_v33  ;;  %v252_v13 = vld [vmem:[#allocation5 + $0x1d0] sm:$0xff] }
  0xa7   :  { %1874 = vmatprep.subr.bf16.mxu0 %v4620_v20  ;;  %v399_v37 = vld [vmem:[#allocation5 + $0x668] sm:$0xff]  ;;  %v380_v20 = vld [vmem:[#allocation5 + $0x5d0] sm:$0xff] }
  0xa8   :  { %v259_v42 = vld [vmem:[#allocation5 + $0x208] sm:$0xff]  ;;  %v4700_v45 = vcombine.high %v395_v34, %v399_v37  ;;  %v4699_v48 = vcombine.low %v395_v34, %v399_v37  ;;  %v4686_v56 = vcombine.high %v380_v20, %v384_v21  ;;  %v4685_v60 = vcombine.low %v380_v20, %v384_v21  ;;  %v340_v32 = vld [vmem:[#allocation5 + $0x490] sm:$0xff] }
  0xa9   :  { %1916 = vmatpush1.bf16.msra.mxu1 %v4627_v14  ;;  %v263_v43 = vld [vmem:[#allocation5 + $0x228] sm:$0xff]  ;;  %v256_v14 = vld [vmem:[#allocation5 + $0x1f0] sm:$0xff] }
  0xaa   :  { %1917 = vmatprep.subr.bf16.mxu1 %v4748_v25  ;;  %1875 = vmatpush2.bf16.msra.mxu0 %v4619_v53  ;;  %v387_v44 = vld [vmem:[#allocation5 + $0x608] sm:$0xff]  ;;  %v4564_v12 = vcombine.high %v259_v42, %v263_v43  ;;  %v4563_v22 = vcombine.low %v259_v42, %v263_v43  ;;  %v4558_v26 = vcombine.high %v252_v13, %v256_v14  ;;  %v244_v53 = vld [vmem:[#allocation5 + $0x190] sm:$0xff] }
  0xab   :  { %1876 = vmatprep.subr.bf16.mxu0 %v4612_v55  ;;  %v391_v46 = vld [vmem:[#allocation5 + $0x628] sm:$0xff]  ;;  %v372_v55 = vld [vmem:[#allocation5 + $0x590] sm:$0xff]  ;;  %v4557_v58 = vcombine.low %v252_v13, %v256_v14 }
  0xac   :  { %v4692_v51 = vcombine.high %v387_v44, %v391_v46  ;;  %v4691_v25 = vcombine.low %v387_v44, %v391_v46  ;;  %v344_v33 = vld [vmem:[#allocation5 + $0x4b0] sm:$0xff] }
  0xad   :  { %1918 = vmatpush2.bf16.msra.mxu1 %v4747_v54  ;;  %v248_v54 = vld [vmem:[#allocation5 + $0x1b0] sm:$0xff] }
  0xae   :  { %1919 = vmatprep.subr.bf16.mxu1 %v4740_v59  ;;  %1877 = vmatpush2.bf16.msra.mxu0 %v4611_v61  ;;  %v236_v59 = vld [vmem:[#allocation5 + $0x150] sm:$0xff]  ;;  %v4550_v61 = vcombine.high %v244_v53, %v248_v54  ;;  %v4549_v2 = vcombine.low %v244_v53, %v248_v54 }
  0xaf   :  { %1878 = vmatprep.subr.bf16.mxu0 %v4604_v63  ;;  %v4678_v63 = vcombine.high %v372_v55, %v376_v57  ;;  %v332_v42 = vld [vmem:[#allocation5 + $0x450] sm:$0xff] }
  0xb0   :  { %v336_v43 = vld [vmem:[#allocation5 + $0x470] sm:$0xff] }
  0xb1   :  { %1920 = vmatpush2.bf16.msra.mxu1 %v4739_v62  ;;  %v240_v62 = vld [vmem:[#allocation5 + $0x170] sm:$0xff]  ;;  %v4638_v14 = vcombine.high %v332_v42, %v336_v43 }
  0xb2   :  { %1921 = vmatprep.subr.bf16.mxu1 %v4732_v3  ;;  %1879 = vmatpush2.bf16.msra.mxu0 %v4603_v5  ;;  %v228_v3 = vld [vmem:[#allocation5 + $0x110] sm:$0xff]  ;;  %v4677_v5 = vcombine.low %v372_v55, %v376_v57  ;;  %v4541_v10 = vcombine.low %v236_v59, %v240_v62 }
  0xb3   :  { %1880 = vmatprep.subr.bf16.mxu0 %v4596_v7  ;;  %v4670_v7 = vcombine.high %v364_v0, %v368_v1  ;;  %v4533_v24 = vcombine.low %v228_v3, %v232_v4  ;;  %v200_v46 = vld [vmem:[#allocation5 + $0x30] sm:$0xff] }
  0xb4   :  { %v328_v13 = vld [vmem:[#allocation5 + $0x430] sm:$0xff] }
  0xb5   :  { %1922 = vmatpush2.bf16.msra.mxu1 %v4731_v6  ;;  %v4542_v6 = vcombine.high %v236_v59, %v240_v62  ;;  %v320_v21 = vld [vmem:[#allocation5 + $0x3f0] sm:$0xff] }
  0xb6   :  { %1923 = vmatprep.subr.bf16.mxu1 %v4724_v11  ;;  %1881 = vmatpush2.bf16.msra.mxu0 %v4595_v16  ;;  %v220_v11 = vld [vmem:[#allocation5 + $0xd0] sm:$0xff]  ;;  %v4669_v16 = vcombine.low %v364_v0, %v368_v1 }
  0xb7   :  { %1882 = vmatprep.subr.bf16.mxu0 %v4588_v18  ;;  %v4662_v18 = vcombine.high %v356_v8, %v360_v9  ;;  %v4525_v34 = vcombine.low %v220_v11, %v224_v15  ;;  %v448_v53 = vld [vmem:[#allocation5 + $0x7f0] sm:$0xff] }
  0xb8   :  { %v312_v57 = vld [vmem:[#allocation5 + $0x3b0] sm:$0xff] }
  0xb9   :  { %1924 = vmatpush2.bf16.msra.mxu1 %v4723_v17  ;;  %v4534_v17 = vcombine.high %v228_v3, %v232_v4  ;;  %v300_v0 = vld [vmem:[#allocation5 + $0x350] sm:$0xff] }
  0xba   :  { %1925 = vmatprep.subr.bf16.mxu1 %v4716_v27  ;;  %1883 = vmatpush2.bf16.msra.mxu0 %v4587_v29  ;;  %v212_v27 = vld [vmem:[#allocation5 + $0x90] sm:$0xff]  ;;  %v4661_v29 = vcombine.low %v356_v8, %v360_v9 }
  0xbb   :  { %1884 = vmatprep.subr.bf16.mxu0 %v4580_v31  ;;  %v4654_v31 = vcombine.high %v348_v19, %v352_v23  ;;  %v4518_v37 = vcombine.high %v212_v27, %v216_v28  ;;  %v4517_v44 = vcombine.low %v212_v27, %v216_v28  ;;  %v304_v1 = vld [vmem:[#allocation5 + $0x370] sm:$0xff] }
  0xbc   :  { %v428_v4 = vld [vmem:[#allocation5 + $0x750] sm:$0xff] }
  0xbd   :  { %1926 = vmatpush2.bf16.msra.mxu1 %v4715_v30  ;;  %v4526_v30 = vcombine.high %v220_v11, %v224_v15  ;;  %v292_v8 = vld [vmem:[#allocation5 + $0x310] sm:$0xff]  ;;  %v4606_v11 = vcombine.high %v300_v0, %v304_v1 }
  0xbe   :  { %1927 = vmatprep.subr.bf16.mxu1 %v4708_v35  ;;  %1885 = vmatpush2.bf16.msra.mxu0 %v4579_v39  ;;  %v4653_v35 = vcombine.low %v348_v19, %v352_v23  ;;  %v4646_v39 = vcombine.high %v340_v32, %v344_v33  ;;  %v296_v9 = vld [vmem:[#allocation5 + $0x330] sm:$0xff] }
  0xbf   :  { %1886 = vmatprep.subr.bf16.mxu0 %v4572_v41  ;;  %v208_v41 = vld [vmem:[#allocation5 + $0x70] sm:$0xff]  ;;  %v4598_v27 = vcombine.high %v292_v8, %v296_v9 }
  0xc0   :  { %v420_v15 = vld [vmem:[#allocation5 + $0x710] sm:$0xff] }
  0xc1   :  { %1928 = vmatpush2.bf16.msra.mxu1 %v4707_v40  ;;  %v204_v40 = vld [vmem:[#allocation5 + $0x50] sm:$0xff] }
  0xc2   :  { %1929 = vmatprep.subr.bf16.mxu1 %v4700_v45  ;;  %1887 = vmatpush2.bf16.msra.mxu0 %v4571_v47  ;;  %v196_v45 = vld [vmem:[#allocation5 + $0x10] sm:$0xff]  ;;  %v4645_v47 = vcombine.low %v340_v32, %v344_v33  ;;  %v4509_v20 = vcombine.low %v204_v40, %v208_v41 }
  0xc3   :  { %1888 = vmatprep.subr.bf16.mxu0 %v4564_v12  ;;  %v324_v12 = vld [vmem:[#allocation5 + $0x410] sm:$0xff]  ;;  %v4501_v55 = vcombine.low %v196_v45, %v200_v46 }
  0xc4   :  { %v4630_v54 = vcombine.high %v324_v12, %v328_v13  ;;  %v284_v19 = vld [vmem:[#allocation5 + $0x2d0] sm:$0xff] }
  0xc5   :  { %1930 = vmatpush2.bf16.msra.mxu1 %v4699_v48  ;;  %v4510_v48 = vcombine.high %v204_v40, %v208_v41  ;;  %v288_v23 = vld [vmem:[#allocation5 + $0x2f0] sm:$0xff] }
  0xc6   :  { %1931 = vmatprep.subr.bf16.mxu1 %v4692_v51  ;;  %1889 = vmatpush2.bf16.msra.mxu0 %v4563_v22  ;;  %v316_v51 = vld [vmem:[#allocation5 + $0x3d0] sm:$0xff]  ;;  %v4637_v22 = vcombine.low %v332_v42, %v336_v43  ;;  %v4589_v41 = vcombine.low %v284_v19, %v288_v23 }
  0xc7   :  { %1944 = vmatprep.subr.bf16.mxu0 %v4558_v26  ;;  %v444_v26 = vld [vmem:[#allocation5 + $0x7d0] sm:$0xff]  ;;  %v4622_v59 = vcombine.high %v316_v51, %v320_v21 }
  0xc8   :  { %v4750_v62 = vcombine.high %v444_v26, %v448_v53  ;;  %v412_v28 = vld [vmem:[#allocation5 + $0x6d0] sm:$0xff] }
  0xc9   :  { %1932 = vmatpush2.bf16.msra.mxu1 %v4691_v25  ;;  %1891 = vmatmul.mubr.bf16.vlgmr.msra.gmra.mxu0 %v5788_v49  ;;  %v4502_v25 = vcombine.high %v196_v45, %v200_v46  ;;  %v276_v32 = vld [vmem:[#allocation5 + $0x290] sm:$0xff] }
  0xca   :  { %1987 = vmatprep.subr.bf16.mxu1 %v4686_v56  ;;  %1945 = vmatpush1.bf16.msra.mxu0 %v4557_v58  ;;  %v308_v56 = vld [vmem:[#allocation5 + $0x390] sm:$0xff]  ;;  %v4629_v58 = vcombine.low %v324_v12, %v328_v13 }
  0xcb   :  { %1946 = vmatprep.subr.bf16.mxu0 %v4550_v61  ;;  %1976 = vmatprep.mubr.bf16.mxu0 %v5774_v36  ;;  %v440_v61 = vld [vmem:[#allocation5 + $0x7b0] sm:$0xff]  ;;  %v4614_v3 = vcombine.high %v308_v56, %v312_v57 }
  0xcc   :  { %1934 = vmatmul.mubr.bf16.vlgmr.msra.gmra.mxu1 %v5790_v50  ;;  %v280_v33 = vld [vmem:[#allocation5 + $0x2b0] sm:$0xff] }
  0xcd   :  { %1988 = vmatpush1.bf16.msra.mxu1 %v4685_v60  ;;  %2019 = vmatprep.mubr.bf16.mxu1 %v5776_v38  ;;  %v436_v60 = vld [vmem:[#allocation5 + $0x790] sm:$0xff]  ;;  %v4582_v45 = vcombine.high %v276_v32, %v280_v33  ;;  %v4581_v12 = vcombine.low %v276_v32, %v280_v33 }
  0xce   :  { %1989 = vmatprep.subr.bf16.mxu1 %v4678_v63  ;;  %1947 = vmatpush1.bf16.msra.mxu0 %v4549_v2  ;;  %v4621_v63 = vcombine.low %v316_v51, %v320_v21  ;;  %v4749_v2 = vcombine.low %v444_v26, %v448_v53  ;;  %v268_v42 = vld [vmem:[#allocation5 + $0x250] sm:$0xff]  ;;  %v253_v53 = vld [vmem:[#allocation5 + $0x1d8] sm:$0xff] }
  0xcf   :  { %1948 = vmatprep.subr.bf16.mxu0 %v4542_v6  ;;  %v4742_v6 = vcombine.high %v436_v60, %v440_v61  ;;  %v272_v43 = vld [vmem:[#allocation5 + $0x270] sm:$0xff] }
  0xd0   :  { %v396_v46 = vld [vmem:[#allocation5 + $0x650] sm:$0xff]  ;;  %v4574_v51 = vcombine.high %v268_v42, %v272_v43  ;;  %v4573_v26 = vcombine.low %v268_v42, %v272_v43  ;;  %v341_v42 = vld [vmem:[#allocation5 + $0x498] sm:$0xff] }
  0xd1   :  { %1990 = vmatpush1.bf16.msra.mxu1 %v4677_v5  ;;  %v432_v5 = vld [vmem:[#allocation5 + $0x770] sm:$0xff]  ;;  %v345_v43 = vld [vmem:[#allocation5 + $0x4b8] sm:$0xff] }
  0xd2   :  { %1991 = vmatprep.subr.bf16.mxu1 %v4670_v7  ;;  %1949 = vmatpush1.bf16.msra.mxu0 %v4541_v10  ;;  %v4613_v7 = vcombine.low %v308_v56, %v312_v57  ;;  %v4741_v10 = vcombine.low %v436_v60, %v440_v61  ;;  %v260_v13 = vld [vmem:[#allocation5 + $0x210] sm:$0xff]  ;;  %v381_v57 = vld [vmem:[#allocation5 + $0x5d8] sm:$0xff] }
  0xd3   :  { %1950 = vmatprep.subr.bf16.mxu0 %v4534_v17  ;;  %v4734_v17 = vcombine.high %v428_v4, %v432_v5  ;;  %v388_v21 = vld [vmem:[#allocation5 + $0x610] sm:$0xff]  ;;  %v245_v61 = vld [vmem:[#allocation5 + $0x198] sm:$0xff] }
  0xd5   :  { %1992 = vmatpush1.bf16.msra.mxu1 %v4669_v16  ;;  %v424_v16 = vld [vmem:[#allocation5 + $0x730] sm:$0xff] }
  0xd6   :  { %1993 = vmatprep.subr.bf16.mxu1 %v4662_v18  ;;  %1951 = vmatpush1.bf16.msra.mxu0 %v4533_v24  ;;  %v4605_v18 = vcombine.low %v300_v0, %v304_v1  ;;  %v4733_v24 = vcombine.low %v428_v4, %v432_v5  ;;  %v373_v1 = vld [vmem:[#allocation5 + $0x598] sm:$0xff] }
  0xd7   :  { %1952 = vmatprep.subr.bf16.mxu0 %v4526_v30  ;;  %v4726_v30 = vcombine.high %v420_v15, %v424_v16  ;;  %v237_v5 = vld [vmem:[#allocation5 + $0x158] sm:$0xff] }
  0xd9   :  { %1994 = vmatpush1.bf16.msra.mxu1 %v4661_v29  ;;  %v416_v29 = vld [vmem:[#allocation5 + $0x6f0] sm:$0xff] }
  0xda   :  { %1995 = vmatprep.subr.bf16.mxu1 %v4654_v31  ;;  %1953 = vmatpush1.bf16.msra.mxu0 %v4525_v34  ;;  %v4597_v31 = vcombine.low %v292_v8, %v296_v9  ;;  %v4725_v34 = vcombine.low %v420_v15, %v424_v16  ;;  %v4718_v40 = vcombine.high %v412_v28, %v416_v29  ;;  %v229_v16 = vld [vmem:[#allocation5 + $0x118] sm:$0xff] }
  0xdb   :  { %1954 = vmatprep.subr.bf16.mxu0 %v4518_v37  ;;  %v404_v37 = vld [vmem:[#allocation5 + $0x690] sm:$0xff] }
  0xdd   :  { %1996 = vmatpush1.bf16.msra.mxu1 %v4653_v35  ;;  %v4590_v35 = vcombine.high %v284_v19, %v288_v23 }
  0xde   :  { %1997 = vmatprep.subr.bf16.mxu1 %v4646_v39  ;;  %1955 = vmatpush1.bf16.msra.mxu0 %v4517_v44  ;;  %v408_v39 = vld [vmem:[#allocation5 + $0x6b0] sm:$0xff]  ;;  %v4717_v44 = vcombine.low %v412_v28, %v416_v29  ;;  %v221_v29 = vld [vmem:[#allocation5 + $0xd8] sm:$0xff] }
  0xdf   :  { %1956 = vmatprep.subr.bf16.mxu0 %v4510_v48  ;;  %v4710_v48 = vcombine.high %v404_v37, %v408_v39 }
  0xe1   :  { %1998 = vmatpush1.bf16.msra.mxu1 %v4645_v47  ;;  %v400_v47 = vld [vmem:[#allocation5 + $0x670] sm:$0xff] }
  0xe2   :  { %1999 = vmatprep.subr.bf16.mxu1 %v4638_v14  ;;  %1957 = vmatpush1.bf16.msra.mxu0 %v4509_v20  ;;  %v264_v14 = vld [vmem:[#allocation5 + $0x230] sm:$0xff]  ;;  %v4709_v20 = vcombine.low %v404_v37, %v408_v39  ;;  %v213_v39 = vld [vmem:[#allocation5 + $0x98] sm:$0xff] }
  0xe3   :  { %1958 = vmatprep.subr.bf16.mxu0 %v4502_v25  ;;  %v4702_v25 = vcombine.high %v396_v46, %v400_v47  ;;  %v4566_v56 = vcombine.high %v260_v13, %v264_v14  ;;  %v4565_v60 = vcombine.low %v260_v13, %v264_v14  ;;  %v333_v13 = vld [vmem:[#allocation5 + $0x458] sm:$0xff] }
  0xe4   :  { %v337_v14 = vld [vmem:[#allocation5 + $0x478] sm:$0xff] }
  0xe5   :  { %2000 = vmatpush1.bf16.msra.mxu1 %v4637_v22  ;;  %v392_v22 = vld [vmem:[#allocation5 + $0x630] sm:$0xff] }
  0xe6   :  { %2001 = vmatprep.subr.bf16.mxu1 %v4630_v54  ;;  %1959 = vmatpush1.bf16.msra.mxu0 %v4501_v55  ;;  %v257_v54 = vld [vmem:[#allocation5 + $0x1f8] sm:$0xff]  ;;  %v4701_v55 = vcombine.low %v396_v46, %v400_v47 }
  0xe7   :  { %1960 = vmatprep.subr.bf16.mxu0 %v4622_v59  ;;  %v4694_v59 = vcombine.high %v388_v21, %v392_v22  ;;  %v4560_v0 = vcombine.high %v253_v53, %v257_v54  ;;  %v4559_v4 = vcombine.low %v253_v53, %v257_v54  ;;  %v205_v47 = vld [vmem:[#allocation5 + $0x58] sm:$0xff]  ;;  %v4640_v53 = vcombine.high %v333_v13, %v337_v14 }
  0xe8   :  { %v329_v54 = vld [vmem:[#allocation5 + $0x438] sm:$0xff] }
  0xe9   :  { %2002 = vmatpush1.bf16.msra.mxu1 %v4629_v58  ;;  %v385_v58 = vld [vmem:[#allocation5 + $0x5f8] sm:$0xff] }
  0xea   :  { %2003 = vmatprep.subr.bf16.mxu1 %v4750_v62  ;;  %1961 = vmatpush2.bf16.msra.mxu0 %v4621_v63  ;;  %v249_v62 = vld [vmem:[#allocation5 + $0x1b8] sm:$0xff]  ;;  %v4693_v63 = vcombine.low %v388_v21, %v392_v22 }
  0xeb   :  { %1962 = vmatprep.subr.bf16.mxu0 %v4614_v3  ;;  %v4688_v3 = vcombine.high %v381_v57, %v385_v58  ;;  %v4552_v8 = vcombine.high %v245_v61, %v249_v62  ;;  %v4551_v15 = vcombine.low %v245_v61, %v249_v62  ;;  %v197_v22 = vld [vmem:[#allocation5 + $0x18] sm:$0xff] }
  0xec   :  { %v449_v61 = vld [vmem:[#allocation5 + $0x7f8] sm:$0xff] }
  0xed   :  { %2004 = vmatpush2.bf16.msra.mxu1 %v4749_v2  ;;  %v377_v2 = vld [vmem:[#allocation5 + $0x5b8] sm:$0xff] }
  0xee   :  { %2005 = vmatprep.subr.bf16.mxu1 %v4742_v6  ;;  %1963 = vmatpush2.bf16.msra.mxu0 %v4613_v7  ;;  %v241_v6 = vld [vmem:[#allocation5 + $0x178] sm:$0xff]  ;;  %v4687_v7 = vcombine.low %v381_v57, %v385_v58  ;;  %v4680_v9 = vcombine.high %v373_v1, %v377_v2  ;;  %v4639_v58 = vcombine.low %v333_v13, %v337_v14 }
  0xef   :  { %1964 = vmatprep.subr.bf16.mxu0 %v4606_v11  ;;  %v369_v11 = vld [vmem:[#allocation5 + $0x578] sm:$0xff]  ;;  %v4544_v19 = vcombine.high %v237_v5, %v241_v6  ;;  %v4543_v28 = vcombine.low %v237_v5, %v241_v6 }
  0xf0   :  { %v321_v57 = vld [vmem:[#allocation5 + $0x3f8] sm:$0xff] }
  0xf1   :  { %2006 = vmatpush2.bf16.msra.mxu1 %v4741_v10  ;;  %v365_v10 = vld [vmem:[#allocation5 + $0x558] sm:$0xff] }
  0xf2   :  { %2007 = vmatprep.subr.bf16.mxu1 %v4734_v17  ;;  %1965 = vmatpush2.bf16.msra.mxu0 %v4605_v18  ;;  %v233_v17 = vld [vmem:[#allocation5 + $0x138] sm:$0xff]  ;;  %v4679_v18 = vcombine.low %v373_v1, %v377_v2  ;;  %v4672_v23 = vcombine.high %v365_v10, %v369_v11 }
  0xf3   :  { %1966 = vmatprep.subr.bf16.mxu0 %v4598_v27  ;;  %v361_v27 = vld [vmem:[#allocation5 + $0x538] sm:$0xff]  ;;  %v4536_v32 = vcombine.high %v229_v16, %v233_v17  ;;  %v4535_v37 = vcombine.low %v229_v16, %v233_v17 }
  0xf4   :  { %v313_v1 = vld [vmem:[#allocation5 + $0x3b8] sm:$0xff] }
  0xf5   :  { %2008 = vmatpush2.bf16.msra.mxu1 %v4733_v24  ;;  %v357_v24 = vld [vmem:[#allocation5 + $0x518] sm:$0xff] }
  0xf6   :  { %2009 = vmatprep.subr.bf16.mxu1 %v4726_v30  ;;  %1967 = vmatpush2.bf16.msra.mxu0 %v4597_v31  ;;  %v225_v30 = vld [vmem:[#allocation5 + $0xf8] sm:$0xff]  ;;  %v4671_v31 = vcombine.low %v365_v10, %v369_v11  ;;  %v4664_v33 = vcombine.high %v357_v24, %v361_v27 }
  0xf7   :  { %1968 = vmatprep.subr.bf16.mxu0 %v4590_v35  ;;  %v353_v35 = vld [vmem:[#allocation5 + $0x4f8] sm:$0xff] }
  0xf8   :  { %v441_v5 = vld [vmem:[#allocation5 + $0x7b8] sm:$0xff] }
  0xf9   :  { %2010 = vmatpush2.bf16.msra.mxu1 %v4725_v34  ;;  %v349_v34 = vld [vmem:[#allocation5 + $0x4d8] sm:$0xff] }
  0xfa   :  { %2011 = vmatprep.subr.bf16.mxu1 %v4718_v40  ;;  %1969 = vmatpush2.bf16.msra.mxu0 %v4589_v41  ;;  %v217_v40 = vld [vmem:[#allocation5 + $0xb8] sm:$0xff]  ;;  %v4656_v41 = vcombine.high %v349_v34, %v353_v35 }
  0xfb   :  { %1970 = vmatprep.subr.bf16.mxu0 %v4582_v45  ;;  %v4655_v45 = vcombine.low %v349_v34, %v353_v35  ;;  %v4520_v46 = vcombine.high %v213_v39, %v217_v40  ;;  %v301_v11 = vld [vmem:[#allocation5 + $0x358] sm:$0xff] }
  0xfc   :  { %v429_v16 = vld [vmem:[#allocation5 + $0x758] sm:$0xff] }
  0xfd   :  { %2012 = vmatpush2.bf16.msra.mxu1 %v4717_v44  ;;  %v4527_v44 = vcombine.low %v221_v29, %v225_v30  ;;  %v433_v17 = vld [vmem:[#allocation5 + $0x778] sm:$0xff] }
  0xfe   :  { %2013 = vmatprep.subr.bf16.mxu1 %v4710_v48  ;;  %1971 = vmatpush2.bf16.msra.mxu0 %v4581_v12  ;;  %v4648_v48 = vcombine.high %v341_v42, %v345_v43  ;;  %v209_v12 = vld [vmem:[#allocation5 + $0x78] sm:$0xff] }
  0xff   :  { %1972 = vmatprep.subr.bf16.mxu0 %v4574_v51  ;;  %v4647_v51 = vcombine.low %v341_v42, %v345_v43  ;;  %v4512_v21 = vcombine.high %v205_v47, %v209_v12  ;;  %v285_v35 = vld [vmem:[#allocation5 + $0x2d8] sm:$0xff] }
 0x100   :  { %v277_v43 = vld [vmem:[#allocation5 + $0x298] sm:$0xff] }
 0x101   :  { %2014 = vmatpush2.bf16.msra.mxu1 %v4709_v20  ;;  %v4519_v20 = vcombine.low %v213_v39, %v217_v40  ;;  %v413_v39 = vld [vmem:[#allocation5 + $0x6d8] sm:$0xff] }
 0x102   :  { %2015 = vmatprep.subr.bf16.mxu1 %v4702_v25  ;;  %1973 = vmatpush2.bf16.msra.mxu0 %v4573_v26  ;;  %v201_v25 = vld [vmem:[#allocation5 + $0x38] sm:$0xff] }
 0x103   :  { %1974 = vmatprep.subr.bf16.mxu0 %v4566_v56  ;;  %v325_v26 = vld [vmem:[#allocation5 + $0x418] sm:$0xff] }
 0x104   :  { %v317_v56 = vld [vmem:[#allocation5 + $0x3d8] sm:$0xff]  ;;  %v4632_v62 = vcombine.high %v325_v26, %v329_v54  ;;  %v4631_v2 = vcombine.low %v325_v26, %v329_v54 }
 0x105   :  { %2016 = vmatpush2.bf16.msra.mxu1 %v4701_v55  ;;  %v4511_v55 = vcombine.low %v205_v47, %v209_v12  ;;  %v417_v40 = vld [vmem:[#allocation5 + $0x6f8] sm:$0xff] }
 0x106   :  { %2017 = vmatprep.subr.bf16.mxu1 %v4694_v59  ;;  %1975 = vmatpush2.bf16.msra.mxu0 %v4565_v60  ;;  %v4504_v59 = vcombine.high %v197_v22, %v201_v25  ;;  %v445_v60 = vld [vmem:[#allocation5 + $0x7d8] sm:$0xff]  ;;  %v4720_v42 = vcombine.high %v413_v39, %v417_v40 }
 0x107   :  { %2030 = vmatprep.subr.bf16.mxu0 %v4560_v0  ;;  %v309_v0 = vld [vmem:[#allocation5 + $0x398] sm:$0xff]  ;;  %v4752_v6 = vcombine.high %v445_v60, %v449_v61 }
 0x108   :  { %v269_v14 = vld [vmem:[#allocation5 + $0x258] sm:$0xff] }
 0x109   :  { %2018 = vmatpush2.bf16.msra.mxu1 %v4693_v63  ;;  %1977 = vmatmul.mubr.bf16.vlgmr.msra.gmra.mxu0 %v5788_v49  ;;  %v4503_v63 = vcombine.low %v197_v22, %v201_v25  ;;  %v261_v54 = vld [vmem:[#allocation5 + $0x218] sm:$0xff] }
 0x10a   :  { %2073 = vmatprep.subr.bf16.mxu1 %v4688_v3  ;;  %2031 = vmatpush1.bf16.msra.mxu0 %v4559_v4  ;;  %v4624_v3 = vcombine.high %v317_v56, %v321_v57  ;;  %v437_v4 = vld [vmem:[#allocation5 + $0x798] sm:$0xff] }
 0x10b   :  { %2032 = vmatprep.subr.bf16.mxu0 %v4552_v8  ;;  %2062 = vmatprep.mubr.bf16.mxu0 %v5774_v36  ;;  %v4663_v36 = vcombine.low %v357_v24, %v361_v27  ;;  %v4751_v8 = vcombine.low %v445_v60, %v449_v61  ;;  %v4744_v10 = vcombine.high %v437_v4, %v441_v5  ;;  %v293_v27 = vld [vmem:[#allocation5 + $0x318] sm:$0xff] }
 0x10c   :  { %2020 = vmatmul.mubr.bf16.vlgmr.msra.gmra.mxu1 %v5790_v50  ;;  %v4736_v24 = vcombine.high %v429_v16, %v433_v17 }
 0x10d   :  { %2074 = vmatpush1.bf16.msra.mxu1 %v4687_v7  ;;  %2105 = vmatprep.mubr.bf16.mxu1 %v5776_v38  ;;  %v4528_v38 = vcombine.high %v221_v29, %v225_v30  ;;  %v4623_v7 = vcombine.low %v317_v56, %v321_v57  ;;  %v421_v29 = vld [vmem:[#allocation5 + $0x718] sm:$0xff] }
 0x10e   :  { %2075 = vmatprep.subr.bf16.mxu1 %v4680_v9  ;;  %2033 = vmatpush1.bf16.msra.mxu0 %v4551_v15  ;;  %v4616_v9 = vcombine.high %v309_v0, %v313_v1  ;;  %v305_v15 = vld [vmem:[#allocation5 + $0x378] sm:$0xff] }
 0x10f   :  { %2034 = vmatprep.subr.bf16.mxu0 %v4544_v19  ;;  %v4743_v19 = vcombine.low %v437_v4, %v441_v5  ;;  %v425_v30 = vld [vmem:[#allocation5 + $0x738] sm:$0xff] }
 0x110   :  { %v4728_v34 = vcombine.high %v421_v29, %v425_v30  ;;  %v389_v56 = vld [vmem:[#allocation5 + $0x618] sm:$0xff] }
 0x111   :  { %2076 = vmatpush1.bf16.msra.mxu1 %v4679_v18  ;;  %v4615_v18 = vcombine.low %v309_v0, %v313_v1  ;;  %v393_v57 = vld [vmem:[#allocation5 + $0x638] sm:$0xff]  ;;  %v458_v1 = vsub.s32 1, %v5747_v52 }
 0x112   :  { %2077 = vmatprep.subr.bf16.mxu1 %v4672_v23  ;;  %2035 = vmatpush1.bf16.msra.mxu0 %v4543_v28  ;;  %v4608_v23 = vcombine.high %v301_v11, %v305_v15  ;;  %v297_v28 = vld [vmem:[#allocation5 + $0x338] sm:$0xff]  ;;  %v4696_v61 = vcombine.high %v389_v56, %v393_v57 }
 0x113   :  { %2036 = vmatprep.subr.bf16.mxu0 %v4536_v32  ;;  %v4735_v32 = vcombine.low %v429_v16, %v433_v17  ;;  %v5124_v0 = vld [vmem:[#allocation8 + $0xe4] ss:$16 sps:$4 sm:$0xff]   ;;  %v5122_v4 = vld [vmem:[#allocation8 + $0xe0] ss:$16 sps:$4 sm:$0xff]  }
 0x114   :  { %v5127_v5 = vld [vmem:[#allocation8 + $0xc4] ss:$16 sps:$4 sm:$0xff]   ;;  %v5143_v17 = vld [vmem:[#allocation8 + $0x2c0] ss:$16 sps:$4 sm:$0xff]  }
 0x115   :  { %2078 = vmatpush1.bf16.msra.mxu1 %v4671_v31  ;;  %v4607_v31 = vcombine.low %v301_v11, %v305_v15  ;;  %v5125_v11 = vld [vmem:[#allocation8 + $0xc0] ss:$16 sps:$4 sm:$0xff]   ;;  %v5130_v16 = vld [vmem:[#allocation8 + $0xa4] ss:$16 sps:$4 sm:$0xff]  }
 0x116   :  { %2079 = vmatprep.subr.bf16.mxu1 %v4664_v33  ;;  %2037 = vmatpush1.bf16.msra.mxu0 %v4535_v37  ;;  %v4600_v33 = vcombine.high %v293_v27, %v297_v28  ;;  %v289_v37 = vld [vmem:[#allocation5 + $0x2f8] sm:$0xff] }
 0x117   :  { %2038 = vmatprep.subr.bf16.mxu0 %v4528_v38  ;;  %v4727_v38 = vcombine.low %v421_v29, %v425_v30  ;;  %v4591_v47 = vcombine.low %v285_v35, %v289_v37  ;;  %v5149_v29 = vld [vmem:[#allocation8 + $0x2a0] ss:$16 sps:$4 sm:$0xff]  }
 0x119   :  { %2080 = vmatpush1.bf16.msra.mxu1 %v4663_v36  ;;  %v4599_v36 = vcombine.low %v293_v27, %v297_v28 }
 0x11a   :  { %2081 = vmatprep.subr.bf16.mxu1 %v4656_v41  ;;  %2039 = vmatpush1.bf16.msra.mxu0 %v4527_v44  ;;  %v4592_v41 = vcombine.high %v285_v35, %v289_v37  ;;  %v281_v44 = vld [vmem:[#allocation5 + $0x2b8] sm:$0xff] }
 0x11b   :  { %2040 = vmatprep.subr.bf16.mxu0 %v4520_v46  ;;  %v409_v46 = vld [vmem:[#allocation5 + $0x6b8] sm:$0xff]  ;;  %v4584_v12 = vcombine.high %v277_v43, %v281_v44  ;;  %v4583_v22 = vcombine.low %v277_v43, %v281_v44 }
 0x11c   :  { %v5131_v35 = vld [vmem:[#allocation8 + $0x80] ss:$16 sps:$4 sm:$0xff]   ;;  %v5136_v37 = vld [vmem:[#allocation8 + $0x64] ss:$16 sps:$4 sm:$0xff]  }
 0x11d   :  { %2082 = vmatpush1.bf16.msra.mxu1 %v4655_v45  ;;  %v405_v45 = vld [vmem:[#allocation5 + $0x698] sm:$0xff] }
 0x11e   :  { %2083 = vmatprep.subr.bf16.mxu1 %v4648_v48  ;;  %2041 = vmatpush1.bf16.msra.mxu0 %v4519_v20  ;;  %v4719_v48 = vcombine.low %v413_v39, %v417_v40  ;;  %v4712_v13 = vcombine.high %v405_v45, %v409_v46  ;;  %v273_v20 = vld [vmem:[#allocation5 + $0x278] sm:$0xff]  ;;  %v4711_v25 = vcombine.low %v405_v45, %v409_v46 }
 0x11f   :  { %2042 = vmatprep.subr.bf16.mxu0 %v4512_v21  ;;  %v401_v21 = vld [vmem:[#allocation5 + $0x678] sm:$0xff]  ;;  %v4576_v26 = vcombine.high %v269_v14, %v273_v20 }
 0x120   :  { %v5155_v39 = vld [vmem:[#allocation8 + $0x280] ss:$16 sps:$4 sm:$0xff]   ;;  %v5142_v43 = vld [vmem:[#allocation8 + $0x44] ss:$16 sps:$4 sm:$0xff]  }
 0x121   :  { %2084 = vmatpush1.bf16.msra.mxu1 %v4647_v51  ;;  %v397_v51 = vld [vmem:[#allocation5 + $0x658] sm:$0xff] }
 0x122   :  { %2085 = vmatprep.subr.bf16.mxu1 %v4640_v53  ;;  %2043 = vmatpush1.bf16.msra.mxu0 %v4511_v55  ;;  %v4704_v53 = vcombine.high %v397_v51, %v401_v21  ;;  %v265_v55 = vld [vmem:[#allocation5 + $0x238] sm:$0xff] }
 0x123   :  { %2044 = vmatprep.subr.bf16.mxu0 %v4504_v59  ;;  %v4703_v59 = vcombine.low %v397_v51, %v401_v21  ;;  %v4568_v60 = vcombine.high %v261_v54, %v265_v55  ;;  %v5161_v44 = vld [vmem:[#allocation8 + $0x260] ss:$16 sps:$4 sm:$0xff]   ;;  %v5169_v45 = vld [vmem:[#allocation8 + $0x244] ss:$16 sps:$4 sm:$0xff]  }
 0x124   :  { %v5140_v46 = vld [vmem:[#allocation8 + $0x40] ss:$16 sps:$4 sm:$0xff]   ;;  %v5181_v51 = vld [vmem:[#allocation8 + $0x204] ss:$16 sps:$4 sm:$0xff]  }
 0x125   :  { %2086 = vmatpush1.bf16.msra.mxu1 %v4639_v58  ;;  %v4575_v58 = vcombine.low %v269_v14, %v273_v20  ;;  %v5154_v14 = vld [vmem:[#allocation8 + $0x4] ss:$16 sps:$4 sm:$0xff]   ;;  %v5173_v20 = vld [vmem:[#allocation8 + $0x220] ss:$16 sps:$4 sm:$0xff]  }
 0x126   :  { %2087 = vmatprep.subr.bf16.mxu1 %v4632_v62  ;;  %2045 = vmatpush1.bf16.msra.mxu0 %v4503_v63  ;;  %v4567_v62 = vcombine.low %v261_v54, %v265_v55  ;;  %v4695_v63 = vcombine.low %v389_v56, %v393_v57  ;;  %v5152_v21 = vld [vmem:[#allocation8] ss:$16 sps:$4 sm:$0xff]   ;;  %v5166_v54 = vld [vmem:[#allocation8 + $0x1c4] ss:$16 sps:$4 sm:$0xff]  }
 0x127   :  { %2046 = vmatprep.subr.bf16.mxu0 %v4624_v3  ;;  %v5805_v3 = vld [vmem:[#allocation7] sm:$0xff]  ;;  %v5185_v55 = vld [vmem:[#allocation8 + $0x3e0] ss:$16 sps:$4 sm:$0xff]   ;;  %v5193_v56 = vld [vmem:[#allocation8 + $0x3c4] ss:$16 sps:$4 sm:$0xff]  }
 0x128   :  { %v5164_v57 = vld [vmem:[#allocation8 + $0x1c0] ss:$16 sps:$4 sm:$0xff]  }
 0x129   :  { %2088 = vmatpush1.bf16.msra.mxu1 %v4631_v2  ;;  %v5139_v2 = vld [vmem:[#allocation8 + $0x2e4] ss:$16 sps:$4 sm:$0xff]  }
 0x12a   :  { %2089 = vmatprep.subr.bf16.mxu1 %v4752_v6  ;;  %2047 = vmatpush2.bf16.msra.mxu0 %v4623_v7  ;;  %v5137_v6 = vld [vmem:[#allocation8 + $0x2e0] ss:$16 sps:$4 sm:$0xff]   ;;  %v459_v7 = vrot.slane %v5805_v3, %v458_v1 }
 0x12b   :  { %2048 = vmatprep.subr.bf16.mxu0 %v4616_v9 }
 0x12d   :  { %2090 = vmatpush2.bf16.msra.mxu1 %v4751_v8  ;;  %v5145_v8 = vld [vmem:[#allocation8 + $0x2c4] ss:$16 sps:$4 sm:$0xff]  }
 0x12e   :  { %2091 = vmatprep.subr.bf16.mxu1 %v4744_v10  ;;  %2049 = vmatpush2.bf16.msra.mxu0 %v4615_v18 }
 0x12f   :  { %2050 = vmatprep.subr.bf16.mxu0 %v4608_v23  ;;  %v5151_v23 = vld [vmem:[#allocation8 + $0x2a4] ss:$16 sps:$4 sm:$0xff]  }
 0x131   :  { %2092 = vmatpush2.bf16.msra.mxu1 %v4743_v19 }
 0x132   :  { %2093 = vmatprep.subr.bf16.mxu1 %v4736_v24  ;;  %2051 = vmatpush2.bf16.msra.mxu0 %v4607_v31 }
 0x133   :  { %2052 = vmatprep.subr.bf16.mxu0 %v4600_v33 }
 0x135   :  { %2094 = vmatpush2.bf16.msra.mxu1 %v4735_v32  ;;  %v5157_v32 = vld [vmem:[#allocation8 + $0x284] ss:$16 sps:$4 sm:$0xff]  }
 0x136   :  { %2095 = vmatprep.subr.bf16.mxu1 %v4728_v34  ;;  %2053 = vmatpush2.bf16.msra.mxu0 %v4599_v36 }
 0x137   :  { %2054 = vmatprep.subr.bf16.mxu0 %v4592_v41 }
 0x139   :  { %2096 = vmatpush2.bf16.msra.mxu1 %v4727_v38  ;;  %v5163_v38 = vld [vmem:[#allocation8 + $0x264] ss:$16 sps:$4 sm:$0xff]  }
 0x13a   :  { %2097 = vmatprep.subr.bf16.mxu1 %v4720_v42  ;;  %2055 = vmatpush2.bf16.msra.mxu0 %v4591_v47  ;;  %v5134_v42 = vld [vmem:[#allocation8 + $0x60] ss:$16 sps:$4 sm:$0xff]   ;;  %v5148_v47 = vld [vmem:[#allocation8 + $0x24] ss:$16 sps:$4 sm:$0xff]  }
 0x13b   :  { %2056 = vmatprep.subr.bf16.mxu0 %v4584_v12  ;;  %v5175_v12 = vld [vmem:[#allocation8 + $0x224] ss:$16 sps:$4 sm:$0xff]  }
 0x13d   :  { %2098 = vmatpush2.bf16.msra.mxu1 %v4719_v48  ;;  %v5167_v48 = vld [vmem:[#allocation8 + $0x240] ss:$16 sps:$4 sm:$0xff]  }
 0x13e   :  { %2099 = vmatprep.subr.bf16.mxu1 %v4712_v13  ;;  %2057 = vmatpush2.bf16.msra.mxu0 %v4583_v22  ;;  %v5146_v13 = vld [vmem:[#allocation8 + $0x20] ss:$16 sps:$4 sm:$0xff]   ;;  %v5160_v22 = vld [vmem:[#allocation8 + $0x1e4] ss:$16 sps:$4 sm:$0xff]  }
 0x13f   :  { %2058 = vmatprep.subr.bf16.mxu0 %v4576_v26  ;;  %v5187_v26 = vld [vmem:[#allocation8 + $0x3e4] ss:$16 sps:$4 sm:$0xff]  }
 0x141   :  { %2100 = vmatpush2.bf16.msra.mxu1 %v4711_v25  ;;  %v5179_v25 = vld [vmem:[#allocation8 + $0x200] ss:$16 sps:$4 sm:$0xff]  }
 0x142   :  { %2101 = vmatprep.subr.bf16.mxu1 %v4704_v53  ;;  %2059 = vmatpush2.bf16.msra.mxu0 %v4575_v58  ;;  %v5158_v53 = vld [vmem:[#allocation8 + $0x1e0] ss:$16 sps:$4 sm:$0xff]   ;;  %v5172_v58 = vld [vmem:[#allocation8 + $0x1a4] ss:$16 sps:$4 sm:$0xff]  }
 0x143   :  { %2060 = vmatprep.subr.bf16.mxu0 %v4568_v60  ;;  %v5199_v60 = vld [vmem:[#allocation8 + $0x3a4] ss:$16 sps:$4 sm:$0xff]  }
 0x145   :  { %2102 = vmatpush2.bf16.msra.mxu1 %v4703_v59  ;;  %v5191_v59 = vld [vmem:[#allocation8 + $0x3c0] ss:$16 sps:$4 sm:$0xff]  }
 0x146   :  { %2103 = vmatprep.subr.bf16.mxu1 %v4696_v61  ;;  %2061 = vmatpush2.bf16.msra.mxu0 %v4567_v62  ;;  %v5170_v61 = vld [vmem:[#allocation8 + $0x1a0] ss:$16 sps:$4 sm:$0xff]   ;;  %v5178_v62 = vld [vmem:[#allocation8 + $0x184] ss:$16 sps:$4 sm:$0xff]  }
 0x147   :  { %3698 = vmatprep.subr.bf16.mxu0 %v5124_v0  ;;  %v5205_v0 = vld [vmem:[#allocation8 + $0x384] ss:$16 sps:$4 sm:$0xff]  }
 0x149   :  { %2104 = vmatpush2.bf16.msra.mxu1 %v4695_v63  ;;  %v5810_v9 = vpop.f32.mrf.mxu0  ;;  %2063 = vmatmul.mubr.bf16.vlgmr.msra.gmra.mxu0 %v5788_v49  ;;  %v5128_v49 = vld [vmem:[#allocation8 + $0xa0] ss:$16 sps:$4 sm:$0xff]  }
 0x14a   :  { %3741 = vmatprep.subr.bf16.mxu1 %v5139_v2  ;;  %3699 = vmatpush1.bf16.msra.mxu0 %v5122_v4  ;;  %v5197_v63 = vld [vmem:[#allocation8 + $0x3a0] ss:$16 sps:$4 sm:$0xff]   ;;  %v5184_v4 = vld [vmem:[#allocation8 + $0x164] ss:$16 sps:$4 sm:$0xff]  }
 0x14b   :  { %v1808_v15 = vpop.f32.mrf.mxu0  ;;  %3700 = vmatprep.subr.bf16.mxu0 %v5127_v5  ;;  %v5176_v2 = vld [vmem:[#allocation8 + $0x180] ss:$16 sps:$4 sm:$0xff]  }
 0x14c   :  { %v5813_v10 = vpop.f32.mrf.mxu1  ;;  %2106 = vmatmul.mubr.bf16.vlgmr.msra.gmra.mxu1 %v5790_v50  ;;  %v1809_v18 = vadd.f32 %v1808_v15, %v459_v7  ;;  %v5133_v50 = vld [vmem:[#allocation8 + $0x84] ss:$16 sps:$4 sm:$0xff]   ;;  %v5203_v5 = vld [vmem:[#allocation8 + $0x380] ss:$16 sps:$4 sm:$0xff]  }
 0x14d   :  { %3742 = vmatpush1.bf16.msra.mxu1 %v5137_v6  ;;  %v5816_v24 = vpop.f32.mrf.mxu0  ;;  %v5208_v6 = vld [vmem:[#allocation8 + $0x364] ss:$16 sps:$4 sm:$0xff]   ;;  %v5206_v15 = vld [vmem:[#allocation8 + $0x360] ss:$16 sps:$4 sm:$0xff]  }
 0x14e   :  { %v1851_v19 = vpop.f32.mrf.mxu1  ;;  %3743 = vmatprep.subr.bf16.mxu1 %v5145_v8  ;;  %3701 = vmatpush1.bf16.msra.mxu0 %v5125_v11  ;;  %v5182_v8 = vld [vmem:[#allocation8 + $0x160] ss:$16 sps:$4 sm:$0xff]   ;;  %v5190_v11 = vld [vmem:[#allocation8 + $0x144] ss:$16 sps:$4 sm:$0xff]  }
 0x14f   :  { %v1812_v28 = vpop.f32.mrf.mxu0  ;;  %3702 = vmatprep.subr.bf16.mxu0 %v5130_v16  ;;  %v1852_v30 = vadd.f32 %v1851_v19, %v1809_v18  ;;  %v5211_v16 = vld [vmem:[#allocation8 + $0x344] ss:$16 sps:$4 sm:$0xff]   ;;  %v5188_v18 = vld [vmem:[#allocation8 + $0x140] ss:$16 sps:$4 sm:$0xff]  }
 0x150   :  { %v5818_v27 = vpop.f32.mrf.mxu1  ;;  %v1813_v31 = vadd.f32 %v1812_v28, %v459_v7  ;;  %v454_v7 = vsub.s32 0, %v5747_v52  ;;  %v5214_v28 = vld [vmem:[#allocation8 + $0x324] ss:$16 sps:$4 sm:$0xff]  }
 0x151   :  { %3744 = vmatpush1.bf16.msra.mxu1 %v5143_v17  ;;  %v2117_v40 = vmax.f32 %v1852_v30, 0.0 }
 0x152   :  { %3745 = vmatprep.subr.bf16.mxu1 %v5151_v23  ;;  %v1855_v33 = vpop.f32.mrf.mxu1  ;;  %3703 = vmatpush1.bf16.msra.mxu0 %v5128_v49  ;;  %v455_v17 = vrot.slane %v5805_v3, %v454_v7  ;;  %v5196_v23 = vld [vmem:[#allocation8 + $0x124] ss:$16 sps:$4 sm:$0xff]   ;;  %v5209_v49 = vld [vmem:[#allocation8 + $0x340] ss:$16 sps:$4 sm:$0xff]  }
 0x153   :  { %v1856_v34 = vadd.f32 %v1855_v33, %v1813_v31  ;;  %3704 = vmatprep.subr.bf16.mxu0 %v5133_v50  ;;  %v5202_v31 = vld [vmem:[#allocation8 + $0x104] ss:$16 sps:$4 sm:$0xff]  }
 0x154   :  { %v1811_v19 = vadd.f32 %v5816_v24, %v455_v17  ;;  %v1807_v50 = vadd.f32 %v5810_v9, %v455_v17  ;;  %v5217_v33 = vld [vmem:[#allocation8 + $0x304] ss:$16 sps:$4 sm:$0xff]   ;;  %v466_v9 = vsub.s32 3, %v5747_v52  ;;  %v5272_v17 = vld [vmem:[#allocation8 + $0x6c0] ss:$16 sps:$4 sm:$0xff]  }
 0x155   :  { %3746 = vmatpush1.bf16.msra.mxu1 %v5149_v29  ;;  %v2125_v36 = vmax.f32 %v1856_v34, 0.0  ;;  %v5194_v29 = vld [vmem:[#allocation8 + $0x120] ss:$16 sps:$4 sm:$0xff]  }
 0x156   :  { %3747 = vmatprep.subr.bf16.mxu1 %v5157_v32  ;;  %3705 = vmatpush1.bf16.msra.mxu0 %v5131_v35  ;;  %v1854_v30 = vadd.f32 %v5818_v27, %v1811_v19  ;;  %v5212_v32 = vld [vmem:[#allocation8 + $0x320] ss:$16 sps:$4 sm:$0xff]   ;;  %v1850_v24 = vadd.f32 %v5813_v10, %v1807_v50  ;;  %v5223_v10 = vld [vmem:[#allocation8 + $0x4c4] ss:$16 sps:$4 sm:$0xff]  }
 0x157   :  { %v5820_v41 = vpack.c.bf16 %v2125_v36, %v2117_v40  ;;  %3706 = vmatprep.subr.bf16.mxu0 %v5136_v37  ;;  %v5200_v34 = vld [vmem:[#allocation8 + $0x100] ss:$16 sps:$4 sm:$0xff]   ;;  %v5268_v40 = vld [vmem:[#allocation8 + $0x6e4] ss:$16 sps:$4 sm:$0xff]   ;;  %v462_v36 = vsub.s32 2, %v5747_v52 }
 0x158   :  { %v2124_v35 = vmax.f32 %v1854_v30, 0.0  ;;  %v5215_v37 = vld [vmem:[#allocation8 + $0x300] ss:$16 sps:$4 sm:$0xff]   ;;  %v2116_v27 = vmax.f32 %v1850_v24, 0.0  ;;  %v5280_v19 = vld [vmem:[#allocation8 + $0x6a4] ss:$16 sps:$4 sm:$0xff]  }
 0x159   :  { %3748 = vmatpush1.bf16.msra.mxu1 %v5155_v39  ;;  %3730 = vmatprep.mubr.bf16.mxu0 %v5820_v41  ;;  %v5220_v39 = vld [vmem:[#allocation8 + $0x4e4] ss:$16 sps:$4 sm:$0xff]   ;;  %v5284_v30 = vld [vmem:[#allocation8 + $0x680] ss:$16 sps:$4 sm:$0xff]  }
 0x15a   :  { %3749 = vmatprep.subr.bf16.mxu1 %v5163_v38  ;;  %3707 = vmatpush1.bf16.msra.mxu0 %v5134_v42  ;;  %v5218_v38 = vld [vmem:[#allocation8 + $0x4e0] ss:$16 sps:$4 sm:$0xff]   ;;  %v5833_v42 = vpack.c.bf16 %v2124_v35, %v2116_v27  ;;  %v5286_v50 = vld [vmem:[#allocation8 + $0x684] ss:$16 sps:$4 sm:$0xff]  }
 0x15b   :  { %3708 = vmatprep.subr.bf16.mxu0 %v5142_v43  ;;  %v467_v43 = vrot.slane %v5805_v3, %v466_v9  ;;  %v5290_v24 = vld [vmem:[#allocation8 + $0x660] ss:$16 sps:$4 sm:$0xff]   ;;  %v5298_v35 = vld [vmem:[#allocation8 + $0x644] ss:$16 sps:$4 sm:$0xff]  }
 0x15c   :  { %v5304_v27 = vld [vmem:[#allocation8 + $0x624] ss:$16 sps:$4 sm:$0xff]  }
 0x15d   :  { %3750 = vmatpush1.bf16.msra.mxu1 %v5161_v44  ;;  %v463_v44 = vrot.slane %v5805_v3, %v462_v36 }
 0x15e   :  { %3751 = vmatprep.subr.bf16.mxu1 %v5169_v45  ;;  %3709 = vmatpush1.bf16.msra.mxu0 %v5140_v46 }
 0x15f   :  { %3710 = vmatprep.subr.bf16.mxu0 %v5148_v47  ;;  %v5221_v47 = vld [vmem:[#allocation8 + $0x4c0] ss:$16 sps:$4 sm:$0xff]  }
 0x161   :  { %3752 = vmatpush1.bf16.msra.mxu1 %v5167_v48 }
 0x162   :  { %3753 = vmatprep.subr.bf16.mxu1 %v5175_v12  ;;  %3711 = vmatpush1.bf16.msra.mxu0 %v5146_v13  ;;  %v5226_v12 = vld [vmem:[#allocation8 + $0x4a4] ss:$16 sps:$4 sm:$0xff]  }
 0x163   :  { %3712 = vmatprep.subr.bf16.mxu0 %v5154_v14 }
 0x165   :  { %3754 = vmatpush1.bf16.msra.mxu1 %v5173_v20 }
 0x166   :  { %3755 = vmatprep.subr.bf16.mxu1 %v5181_v51  ;;  %3713 = vmatpush1.bf16.msra.mxu0 %v5152_v21 }
 0x167   :  { %3714 = vmatprep.subr.bf16.mxu0 %v5160_v22 }
 0x169   :  { %3756 = vmatpush1.bf16.msra.mxu1 %v5179_v25  ;;  %v5224_v25 = vld [vmem:[#allocation8 + $0x4a0] ss:$16 sps:$4 sm:$0xff]  }
 0x16a   :  { %3757 = vmatprep.subr.bf16.mxu1 %v5187_v26  ;;  %3715 = vmatpush2.bf16.msra.mxu0 %v5158_v53  ;;  %v5229_v53 = vld [vmem:[#allocation8 + $0x484] ss:$16 sps:$4 sm:$0xff]  }
 0x16b   :  { %3716 = vmatprep.subr.bf16.mxu0 %v5166_v54 }
 0x16d   :  { %3758 = vmatpush2.bf16.msra.mxu1 %v5185_v55 }
 0x16e   :  { %3759 = vmatprep.subr.bf16.mxu1 %v5193_v56  ;;  %3717 = vmatpush2.bf16.msra.mxu0 %v5164_v57 }
 0x16f   :  { %3718 = vmatprep.subr.bf16.mxu0 %v5172_v58 }
 0x171   :  { %3760 = vmatpush2.bf16.msra.mxu1 %v5191_v59 }
 0x172   :  { %3761 = vmatprep.subr.bf16.mxu1 %v5199_v60  ;;  %3719 = vmatpush2.bf16.msra.mxu0 %v5170_v61  ;;  %v5227_v60 = vld [vmem:[#allocation8 + $0x480] ss:$16 sps:$4 sm:$0xff]  }
 0x173   :  { %3720 = vmatprep.subr.bf16.mxu0 %v5178_v62  ;;  %v5232_v62 = vld [vmem:[#allocation8 + $0x464] ss:$16 sps:$4 sm:$0xff]  }
 0x175   :  { %3762 = vmatpush2.bf16.msra.mxu1 %v5197_v63 }
 0x176   :  { %3763 = vmatprep.subr.bf16.mxu1 %v5205_v0  ;;  %3721 = vmatpush2.bf16.msra.mxu0 %v5176_v2 }
 0x177   :  { %3722 = vmatprep.subr.bf16.mxu0 %v5184_v4 }
 0x179   :  { %3764 = vmatpush2.bf16.msra.mxu1 %v5203_v5  ;;  %v5230_v5 = vld [vmem:[#allocation8 + $0x460] ss:$16 sps:$4 sm:$0xff]  }
 0x17a   :  { %3765 = vmatprep.subr.bf16.mxu1 %v5208_v6  ;;  %3723 = vmatpush2.bf16.msra.mxu0 %v5182_v8  ;;  %v5266_v6 = vld [vmem:[#allocation8 + $0x6e0] ss:$16 sps:$4 sm:$0xff]  }
 0x17b   :  { %3724 = vmatprep.subr.bf16.mxu0 %v5190_v11  ;;  %v5235_v11 = vld [vmem:[#allocation8 + $0x444] ss:$16 sps:$4 sm:$0xff]  }
 0x17d   :  { %3766 = vmatpush2.bf16.msra.mxu1 %v5206_v15  ;;  %v5274_v15 = vld [vmem:[#allocation8 + $0x6c4] ss:$16 sps:$4 sm:$0xff]  }
 0x17e   :  { %3767 = vmatprep.subr.bf16.mxu1 %v5211_v16  ;;  %3725 = vmatpush2.bf16.msra.mxu0 %v5188_v18  ;;  %v5233_v16 = vld [vmem:[#allocation8 + $0x440] ss:$16 sps:$4 sm:$0xff]   ;;  %v5238_v18 = vld [vmem:[#allocation8 + $0x424] ss:$16 sps:$4 sm:$0xff]  }
 0x17f   :  { %3726 = vmatprep.subr.bf16.mxu0 %v5196_v23  ;;  %v5236_v23 = vld [vmem:[#allocation8 + $0x420] ss:$16 sps:$4 sm:$0xff]  }
 0x181   :  { %3768 = vmatpush2.bf16.msra.mxu1 %v5209_v49  ;;  %v5278_v49 = vld [vmem:[#allocation8 + $0x6a0] ss:$16 sps:$4 sm:$0xff]  }
 0x182   :  { %3769 = vmatprep.subr.bf16.mxu1 %v5214_v28  ;;  %3727 = vmatpush2.bf16.msra.mxu0 %v5194_v29  ;;  %v5241_v28 = vld [vmem:[#allocation8 + $0x404] ss:$16 sps:$4 sm:$0xff]   ;;  %v5239_v29 = vld [vmem:[#allocation8 + $0x400] ss:$16 sps:$4 sm:$0xff]  }
 0x183   :  { %3728 = vmatprep.subr.bf16.mxu0 %v5202_v31  ;;  %v5244_v31 = vld [vmem:[#allocation8 + $0x5e4] ss:$16 sps:$4 sm:$0xff]  }
 0x185   :  { %3770 = vmatpush2.bf16.msra.mxu1 %v5212_v32  ;;  %v5292_v32 = vld [vmem:[#allocation8 + $0x664] ss:$16 sps:$4 sm:$0xff]  }
 0x186   :  { %3771 = vmatprep.subr.bf16.mxu1 %v5217_v33  ;;  %3729 = vmatpush2.bf16.msra.mxu0 %v5200_v34  ;;  %v5242_v33 = vld [vmem:[#allocation8 + $0x5e0] ss:$16 sps:$4 sm:$0xff]   ;;  %v5247_v34 = vld [vmem:[#allocation8 + $0x5c4] ss:$16 sps:$4 sm:$0xff]  }
 0x187   :  { %3784 = vmatprep.subr.bf16.mxu0 %v5220_v39  ;;  %v5296_v39 = vld [vmem:[#allocation8 + $0x640] ss:$16 sps:$4 sm:$0xff]  }
 0x189   :  { %3772 = vmatpush2.bf16.msra.mxu1 %v5215_v37  ;;  %v1892_v45 = vpop.f32.mrf.mxu0  ;;  %3731 = vmatmul.mubr.bf16.vlgmr.msra.gmra.mxu0 %v5833_v42  ;;  %v5245_v37 = vld [vmem:[#allocation8 + $0x5c0] ss:$16 sps:$4 sm:$0xff]  }
 0x18a   :  { %3827 = vmatprep.subr.bf16.mxu1 %v5268_v40  ;;  %3785 = vmatpush1.bf16.msra.mxu0 %v5218_v38  ;;  %v1893_v20 = vadd.f32 %v1892_v45, %v463_v44  ;;  %v5250_v40 = vld [vmem:[#allocation8 + $0x5a4] ss:$16 sps:$4 sm:$0xff]   ;;  %v5248_v38 = vld [vmem:[#allocation8 + $0x5a0] ss:$16 sps:$4 sm:$0xff]  }
 0x18b   :  { %v1894_v48 = vpop.f32.mrf.mxu0  ;;  %3786 = vmatprep.subr.bf16.mxu0 %v5223_v10  ;;  %v5302_v10 = vld [vmem:[#allocation8 + $0x620] ss:$16 sps:$4 sm:$0xff]  }
 0x18c   :  { %v1935_v46 = vpop.f32.mrf.mxu1  ;;  %v1895_v13 = vadd.f32 %v1894_v48, %v467_v43  ;;  %v5251_v45 = vld [vmem:[#allocation8 + $0x580] ss:$16 sps:$4 sm:$0xff]   ;;  %v5316_v48 = vld [vmem:[#allocation8 + $0x7e4] ss:$16 sps:$4 sm:$0xff]  }
 0x18d   :  { %v1896_v51 = vpop.f32.mrf.mxu0  ;;  %v1936_v57 = vadd.f32 %v1935_v46, %v1893_v20  ;;  %v5308_v46 = vld [vmem:[#allocation8 + $0x600] ss:$16 sps:$4 sm:$0xff]   ;;  %v5322_v20 = vld [vmem:[#allocation8 + $0x7c4] ss:$16 sps:$4 sm:$0xff]  }
 0x18e   :  { %v1937_v14 = vpop.f32.mrf.mxu1  ;;  %v1897_v21 = vadd.f32 %v1896_v51, %v463_v44  ;;  %3787 = vmatpush1.bf16.msra.mxu0 %v5221_v47  ;;  %v5310_v44 = vld [vmem:[#allocation8 + $0x604] ss:$16 sps:$4 sm:$0xff]   ;;  %v5257_v51 = vld [vmem:[#allocation8 + $0x540] ss:$16 sps:$4 sm:$0xff]  }
 0x18f   :  { %v1898_v26 = vpop.f32.mrf.mxu0  ;;  %3788 = vmatprep.subr.bf16.mxu0 %v5226_v12  ;;  %v1938_v54 = vadd.f32 %v1937_v14, %v1895_v13  ;;  %v2118_v2 = vmax.f32 %v1936_v57, 0.0  ;;  %v5256_v47 = vld [vmem:[#allocation8 + $0x564] ss:$16 sps:$4 sm:$0xff]   ;;  %v5254_v12 = vld [vmem:[#allocation8 + $0x560] ss:$16 sps:$4 sm:$0xff]  }
 0x190   :  { %v1939_v22 = vpop.f32.mrf.mxu1  ;;  %v1899_v56 = vadd.f32 %v1898_v26, %v467_v43  ;;  %v5253_v43 = vld [vmem:[#allocation8 + $0x584] ss:$16 sps:$4 sm:$0xff]   ;;  %v5314_v13 = vld [vmem:[#allocation8 + $0x7e0] ss:$16 sps:$4 sm:$0xff]  }
 0x191   :  { %v1940_v55 = vadd.f32 %v1939_v22, %v1897_v21  ;;  %v2119_v63 = vmax.f32 %v1938_v54, 0.0  ;;  %v5259_v14 = vld [vmem:[#allocation8 + $0x544] ss:$16 sps:$4 sm:$0xff]   ;;  %v5320_v21 = vld [vmem:[#allocation8 + $0x7c0] ss:$16 sps:$4 sm:$0xff]  }
 0x192   :  { %v1941_v58 = vpop.f32.mrf.mxu1  ;;  %3789 = vmatpush1.bf16.msra.mxu0 %v5224_v25  ;;  %v5262_v22 = vld [vmem:[#allocation8 + $0x524] ss:$16 sps:$4 sm:$0xff]   ;;  %v5260_v26 = vld [vmem:[#allocation8 + $0x520] ss:$16 sps:$4 sm:$0xff]  }
 0x193   :  { %v1942_v59 = vadd.f32 %v1941_v58, %v1899_v56  ;;  %v2126_v61 = vmax.f32 %v1940_v55, 0.0  ;;  %3790 = vmatprep.subr.bf16.mxu0 %v5229_v53  ;;  %v5328_v25 = vld [vmem:[#allocation8 + $0x7a4] ss:$16 sps:$4 sm:$0xff]   ;;  %v5326_v53 = vld [vmem:[#allocation8 + $0x7a0] ss:$16 sps:$4 sm:$0xff]  }
 0x194   :  { %v5265_v54 = vld [vmem:[#allocation8 + $0x504] ss:$16 sps:$4 sm:$0xff]   ;;  %v5263_v56 = vld [vmem:[#allocation8 + $0x500] ss:$16 sps:$4 sm:$0xff]   ;;  %v5271_v58 = vld [vmem:[#allocation8 + $0xec] ss:$16 sps:$4 sm:$0xff]  }
 0x195   :  { %v2127_v0 = vmax.f32 %v1942_v59, 0.0  ;;  %v5844_v8 = vpack.c.bf16 %v2126_v61, %v2118_v2  ;;  %v5334_v55 = vld [vmem:[#allocation8 + $0x784] ss:$16 sps:$4 sm:$0xff]   ;;  %v5332_v57 = vld [vmem:[#allocation8 + $0x780] ss:$16 sps:$4 sm:$0xff]   ;;  %v470_v61 = vsub.s32 4, %v5747_v52 }
 0x196   :  { %3791 = vmatpush1.bf16.msra.mxu0 %v5227_v60  ;;  %v5340_v59 = vld [vmem:[#allocation8 + $0x764] ss:$16 sps:$4 sm:$0xff]   ;;  %v474_v60 = vsub.s32 5, %v5747_v52 }
 0x197   :  { %v5842_v4 = vpack.c.bf16 %v2127_v0, %v2119_v63  ;;  %3792 = vmatprep.subr.bf16.mxu0 %v5232_v62  ;;  %v5338_v62 = vld [vmem:[#allocation8 + $0x760] ss:$16 sps:$4 sm:$0xff]   ;;  %v5346_v63 = vld [vmem:[#allocation8 + $0x744] ss:$16 sps:$4 sm:$0xff]   ;;  %v471_v2 = vrot.slane %v5805_v3, %v470_v61  ;;  %v5335_v61 = vld [vmem:[#allocation8 + $0x188] ss:$16 sps:$4 sm:$0xff]  }
 0x198   :  { %v475_v0 = vrot.slane %v5805_v3, %v474_v60  ;;  %v5337_v60 = vld [vmem:[#allocation8 + $0x18c] ss:$16 sps:$4 sm:$0xff]  }
 0x199   :  { %3773 = vmatprep.mubr.bf16.mxu1 %v5842_v4 }
 0x19a   :  { %3774 = vmatmul.mubr.bf16.vlgmr.msra.gmra.mxu1 %v5844_v8  ;;  %3793 = vmatpush1.bf16.msra.mxu0 %v5230_v5 }
 0x19b   :  { %3828 = vmatpush1.bf16.msra.mxu1 %v5266_v6  ;;  %3794 = vmatprep.subr.bf16.mxu0 %v5235_v11  ;;  %v5344_v11 = vld [vmem:[#allocation8 + $0x740] ss:$16 sps:$4 sm:$0xff]  }
 0x19c   :  { %3829 = vmatprep.subr.bf16.mxu1 %v5274_v15 }
 0x19e   :  { %3795 = vmatpush1.bf16.msra.mxu0 %v5233_v16  ;;  %v5352_v16 = vld [vmem:[#allocation8 + $0x724] ss:$16 sps:$4 sm:$0xff]  }
 0x19f   :  { %3830 = vmatpush1.bf16.msra.mxu1 %v5272_v17  ;;  %3796 = vmatprep.subr.bf16.mxu0 %v5238_v18 }
 0x1a0   :  { %3831 = vmatprep.subr.bf16.mxu1 %v5280_v19 }
 0x1a2   :  { %3797 = vmatpush1.bf16.msra.mxu0 %v5236_v23 }
 0x1a3   :  { %3832 = vmatpush1.bf16.msra.mxu1 %v5278_v49  ;;  %3798 = vmatprep.subr.bf16.mxu0 %v5241_v28 }
 0x1a4   :  { %3833 = vmatprep.subr.bf16.mxu1 %v5286_v50  ;;  %v5350_v50 = vld [vmem:[#allocation8 + $0x720] ss:$16 sps:$4 sm:$0xff]  }
 0x1a6   :  { %3799 = vmatpush1.bf16.msra.mxu0 %v5239_v29 }
 0x1a7   :  { %3834 = vmatpush1.bf16.msra.mxu1 %v5284_v30  ;;  %3800 = vmatprep.subr.bf16.mxu0 %v5244_v31  ;;  %v5358_v30 = vld [vmem:[#allocation8 + $0x704] ss:$16 sps:$4 sm:$0xff]  }
 0x1a8   :  { %3835 = vmatprep.subr.bf16.mxu1 %v5292_v32 }
 0x1aa   :  { %3801 = vmatpush2.bf16.msra.mxu0 %v5242_v33 }
 0x1ab   :  { %3836 = vmatpush1.bf16.msra.mxu1 %v5290_v24  ;;  %3802 = vmatprep.subr.bf16.mxu0 %v5247_v34 }
 0x1ac   :  { %3837 = vmatprep.subr.bf16.mxu1 %v5298_v35 }
 0x1ae   :  { %3803 = vmatpush2.bf16.msra.mxu0 %v5245_v37  ;;  %v5356_v37 = vld [vmem:[#allocation8 + $0x700] ss:$16 sps:$4 sm:$0xff]  }
 0x1af   :  { %3838 = vmatpush1.bf16.msra.mxu1 %v5296_v39  ;;  %3804 = vmatprep.subr.bf16.mxu0 %v5250_v40  ;;  %v5364_v40 = vld [vmem:[#allocation8 + $0x2ec] ss:$16 sps:$4 sm:$0xff]  }
 0x1b0   :  { %3839 = vmatprep.subr.bf16.mxu1 %v5304_v27 }
 0x1b2   :  { %3805 = vmatpush2.bf16.msra.mxu0 %v5248_v38 }
 0x1b3   :  { %3840 = vmatpush1.bf16.msra.mxu1 %v5302_v10  ;;  %3806 = vmatprep.subr.bf16.mxu0 %v5253_v43 }
 0x1b4   :  { %3841 = vmatprep.subr.bf16.mxu1 %v5310_v44  ;;  %v5269_v44 = vld [vmem:[#allocation8 + $0xe8] ss:$16 sps:$4 sm:$0xff]  }
 0x1b6   :  { %3807 = vmatpush2.bf16.msra.mxu0 %v5251_v45 }
 0x1b7   :  { %3842 = vmatpush1.bf16.msra.mxu1 %v5308_v46  ;;  %3808 = vmatprep.subr.bf16.mxu0 %v5256_v47  ;;  %v5277_v46 = vld [vmem:[#allocation8 + $0xcc] ss:$16 sps:$4 sm:$0xff]   ;;  %v5275_v47 = vld [vmem:[#allocation8 + $0xc8] ss:$16 sps:$4 sm:$0xff]  }
 0x1b8   :  { %3843 = vmatprep.subr.bf16.mxu1 %v5316_v48  ;;  %v5283_v48 = vld [vmem:[#allocation8 + $0xac] ss:$16 sps:$4 sm:$0xff]  }
 0x1ba   :  { %3809 = vmatpush2.bf16.msra.mxu0 %v5254_v12  ;;  %v5281_v12 = vld [vmem:[#allocation8 + $0xa8] ss:$16 sps:$4 sm:$0xff]  }
 0x1bb   :  { %3844 = vmatpush2.bf16.msra.mxu1 %v5314_v13  ;;  %3810 = vmatprep.subr.bf16.mxu0 %v5259_v14  ;;  %v5289_v13 = vld [vmem:[#allocation8 + $0x8c] ss:$16 sps:$4 sm:$0xff]   ;;  %v5287_v14 = vld [vmem:[#allocation8 + $0x88] ss:$16 sps:$4 sm:$0xff]  }
 0x1bc   :  { %3845 = vmatprep.subr.bf16.mxu1 %v5322_v20  ;;  %v5295_v20 = vld [vmem:[#allocation8 + $0x6c] ss:$16 sps:$4 sm:$0xff]  }
 0x1be   :  { %3811 = vmatpush2.bf16.msra.mxu0 %v5257_v51  ;;  %v5293_v51 = vld [vmem:[#allocation8 + $0x68] ss:$16 sps:$4 sm:$0xff]  }
 0x1bf   :  { %3846 = vmatpush2.bf16.msra.mxu1 %v5320_v21  ;;  %3812 = vmatprep.subr.bf16.mxu0 %v5262_v22  ;;  %v5301_v21 = vld [vmem:[#allocation8 + $0x4c] ss:$16 sps:$4 sm:$0xff]   ;;  %v5299_v22 = vld [vmem:[#allocation8 + $0x48] ss:$16 sps:$4 sm:$0xff]  }
 0x1c0   :  { %3847 = vmatprep.subr.bf16.mxu1 %v5328_v25  ;;  %v5307_v25 = vld [vmem:[#allocation8 + $0x2c] ss:$16 sps:$4 sm:$0xff]  }
 0x1c2   :  { %3813 = vmatpush2.bf16.msra.mxu0 %v5260_v26  ;;  %v5313_v26 = vld [vmem:[#allocation8 + $0xc] ss:$16 sps:$4 sm:$0xff]  }
 0x1c3   :  { %3848 = vmatpush2.bf16.msra.mxu1 %v5326_v53  ;;  %3814 = vmatprep.subr.bf16.mxu0 %v5265_v54  ;;  %v5311_v53 = vld [vmem:[#allocation8 + $0x8] ss:$16 sps:$4 sm:$0xff]   ;;  %v5319_v54 = vld [vmem:[#allocation8 + $0x1ec] ss:$16 sps:$4 sm:$0xff]  }
 0x1c4   :  { %3849 = vmatprep.subr.bf16.mxu1 %v5334_v55  ;;  %v5317_v55 = vld [vmem:[#allocation8 + $0x1e8] ss:$16 sps:$4 sm:$0xff]  }
 0x1c6   :  { %3815 = vmatpush2.bf16.msra.mxu0 %v5263_v56  ;;  %v5325_v56 = vld [vmem:[#allocation8 + $0x1cc] ss:$16 sps:$4 sm:$0xff]  }
 0x1c7   :  { %3850 = vmatpush2.bf16.msra.mxu1 %v5332_v57  ;;  %3870 = vmatprep.subr.bf16.mxu0 %v5271_v58  ;;  %v5323_v57 = vld [vmem:[#allocation8 + $0x1c8] ss:$16 sps:$4 sm:$0xff]   ;;  %v5331_v58 = vld [vmem:[#allocation8 + $0x1ac] ss:$16 sps:$4 sm:$0xff]  }
 0x1c8   :  { %3851 = vmatprep.subr.bf16.mxu1 %v5340_v59  ;;  %v5329_v59 = vld [vmem:[#allocation8 + $0x1a8] ss:$16 sps:$4 sm:$0xff]  }
 0x1c9   :  { %v1978_v5 = vpop.f32.mrf.mxu0 }
 0x1ca   :  { %v1979_v19 = vadd.f32 %v1978_v5, %v471_v2  ;;  %v5349_v5 = vld [vmem:[#allocation8 + $0x14c] ss:$16 sps:$4 sm:$0xff]  }
 0x1cb   :  { %3852 = vmatpush2.bf16.msra.mxu1 %v5338_v62  ;;  %v1980_v15 = vpop.f32.mrf.mxu0  ;;  %v5343_v62 = vld [vmem:[#allocation8 + $0x16c] ss:$16 sps:$4 sm:$0xff]  }
 0x1cc   :  { %v2021_v6 = vpop.f32.mrf.mxu1  ;;  %3853 = vmatprep.subr.bf16.mxu1 %v5346_v63  ;;  %v1981_v17 = vadd.f32 %v1980_v15, %v475_v0  ;;  %v482_v63 = vsub.s32 7, %v5747_v52 }
 0x1cd   :  { %v1982_v23 = vpop.f32.mrf.mxu0  ;;  %v2022_v24 = vadd.f32 %v2021_v6, %v1979_v19  ;;  %v5355_v19 = vld [vmem:[#allocation8 + $0x12c] ss:$16 sps:$4 sm:$0xff]  }
 0x1ce   :  { %v2023_v18 = vpop.f32.mrf.mxu1  ;;  %v1983_v49 = vadd.f32 %v1982_v23, %v471_v2  ;;  %v5341_v2 = vld [vmem:[#allocation8 + $0x168] ss:$16 sps:$4 sm:$0xff]   ;;  %v483_v6 = vrot.slane %v5805_v3, %v482_v63  ;;  %v5403_v63 = vld [vmem:[#allocation8 + $0x42c] ss:$16 sps:$4 sm:$0xff]  }
 0x1cf   :  { %3854 = vmatpush2.bf16.msra.mxu1 %v5344_v11  ;;  %v1984_v29 = vpop.f32.mrf.mxu0  ;;  %v2024_v31 = vadd.f32 %v2023_v18, %v1981_v17  ;;  %v2120_v10 = vmax.f32 %v2022_v24, 0.0  ;;  %v5347_v17 = vld [vmem:[#allocation8 + $0x148] ss:$16 sps:$4 sm:$0xff]  }
 0x1d0   :  { %v2025_v28 = vpop.f32.mrf.mxu1  ;;  %3855 = vmatprep.subr.bf16.mxu1 %v5352_v16  ;;  %v1985_v33 = vadd.f32 %v1984_v29, %v475_v0  ;;  %v478_v0 = vsub.s32 6, %v5747_v52 }
 0x1d1   :  { %v2026_v32 = vadd.f32 %v2025_v28, %v1983_v49  ;;  %v2121_v27 = vmax.f32 %v2024_v31, 0.0  ;;  %v5353_v31 = vld [vmem:[#allocation8 + $0x128] ss:$16 sps:$4 sm:$0xff]  }
 0x1d2   :  { %v2027_v34 = vpop.f32.mrf.mxu1  ;;  %v479_v11 = vrot.slane %v5805_v3, %v478_v0  ;;  %v5398_v0 = vld [vmem:[#allocation8 + $0x228] ss:$16 sps:$4 sm:$0xff]  }
 0x1d3   :  { %v2028_v35 = vadd.f32 %v2027_v34, %v1985_v33  ;;  %3856 = vmatpush2.bf16.msra.mxu1 %v5350_v50  ;;  %v2128_v39 = vmax.f32 %v2026_v32, 0.0  ;;  %v5361_v33 = vld [vmem:[#allocation8 + $0x10c] ss:$16 sps:$4 sm:$0xff]  }
 0x1d4   :  { %3857 = vmatprep.subr.bf16.mxu1 %v5358_v30 }
 0x1d5   :  { %v2129_v38 = vmax.f32 %v2028_v35, 0.0  ;;  %v5854_v45 = vpack.c.bf16 %v2128_v39, %v2120_v10 }
 0x1d7   :  { %v5852_v43 = vpack.c.bf16 %v2129_v38, %v2121_v27  ;;  %3858 = vmatpush2.bf16.msra.mxu1 %v5356_v37  ;;  %v5367_v38 = vld [vmem:[#allocation8 + $0x4ec] ss:$16 sps:$4 sm:$0xff]  }
 0x1d8   :  { %3913 = vmatprep.subr.bf16.mxu1 %v5364_v40  ;;  %v5359_v40 = vld [vmem:[#allocation8 + $0x108] ss:$16 sps:$4 sm:$0xff]  }
 0x1d9   :  { %3816 = vmatprep.mubr.bf16.mxu0 %v5852_v43 }
 0x1da   :  { %3817 = vmatmul.mubr.bf16.vlgmr.msra.gmra.mxu0 %v5854_v45 }
 0x1db   :  { %3871 = vmatpush1.bf16.msra.mxu0 %v5269_v44  ;;  %3902 = vmatprep.mubr.bf16.mxu0 %v5820_v41  ;;  %v5305_v41 = vld [vmem:[#allocation8 + $0x28] ss:$16 sps:$4 sm:$0xff]  }
 0x1dc   :  { %3872 = vmatprep.subr.bf16.mxu0 %v5277_v46 }
 0x1df   :  { %3873 = vmatpush1.bf16.msra.mxu0 %v5275_v47 }
 0x1e0   :  { %3874 = vmatprep.subr.bf16.mxu0 %v5283_v48  ;;  %v5362_v48 = vld [vmem:[#allocation8 + $0x2e8] ss:$16 sps:$4 sm:$0xff]  }
 0x1e3   :  { %3875 = vmatpush1.bf16.msra.mxu0 %v5281_v12  ;;  %v5365_v12 = vld [vmem:[#allocation8 + $0x4e8] ss:$16 sps:$4 sm:$0xff]  }
 0x1e4   :  { %3876 = vmatprep.subr.bf16.mxu0 %v5289_v13 }
 0x1e7   :  { %3877 = vmatpush1.bf16.msra.mxu0 %v5287_v14  ;;  %v5370_v14 = vld [vmem:[#allocation8 + $0x2cc] ss:$16 sps:$4 sm:$0xff]  }
 0x1e8   :  { %3878 = vmatprep.subr.bf16.mxu0 %v5295_v20  ;;  %v5373_v20 = vld [vmem:[#allocation8 + $0x4cc] ss:$16 sps:$4 sm:$0xff]  }
 0x1eb   :  { %3879 = vmatpush1.bf16.msra.mxu0 %v5293_v51  ;;  %v5368_v51 = vld [vmem:[#allocation8 + $0x2c8] ss:$16 sps:$4 sm:$0xff]  }
 0x1ec   :  { %3880 = vmatprep.subr.bf16.mxu0 %v5301_v21  ;;  %v5371_v21 = vld [vmem:[#allocation8 + $0x4c8] ss:$16 sps:$4 sm:$0xff]  }
 0x1ef   :  { %3881 = vmatpush1.bf16.msra.mxu0 %v5299_v22  ;;  %v5376_v22 = vld [vmem:[#allocation8 + $0x2ac] ss:$16 sps:$4 sm:$0xff]  }
 0x1f0   :  { %3882 = vmatprep.subr.bf16.mxu0 %v5307_v25  ;;  %v5379_v25 = vld [vmem:[#allocation8 + $0x4ac] ss:$16 sps:$4 sm:$0xff]  }
 0x1f3   :  { %3883 = vmatpush1.bf16.msra.mxu0 %v5305_v41  ;;  %v5374_v41 = vld [vmem:[#allocation8 + $0x2a8] ss:$16 sps:$4 sm:$0xff]  }
 0x1f4   :  { %3884 = vmatprep.subr.bf16.mxu0 %v5313_v26  ;;  %v5377_v26 = vld [vmem:[#allocation8 + $0x4a8] ss:$16 sps:$4 sm:$0xff]  }
 0x1f7   :  { %3885 = vmatpush1.bf16.msra.mxu0 %v5311_v53  ;;  %v5385_v53 = vld [vmem:[#allocation8 + $0x48c] ss:$16 sps:$4 sm:$0xff]  }
 0x1f8   :  { %3886 = vmatprep.subr.bf16.mxu0 %v5319_v54  ;;  %v5380_v54 = vld [vmem:[#allocation8 + $0x288] ss:$16 sps:$4 sm:$0xff]  }
 0x1fb   :  { %3887 = vmatpush2.bf16.msra.mxu0 %v5317_v55  ;;  %v5383_v55 = vld [vmem:[#allocation8 + $0x488] ss:$16 sps:$4 sm:$0xff]  }
 0x1fc   :  { %3888 = vmatprep.subr.bf16.mxu0 %v5325_v56  ;;  %v5386_v56 = vld [vmem:[#allocation8 + $0x268] ss:$16 sps:$4 sm:$0xff]  }
 0x1ff   :  { %3889 = vmatpush2.bf16.msra.mxu0 %v5323_v57  ;;  %v5389_v57 = vld [vmem:[#allocation8 + $0x468] ss:$16 sps:$4 sm:$0xff]  }
 0x200   :  { %3890 = vmatprep.subr.bf16.mxu0 %v5331_v58  ;;  %v5394_v58 = vld [vmem:[#allocation8 + $0x24c] ss:$16 sps:$4 sm:$0xff]  }
 0x203   :  { %3891 = vmatpush2.bf16.msra.mxu0 %v5329_v59  ;;  %v5397_v59 = vld [vmem:[#allocation8 + $0x44c] ss:$16 sps:$4 sm:$0xff]  }
 0x204   :  { %3892 = vmatprep.subr.bf16.mxu0 %v5337_v60  ;;  %v5392_v60 = vld [vmem:[#allocation8 + $0x248] ss:$16 sps:$4 sm:$0xff]  }
 0x207   :  { %3893 = vmatpush2.bf16.msra.mxu0 %v5335_v61  ;;  %v5395_v61 = vld [vmem:[#allocation8 + $0x448] ss:$16 sps:$4 sm:$0xff]  }
 0x208   :  { %3894 = vmatprep.subr.bf16.mxu0 %v5343_v62  ;;  %v5400_v62 = vld [vmem:[#allocation8 + $0x22c] ss:$16 sps:$4 sm:$0xff]  }
 0x209   :  { %v2064_v15 = vpop.f32.mrf.mxu0 }
 0x20a   :  { %v2065_v28 = vadd.f32 %v2064_v15, %v479_v11  ;;  %v5407_v15 = vld [vmem:[#allocation8 + $0x408] ss:$16 sps:$4 sm:$0xff]  }
 0x20b   :  { %3895 = vmatpush2.bf16.msra.mxu0 %v5341_v2  ;;  %v2066_v18 = vpop.f32.mrf.mxu0  ;;  %v5401_v2 = vld [vmem:[#allocation8 + $0x428] ss:$16 sps:$4 sm:$0xff]  }
 0x20c   :  { %v2107_v16 = vpop.f32.mrf.mxu1  ;;  %3896 = vmatprep.subr.bf16.mxu0 %v5349_v5  ;;  %v2067_v23 = vadd.f32 %v2066_v18, %v483_v6  ;;  %v5406_v5 = vld [vmem:[#allocation8 + $0x20c] ss:$16 sps:$4 sm:$0xff]   ;;  %v5410_v18 = vld [vmem:[#allocation8 + $0x3e8] ss:$16 sps:$4 sm:$0xff]  }
 0x20d   :  { %v2068_v50 = vpop.f32.mrf.mxu0  ;;  %v2108_v35 = vadd.f32 %v2107_v16, %v2065_v28  ;;  %v5412_v16 = vld [vmem:[#allocation8 + $0x3ec] ss:$16 sps:$4 sm:$0xff]   ;;  %v5416_v28 = vld [vmem:[#allocation8 + $0x3c8] ss:$16 sps:$4 sm:$0xff]  }
 0x20e   :  { %v2109_v49 = vpop.f32.mrf.mxu1  ;;  %v2069_v29 = vadd.f32 %v2068_v50, %v479_v11  ;;  %v5404_v11 = vld [vmem:[#allocation8 + $0x208] ss:$16 sps:$4 sm:$0xff]  }
 0x20f   :  { %3897 = vmatpush2.bf16.msra.mxu0 %v5347_v17  ;;  %v2070_v32 = vpop.f32.mrf.mxu0  ;;  %v2110_v24 = vadd.f32 %v2109_v49, %v2067_v23  ;;  %v2122_v46 = vmax.f32 %v2108_v35, 0.0  ;;  %v5415_v17 = vld [vmem:[#allocation8 + $0x5ec] ss:$16 sps:$4 sm:$0xff]   ;;  %v5419_v50 = vld [vmem:[#allocation8 + $0x5c8] ss:$16 sps:$4 sm:$0xff]  }
 0x210   :  { %v2111_v30 = vpop.f32.mrf.mxu1  ;;  %3898 = vmatprep.subr.bf16.mxu0 %v5355_v19  ;;  %v2071_v34 = vadd.f32 %v2070_v32, %v483_v6  ;;  %v5409_v6 = vld [vmem:[#allocation8 + $0x40c] ss:$16 sps:$4 sm:$0xff]   ;;  %v5413_v19 = vld [vmem:[#allocation8 + $0x5e8] ss:$16 sps:$4 sm:$0xff]  }
 0x211   :  { %v2112_v3 = vadd.f32 %v2111_v30, %v2069_v29  ;;  %v2123_v10 = vmax.f32 %v2110_v24, 0.0  ;;  %v5418_v23 = vld [vmem:[#allocation8 + $0x3cc] ss:$16 sps:$4 sm:$0xff]   ;;  %v5425_v32 = vld [vmem:[#allocation8 + $0x5a8] ss:$16 sps:$4 sm:$0xff]  }
 0x212   :  { %v2113_v37 = vpop.f32.mrf.mxu1  ;;  %v5421_v49 = vld [vmem:[#allocation8 + $0x5cc] ss:$16 sps:$4 sm:$0xff]  }
 0x213   :  { %v2114_v39 = vadd.f32 %v2113_v37, %v2071_v34  ;;  %3899 = vmatpush2.bf16.msra.mxu0 %v5353_v31  ;;  %v2130_v27 = vmax.f32 %v2112_v3, 0.0  ;;  %v5424_v29 = vld [vmem:[#allocation8 + $0x3ac] ss:$16 sps:$4 sm:$0xff]   ;;  %v5422_v31 = vld [vmem:[#allocation8 + $0x3a8] ss:$16 sps:$4 sm:$0xff]  }
 0x214   :  { %3900 = vmatprep.subr.bf16.mxu0 %v5361_v33  ;;  %v5427_v30 = vld [vmem:[#allocation8 + $0x5ac] ss:$16 sps:$4 sm:$0xff]   ;;  %v5428_v3 = vld [vmem:[#allocation8 + $0x388] ss:$16 sps:$4 sm:$0xff]  }
 0x215   :  { %v2131_v44 = vmax.f32 %v2114_v39, 0.0  ;;  %v5865_v13 = vpack.c.bf16 %v2130_v27, %v2122_v46  ;;  %v5430_v33 = vld [vmem:[#allocation8 + $0x38c] ss:$16 sps:$4 sm:$0xff]   ;;  %v5431_v34 = vld [vmem:[#allocation8 + $0x588] ss:$16 sps:$4 sm:$0xff]  }
 0x216   :  { %v5433_v24 = vld [vmem:[#allocation8 + $0x58c] ss:$16 sps:$4 sm:$0xff]   ;;  %v5434_v39 = vld [vmem:[#allocation8 + $0x368] ss:$16 sps:$4 sm:$0xff]  }
 0x217   :  { %v5863_v47 = vpack.c.bf16 %v2131_v44, %v2123_v10  ;;  %3901 = vmatpush2.bf16.msra.mxu0 %v5359_v40  ;;  %v5436_v35 = vld [vmem:[#allocation8 + $0x36c] ss:$16 sps:$4 sm:$0xff]   ;;  %v5437_v40 = vld [vmem:[#allocation8 + $0x568] ss:$16 sps:$4 sm:$0xff]  }
 0x218   :  { %3956 = vmatprep.subr.bf16.mxu0 %v5367_v38  ;;  %v5439_v37 = vld [vmem:[#allocation8 + $0x56c] ss:$16 sps:$4 sm:$0xff]   ;;  %v5440_v10 = vld [vmem:[#allocation8 + $0x348] ss:$16 sps:$4 sm:$0xff]  }
 0x219   :  { %3859 = vmatprep.mubr.bf16.mxu1 %v5863_v47  ;;  %v5442_v27 = vld [vmem:[#allocation8 + $0x34c] ss:$16 sps:$4 sm:$0xff]   ;;  %v5443_v44 = vld [vmem:[#allocation8 + $0x548] ss:$16 sps:$4 sm:$0xff]  }
 0x21a   :  { %3903 = vmatmul.mubr.bf16.vlgmr.msra.gmra.mxu0 %v5833_v42  ;;  %3860 = vmatmul.mubr.bf16.vlgmr.msra.gmra.mxu1 %v5865_v13  ;;  %v5382_v42 = vld [vmem:[#allocation8 + $0x28c] ss:$16 sps:$4 sm:$0xff]  }
 0x21b   :  { %3914 = vmatpush1.bf16.msra.mxu1 %v5362_v48  ;;  %3957 = vmatpush1.bf16.msra.mxu0 %v5365_v12  ;;  %v5445_v38 = vld [vmem:[#allocation8 + $0x54c] ss:$16 sps:$4 sm:$0xff]   ;;  %v5446_v12 = vld [vmem:[#allocation8 + $0x328] ss:$16 sps:$4 sm:$0xff]  }
 0x21c   :  { %3988 = vmatprep.mubr.bf16.mxu0 %v5852_v43  ;;  %3945 = vmatprep.mubr.bf16.mxu1 %v5842_v4  ;;  %v5388_v43 = vld [vmem:[#allocation8 + $0x26c] ss:$16 sps:$4 sm:$0xff]  }
 0x21d   :  { %3915 = vmatprep.subr.bf16.mxu1 %v5370_v14  ;;  %3958 = vmatprep.subr.bf16.mxu0 %v5373_v20  ;;  %v5391_v4 = vld [vmem:[#allocation8 + $0x46c] ss:$16 sps:$4 sm:$0xff]   ;;  %v5449_v14 = vld [vmem:[#allocation8 + $0x528] ss:$16 sps:$4 sm:$0xff]  }
 0x21e   :  { %v5448_v46 = vld [vmem:[#allocation8 + $0x32c] ss:$16 sps:$4 sm:$0xff]  }
 0x21f   :  { %3916 = vmatpush1.bf16.msra.mxu1 %v5368_v51  ;;  %3959 = vmatpush1.bf16.msra.mxu0 %v5371_v21  ;;  %v5451_v48 = vld [vmem:[#allocation8 + $0x52c] ss:$16 sps:$4 sm:$0xff]   ;;  %v5452_v21 = vld [vmem:[#allocation8 + $0x308] ss:$16 sps:$4 sm:$0xff]  }
 0x220   :  { %3917 = vmatprep.subr.bf16.mxu1 %v5376_v22  ;;  %3960 = vmatprep.subr.bf16.mxu0 %v5379_v25  ;;  %v5454_v20 = vld [vmem:[#allocation8 + $0x30c] ss:$16 sps:$4 sm:$0xff]   ;;  %v5455_v22 = vld [vmem:[#allocation8 + $0x508] ss:$16 sps:$4 sm:$0xff]  }
 0x221   :  { %v5457_v51 = vld [vmem:[#allocation8 + $0x50c] ss:$16 sps:$4 sm:$0xff]  }
 0x222   :  { %v5460_v25 = vld [vmem:[#allocation8 + $0x6ec] ss:$16 sps:$4 sm:$0xff]  }
 0x223   :  { %3918 = vmatpush1.bf16.msra.mxu1 %v5374_v41  ;;  %3961 = vmatpush1.bf16.msra.mxu0 %v5377_v26  ;;  %v5506_v41 = vld [vmem:[#allocation10 + $0x78] sm:$0xff]  }
 0x224   :  { %3919 = vmatprep.subr.bf16.mxu1 %v5382_v42  ;;  %3962 = vmatprep.subr.bf16.mxu0 %v5385_v53  ;;  %v5458_v26 = vld [vmem:[#allocation8 + $0x6e8] ss:$16 sps:$4 sm:$0xff]   ;;  %v5463_v42 = vld [vmem:[#allocation8 + $0x6cc] ss:$16 sps:$4 sm:$0xff]  }
 0x225   :  { %v5507_v53 = vld [vmem:[#allocation10 + $0x38] sm:$0xff]  }
 0x227   :  { %3920 = vmatpush1.bf16.msra.mxu1 %v5380_v54  ;;  %3963 = vmatpush1.bf16.msra.mxu0 %v5383_v55  ;;  %v5508_v54 = vld [vmem:[#allocation10 + $0x70] sm:$0xff]   ;;  %v5461_v55 = vld [vmem:[#allocation8 + $0x6c8] ss:$16 sps:$4 sm:$0xff]  }
 0x228   :  { %3921 = vmatprep.subr.bf16.mxu1 %v5388_v43  ;;  %3964 = vmatprep.subr.bf16.mxu0 %v5391_v4  ;;  %v5466_v43 = vld [vmem:[#allocation8 + $0x6ac] ss:$16 sps:$4 sm:$0xff]   ;;  %v5509_v4 = vld [vmem:[#allocation10 + $0x30] sm:$0xff]  }
 0x22b   :  { %3922 = vmatpush1.bf16.msra.mxu1 %v5386_v56  ;;  %3965 = vmatpush1.bf16.msra.mxu0 %v5389_v57  ;;  %v5510_v56 = vld [vmem:[#allocation10 + $0x68] sm:$0xff]  }
 0x22c   :  { %3923 = vmatprep.subr.bf16.mxu1 %v5394_v58  ;;  %3966 = vmatprep.subr.bf16.mxu0 %v5397_v59  ;;  %v5464_v57 = vld [vmem:[#allocation8 + $0x6a8] ss:$16 sps:$4 sm:$0xff]   ;;  %v5469_v58 = vld [vmem:[#allocation8 + $0x68c] ss:$16 sps:$4 sm:$0xff]  }
 0x22d   :  { %v5511_v59 = vld [vmem:[#allocation10 + $0x28] sm:$0xff]  }
 0x22f   :  { %3924 = vmatpush1.bf16.msra.mxu1 %v5392_v60  ;;  %3967 = vmatpush1.bf16.msra.mxu0 %v5395_v61  ;;  %v5472_v60 = vld [vmem:[#allocation8 + $0x66c] ss:$16 sps:$4 sm:$0xff]  }
 0x230   :  { %3925 = vmatprep.subr.bf16.mxu1 %v5400_v62  ;;  %3968 = vmatprep.subr.bf16.mxu0 %v5403_v63  ;;  %v5514_v61 = vld [vmem:[#allocation10 + $0x58] sm:$0xff]  }
 0x231   :  { %v5470_v62 = vld [vmem:[#allocation8 + $0x668] ss:$16 sps:$4 sm:$0xff]   ;;  %v5475_v63 = vld [vmem:[#allocation8 + $0x64c] ss:$16 sps:$4 sm:$0xff]  }
 0x233   :  { %3926 = vmatpush1.bf16.msra.mxu1 %v5398_v0  ;;  %3969 = vmatpush1.bf16.msra.mxu0 %v5401_v2  ;;  %v5515_v0 = vld [vmem:[#allocation10 + $0x18] sm:$0xff]   ;;  %v5516_v2 = vld [vmem:[#allocation10 + $0x50] sm:$0xff]  }
 0x234   :  { %3927 = vmatprep.subr.bf16.mxu1 %v5406_v5  ;;  %3970 = vmatprep.subr.bf16.mxu0 %v5409_v6  ;;  %v5473_v5 = vld [vmem:[#allocation8 + $0x648] ss:$16 sps:$4 sm:$0xff]   ;;  %v5478_v6 = vld [vmem:[#allocation8 + $0x62c] ss:$16 sps:$4 sm:$0xff]  }
 0x237   :  { %3928 = vmatpush1.bf16.msra.mxu1 %v5404_v11  ;;  %3971 = vmatpush1.bf16.msra.mxu0 %v5407_v15  ;;  %v5517_v11 = vld [vmem:[#allocation10 + $0x10] sm:$0xff]   ;;  %v5518_v15 = vld [vmem:[#allocation10 + $0x48] sm:$0xff]  }
 0x238   :  { %3929 = vmatprep.subr.bf16.mxu1 %v5412_v16  ;;  %3972 = vmatprep.subr.bf16.mxu0 %v5415_v17  ;;  %v5476_v16 = vld [vmem:[#allocation8 + $0x628] ss:$16 sps:$4 sm:$0xff]   ;;  %v5481_v17 = vld [vmem:[#allocation8 + $0x60c] ss:$16 sps:$4 sm:$0xff]  }
 0x23b   :  { %3930 = vmatpush2.bf16.msra.mxu1 %v5410_v18  ;;  %3973 = vmatpush2.bf16.msra.mxu0 %v5413_v19  ;;  %v5519_v18 = vld [vmem:[#allocation10 + $0x8] sm:$0xff]   ;;  %v5520_v19 = vld [vmem:[#allocation10 + $0x40] sm:$0xff]  }
 0x23c   :  { %3931 = vmatprep.subr.bf16.mxu1 %v5418_v23  ;;  %3974 = vmatprep.subr.bf16.mxu0 %v5421_v49  ;;  %v5479_v23 = vld [vmem:[#allocation8 + $0x608] ss:$16 sps:$4 sm:$0xff]   ;;  %v5484_v49 = vld [vmem:[#allocation8 + $0x7ec] ss:$16 sps:$4 sm:$0xff]  }
 0x23f   :  { %3932 = vmatpush2.bf16.msra.mxu1 %v5416_v28  ;;  %3975 = vmatpush2.bf16.msra.mxu0 %v5419_v50  ;;  %v5521_v28 = vld [vmem:[#allocation10] sm:$0xff]   ;;  %v5482_v50 = vld [vmem:[#allocation8 + $0x7e8] ss:$16 sps:$4 sm:$0xff]  }
 0x240   :  { %3933 = vmatprep.subr.bf16.mxu1 %v5424_v29  ;;  %3976 = vmatprep.subr.bf16.mxu0 %v5427_v30  ;;  %v5487_v29 = vld [vmem:[#allocation8 + $0x7cc] ss:$16 sps:$4 sm:$0xff]   ;;  %v5485_v30 = vld [vmem:[#allocation8 + $0x7c8] ss:$16 sps:$4 sm:$0xff]  }
 0x243   :  { %3934 = vmatpush2.bf16.msra.mxu1 %v5422_v31  ;;  %3977 = vmatpush2.bf16.msra.mxu0 %v5425_v32  ;;  %v5490_v31 = vld [vmem:[#allocation8 + $0x7ac] ss:$16 sps:$4 sm:$0xff]   ;;  %v5488_v32 = vld [vmem:[#allocation8 + $0x7a8] ss:$16 sps:$4 sm:$0xff]  }
 0x244   :  { %3935 = vmatprep.subr.bf16.mxu1 %v5430_v33  ;;  %3978 = vmatprep.subr.bf16.mxu0 %v5433_v24  ;;  %v5493_v33 = vld [vmem:[#allocation8 + $0x78c] ss:$16 sps:$4 sm:$0xff]   ;;  %v5491_v24 = vld [vmem:[#allocation8 + $0x788] ss:$16 sps:$4 sm:$0xff]  }
 0x247   :  { %3936 = vmatpush2.bf16.msra.mxu1 %v5428_v3  ;;  %3979 = vmatpush2.bf16.msra.mxu0 %v5431_v34  ;;  %v5496_v3 = vld [vmem:[#allocation8 + $0x76c] ss:$16 sps:$4 sm:$0xff]   ;;  %v5494_v34 = vld [vmem:[#allocation8 + $0x768] ss:$16 sps:$4 sm:$0xff]  }
 0x248   :  { %3937 = vmatprep.subr.bf16.mxu1 %v5436_v35  ;;  %3980 = vmatprep.subr.bf16.mxu0 %v5439_v37  ;;  %v5499_v35 = vld [vmem:[#allocation8 + $0x74c] ss:$16 sps:$4 sm:$0xff]   ;;  %v5497_v37 = vld [vmem:[#allocation8 + $0x748] ss:$16 sps:$4 sm:$0xff]  }
 0x24b   :  { %3938 = vmatpush2.bf16.msra.mxu1 %v5434_v39  ;;  %3981 = vmatpush2.bf16.msra.mxu0 %v5437_v40  ;;  %v5502_v39 = vld [vmem:[#allocation8 + $0x72c] ss:$16 sps:$4 sm:$0xff]   ;;  %v5500_v40 = vld [vmem:[#allocation8 + $0x728] ss:$16 sps:$4 sm:$0xff]  }
 0x24c   :  { %3939 = vmatprep.subr.bf16.mxu1 %v5442_v27  ;;  %3982 = vmatprep.subr.bf16.mxu0 %v5445_v38  ;;  %v5505_v27 = vld [vmem:[#allocation8 + $0x70c] ss:$16 sps:$4 sm:$0xff]   ;;  %v5503_v38 = vld [vmem:[#allocation8 + $0x708] ss:$16 sps:$4 sm:$0xff]  }
 0x24f   :  { %3940 = vmatpush2.bf16.msra.mxu1 %v5440_v10  ;;  %3983 = vmatpush2.bf16.msra.mxu0 %v5443_v44  ;;  %v5522_v10 = vld [vmem:[#allocation10 + $0xf8] sm:$0xff]  }
 0x250   :  { %3941 = vmatprep.subr.bf16.mxu1 %v5448_v46  ;;  %3984 = vmatprep.subr.bf16.mxu0 %v5451_v48  ;;  %v5523_v44 = vld [vmem:[#allocation10 + $0xb8] sm:$0xff]   ;;  %v5524_v46 = vld [vmem:[#allocation10 + $0xf0] sm:$0xff]  }
 0x251   :  { %v5525_v48 = vld [vmem:[#allocation10 + $0xb0] sm:$0xff]  }
 0x253   :  { %3942 = vmatpush2.bf16.msra.mxu1 %v5446_v12  ;;  %3985 = vmatpush2.bf16.msra.mxu0 %v5449_v14  ;;  %v5526_v12 = vld [vmem:[#allocation10 + $0xe8] sm:$0xff]  }
 0x254   :  { %3943 = vmatprep.subr.bf16.mxu1 %v5454_v20  ;;  %3986 = vmatprep.subr.bf16.mxu0 %v5457_v51  ;;  %v5527_v14 = vld [vmem:[#allocation10 + $0xa8] sm:$0xff]   ;;  %v5528_v20 = vld [vmem:[#allocation10 + $0xe0] sm:$0xff]  }
 0x255   :  { %v5529_v51 = vld [vmem:[#allocation10 + $0xa0] sm:$0xff]  }
 0x257   :  { %3944 = vmatpush2.bf16.msra.mxu1 %v5452_v21  ;;  %3987 = vmatpush2.bf16.msra.mxu0 %v5455_v22  ;;  %v5530_v21 = vld [vmem:[#allocation10 + $0xd8] sm:$0xff]  }
 0x258   :  { %3999 = vmatprep.subr.bf16.mxu1 %v5460_v25  ;;  %5049 = vmatprep.subr.bf16.mxu0 %v5506_v41  ;;  %v5531_v22 = vld [vmem:[#allocation10 + $0x98] sm:$0xff]  }
 0x25a   :  { %3946 = vmatmul.mubr.bf16.vlgmr.msra.gmra.mxu1 %v5844_v8  ;;  %3989 = vmatmul.mubr.bf16.vlgmr.msra.gmra.mxu0 %v5854_v45  ;;  %v5512_v8 = vld [vmem:[#allocation10 + $0x60] sm:$0xff]   ;;  %v5467_v45 = vld [vmem:[#allocation8 + $0x688] ss:$16 sps:$4 sm:$0xff]  }
 0x25b   :  { %4000 = vmatpush1.bf16.msra.mxu1 %v5458_v26  ;;  %4031 = vmatprep.mubr.bf16.mxu1 %v5863_v47  ;;  %v5513_v47 = vld [vmem:[#allocation10 + $0x20] sm:$0xff]   ;;  %v3775_v26 = vpop.f32.mrf.mxu1 }
 0x25c   :  { %4001 = vmatprep.subr.bf16.mxu1 %v5463_v42  ;;  %5050 = vmatpush3.bf16.msra.mxu0 %v5507_v53 }
 0x25d   :  { %5051 = vmatprep.subr.bf16.mxu0 %v5508_v54  ;;  %v3777_v53 = vpop.f32.mrf.mxu1 }
 0x25f   :  { %4002 = vmatpush1.bf16.msra.mxu1 %v5461_v55  ;;  %v2396_v55 = vld [vmem:[%s5900_s4] sm:$0xf] }
 0x260   :  { %4003 = vmatprep.subr.bf16.mxu1 %v5466_v43  ;;  %5052 = vmatpush3.bf16.msra.mxu0 %v5509_v4  ;;  %v3779_v43 = vpop.f32.mrf.mxu1 }
 0x261   :  { %5053 = vmatprep.subr.bf16.mxu0 %v5510_v56  ;;  %v2405_v56 = vrot.slane %v2396_v55, %v458_v1 }
 0x263   :  { %4004 = vmatpush1.bf16.msra.mxu1 %v5464_v57  ;;  %v2401_v57 = vrot.slane %v2396_v55, %v454_v7 }
 0x264   :  { %4005 = vmatprep.subr.bf16.mxu1 %v5469_v58  ;;  %5054 = vmatpush3.bf16.msra.mxu0 %v5511_v59  ;;  %v3781_v58 = vpop.f32.mrf.mxu1 }
 0x265   :  { %5055 = vmatprep.subr.bf16.mxu0 %v5512_v8 }
 0x267   :  { %4006 = vmatpush1.bf16.msra.mxu1 %v5467_v45 }
 0x268   :  { %4007 = vmatprep.subr.bf16.mxu1 %v5472_v60  ;;  %5056 = vmatpush3.bf16.msra.mxu0 %v5513_v47 }
 0x269   :  { %5057 = vmatprep.subr.bf16.mxu0 %v5514_v61 }
 0x26b   :  { %4008 = vmatpush1.bf16.msra.mxu1 %v5470_v62 }
 0x26c   :  { %4009 = vmatprep.subr.bf16.mxu1 %v5475_v63  ;;  %5058 = vmatpush3.bf16.msra.mxu0 %v5515_v0  ;;  %v5532_v0 = vld [vmem:[#allocation10 + $0xd0] sm:$0xff]  }
 0x26d   :  { %5059 = vmatprep.subr.bf16.mxu0 %v5516_v2 }
 0x26f   :  { %4010 = vmatpush1.bf16.msra.mxu1 %v5473_v5 }
 0x270   :  { %4011 = vmatprep.subr.bf16.mxu1 %v5478_v6  ;;  %5060 = vmatpush3.bf16.msra.mxu0 %v5517_v11  ;;  %v5533_v11 = vld [vmem:[#allocation10 + $0x90] sm:$0xff]  }
 0x271   :  { %5061 = vmatprep.subr.bf16.mxu0 %v5518_v15 }
 0x273   :  { %4012 = vmatpush1.bf16.msra.mxu1 %v5476_v16 }
 0x274   :  { %4013 = vmatprep.subr.bf16.mxu1 %v5481_v17  ;;  %5062 = vmatpush3.bf16.msra.mxu0 %v5519_v18 }
 0x275   :  { %5063 = vmatprep.subr.bf16.mxu0 %v5520_v19 }
 0x277   :  { %4014 = vmatpush1.bf16.msra.mxu1 %v5479_v23 }
 0x278   :  { %4015 = vmatprep.subr.bf16.mxu1 %v5484_v49  ;;  %5064 = vmatpush3.bf16.msra.mxu0 %v5521_v28  ;;  %v5534_v49 = vld [vmem:[#allocation10 + $0xc8] sm:$0xff]  }
 0x27b   :  { %4016 = vmatpush2.bf16.msra.mxu1 %v5482_v50 }
 0x27c   :  { %4017 = vmatprep.subr.bf16.mxu1 %v5487_v29  ;;  %v5535_v29 = vld [vmem:[#allocation10 + $0x88] sm:$0xff]  }
 0x27f   :  { %4018 = vmatpush2.bf16.msra.mxu1 %v5485_v30 }
 0x280   :  { %4019 = vmatprep.subr.bf16.mxu1 %v5490_v31 }
 0x283   :  { %4020 = vmatpush2.bf16.msra.mxu1 %v5488_v32 }
 0x284   :  { %4021 = vmatprep.subr.bf16.mxu1 %v5493_v33 }
 0x287   :  { %4022 = vmatpush2.bf16.msra.mxu1 %v5491_v24  ;;  %v5536_v24 = vld [vmem:[#allocation10 + $0xc0] sm:$0xff]  }
 0x288   :  { %4023 = vmatprep.subr.bf16.mxu1 %v5496_v3 }
 0x28b   :  { %4024 = vmatpush2.bf16.msra.mxu1 %v5494_v34  ;;  %v5537_v34 = vld [vmem:[#allocation10 + $0x80] sm:$0xff]  }
 0x28c   :  { %4025 = vmatprep.subr.bf16.mxu1 %v5499_v35 }
 0x28f   :  { %4026 = vmatpush2.bf16.msra.mxu1 %v5497_v37 }
 0x290   :  { %4027 = vmatprep.subr.bf16.mxu1 %v5502_v39 }
 0x293   :  { %4028 = vmatpush2.bf16.msra.mxu1 %v5500_v40 }
 0x294   :  { %4029 = vmatprep.subr.bf16.mxu1 %v5505_v27 }
 0x297   :  { %4030 = vmatpush2.bf16.msra.mxu1 %v5503_v38 }
 0x298   :  { %5071 = vmatprep.subr.bf16.mxu1 %v5522_v10 }
 0x29a   :  { %4032 = vmatmul.mubr.bf16.vlgmr.msra.gmra.mxu1 %v5865_v13  ;;  %v3732_v13 = vpop.f32.mrf.mxu0 }
 0x29b   :  { %5072 = vmatpush3.bf16.msra.mxu1 %v5523_v44  ;;  %v3733_v60 = vadd.f32 %v3732_v13, %v2401_v57 }
 0x29c   :  { %5073 = vmatprep.subr.bf16.mxu1 %v5524_v46  ;;  %v3734_v25 = vpop.f32.mrf.mxu0 }
 0x29d   :  { %v3735_v8 = vadd.f32 %v3734_v25, %v2405_v56  ;;  %v3776_v2 = vadd.f32 %v3775_v26, %v3733_v60 }
 0x29e   :  { %v3736_v41 = vpop.f32.mrf.mxu0 }
 0x29f   :  { %5074 = vmatpush3.bf16.msra.mxu1 %v5525_v48  ;;  %v3737_v45 = vadd.f32 %v3736_v41, %v2401_v57  ;;  %v3778_v62 = vadd.f32 %v3777_v53, %v3735_v8  ;;  %v2413_v48 = vrot.slane %v2396_v55, %v466_v9 }
 0x2a0   :  { %5075 = vmatprep.subr.bf16.mxu1 %v5526_v12  ;;  %v3738_v42 = vpop.f32.mrf.mxu0  ;;  %v2409_v12 = vrot.slane %v2396_v55, %v462_v36 }
 0x2a1   :  { %v3739_v61 = vadd.f32 %v3738_v42, %v2405_v56  ;;  %v3780_v63 = vadd.f32 %v3779_v43, %v3737_v45 }
 0x2a2   :  { %v3818_v54 = vpop.f32.mrf.mxu0 }
 0x2a3   :  { %5076 = vmatpush3.bf16.msra.mxu1 %v5527_v14  ;;  %v3782_v15 = vadd.f32 %v3781_v58, %v3739_v61  ;;  %v3819_v17 = vadd.f32 %v3818_v54, %v3776_v2 }
 0x2a4   :  { %5077 = vmatprep.subr.bf16.mxu1 %v5528_v20  ;;  %v3820_v4 = vpop.f32.mrf.mxu0 }
 0x2a5   :  { %v3821_v16 = vadd.f32 %v3820_v4, %v3778_v62 }
 0x2a6   :  { %v3822_v59 = vpop.f32.mrf.mxu0 }
 0x2a7   :  { %5078 = vmatpush3.bf16.msra.mxu1 %v5529_v51  ;;  %v3823_v1 = vadd.f32 %v3822_v59, %v3780_v63 }
 0x2a8   :  { %5079 = vmatprep.subr.bf16.mxu1 %v5530_v21  ;;  %v3824_v5 = vpop.f32.mrf.mxu0 }
 0x2a9   :  { %v3825_v18 = vadd.f32 %v3824_v5, %v3782_v15 }
 0x2ab   :  { %5080 = vmatpush3.bf16.msra.mxu1 %v5531_v22 }
 0x2ac   :  { %5081 = vmatprep.subr.bf16.mxu1 %v5532_v0 }
 0x2af   :  { %5082 = vmatpush3.bf16.msra.mxu1 %v5533_v11 }
 0x2b0   :  { %5083 = vmatprep.subr.bf16.mxu1 %v5534_v49 }
 0x2b3   :  { %5084 = vmatpush3.bf16.msra.mxu1 %v5535_v29 }
 0x2b4   :  { %5085 = vmatprep.subr.bf16.mxu1 %v5536_v24 }
 0x2b7   :  { %5086 = vmatpush3.bf16.msra.mxu1 %v5537_v34 }
 0x2da   :  { %v3861_v47 = vpop.f32.mrf.mxu1  ;;  %v3904_v39 = vpop.f32.mrf.mxu0 }
 0x2db   :  { %v3862_v28 = vadd.f32 %v3861_v47, %v3819_v17  ;;  %v3905_v22 = vadd.f32 %v3904_v39, %v2409_v12  ;;  %v5688_v39 = vmov 1966171168  }
 0x2dc   :  { %v3863_v6 = vpop.f32.mrf.mxu1  ;;  %v3906_v40 = vpop.f32.mrf.mxu0 }
 0x2dd   :  { %v3864_v19 = vadd.f32 %v3863_v6, %v3821_v16  ;;  %v4042_v3 = vmax.f32 %v3862_v28, 0.0  ;;  %v3907_v51 = vadd.f32 %v3906_v40, %v2413_v48  ;;  %v4415_v40 = vunpack.c.l.s4 %v5688_v39 }
 0x2de   :  { %v3865_v7 = vpop.f32.mrf.mxu1  ;;  %v3908_v27 = vpop.f32.mrf.mxu0 }
 0x2df   :  { %v3866_v23 = vadd.f32 %v3865_v7, %v3823_v1  ;;  %v4043_v32 = vmax.f32 %v3864_v19, 0.0  ;;  %v3909_v21 = vadd.f32 %v3908_v27, %v2409_v12  ;;  %v5009_v1 = vld [vmem:[%s5902_s6] ss:$0 sm:$0xff]  ;;  %v4416_v27 = vunpack.c.0.s8 %v4415_v40 }
 0x2e0   :  { %v3867_v50 = vpop.f32.mrf.mxu1  ;;  %v3910_v10 = vpop.f32.mrf.mxu0 }
 0x2e1   :  { %v3868_v30 = vadd.f32 %v3867_v50, %v3825_v18  ;;  %v4046_v31 = vmax.f32 %v3866_v23, 0.0  ;;  %v3911_v25 = vadd.f32 %v3910_v10, %v2413_v48  ;;  %v4419_v10 = vsub.s32 %v4416_v27, %v5747_v52 }
 0x2e3   :  { %v4047_v33 = vmax.f32 %v3868_v30, 0.0  ;;  %v4050_v37 = vpack.c.bf16 %v4046_v31, %v4042_v3 }
 0x2e5   :  { %v4051_v35 = vpack.c.bf16 %v4047_v33, %v4043_v32 }
 0x2e7   :  { %4349 = vmatprep.mubr.bf16.mxu0 %v4051_v35 }
 0x2e8   :  { %4350 = vmatmul.mubr.bf16.vlgmr.msra.gmra.mxu0 %v4050_v37 }
 0x31a   :  { %v3947_v38 = vpop.f32.mrf.mxu1  ;;  %v3990_v46 = vpop.f32.mrf.mxu0 }
 0x31b   :  { %v3948_v42 = vadd.f32 %v3947_v38, %v3905_v22 }
 0x31c   :  { %v3949_v44 = vpop.f32.mrf.mxu1  ;;  %v3992_v20 = vpop.f32.mrf.mxu0 }
 0x31d   :  { %v3950_v41 = vadd.f32 %v3949_v44, %v3907_v51  ;;  %v3991_v9 = vadd.f32 %v3990_v46, %v3948_v42 }
 0x31e   :  { %v3951_v14 = vpop.f32.mrf.mxu1  ;;  %v3994_v53 = vpop.f32.mrf.mxu0 }
 0x31f   :  { %v3952_v26 = vadd.f32 %v3951_v14, %v3909_v21  ;;  %v3993_v56 = vadd.f32 %v3992_v20, %v3950_v41 }
 0x320   :  { %v3953_v13 = vpop.f32.mrf.mxu1  ;;  %v3996_v58 = vpop.f32.mrf.mxu0 }
 0x321   :  { %v3954_v43 = vadd.f32 %v3953_v13, %v3911_v25  ;;  %v3995_v57 = vadd.f32 %v3994_v53, %v3952_v26 }
 0x323   :  { %v3997_v36 = vadd.f32 %v3996_v58, %v3954_v43 }
 0x35a   :  { %v4033_v54 = vpop.f32.mrf.mxu1 }
 0x35b   :  { %v4034_v45 = vadd.f32 %v4033_v54, %v3991_v9 }
 0x35c   :  { %v4035_v4 = vpop.f32.mrf.mxu1 }
 0x35d   :  { %v4036_v55 = vadd.f32 %v4035_v4, %v3993_v56  ;;  %v4044_v0 = vmax.f32 %v4034_v45, 0.0 }
 0x35e   :  { %v4037_v59 = vpop.f32.mrf.mxu1 }
 0x35f   :  { %v4038_v8 = vadd.f32 %v4037_v59, %v3995_v57  ;;  %v4045_v62 = vmax.f32 %v4036_v55, 0.0 }
 0x360   :  { %v4039_v60 = vpop.f32.mrf.mxu1 }
 0x361   :  { %v4040_v47 = vadd.f32 %v4039_v60, %v3997_v36  ;;  %v4048_v61 = vmax.f32 %v4038_v8, 0.0 }
 0x363   :  { %v4049_v63 = vmax.f32 %v4040_v47, 0.0  ;;  %v4052_v5 = vpack.c.bf16 %v4048_v61, %v4044_v0 }
 0x365   :  { %v4053_v2 = vpack.c.bf16 %v4049_v63, %v4045_v62 }
 0x367   :  { %4390 = vmatprep.mubr.bf16.mxu1 %v4053_v2 }
 0x368   :  { %4391 = vmatmul.mubr.bf16.vlgmr.msra.gmra.mxu1 %v4052_v5 }
 0x3a8   :  { %v5065_v6 = vpop.f32.mrf.mxu0 }
 0x3aa   :  { %v5066_v11 = vpop.f32.mrf.mxu0 }
 0x3ab   :  { %v5067_v16 = vadd.f32 %v5066_v11, %v5065_v6 }
 0x3ac   :  { %v5068_v15 = vpop.f32.mrf.mxu0 }
 0x3ad   :  { %v4352_v19 = vadd.f32 %v5067_v16, %v5009_v1 }
 0x3ae   :  { %v5069_v17 = vpop.f32.mrf.mxu0 }
 0x3af   :  { %v5070_v23 = vadd.f32 %v5069_v17, %v5068_v15 }
 0x3b1   :  { %v4355_v30 = vadd.f32 %v5070_v23, %v5009_v1 }
 0x428   :  { %v5087_v7 = vpop.f32.mrf.mxu1 }
 0x42a   :  { %v5088_v18 = vpop.f32.mrf.mxu1 }
 0x42b   :  { %v5089_v49 = vadd.f32 %v5088_v18, %v5087_v7 }
 0x42c   :  { %v5090_v28 = vpop.f32.mrf.mxu1 }
 0x42d   :  { %v4393_v50 = vadd.f32 %v5089_v49, %v4352_v19 }
 0x42e   :  { %v5091_v29 = vpop.f32.mrf.mxu1 }
 0x42f   :  { %v5042_v31 = vmul.f32 -1.442695, %v4393_v50  ;;  %v5092_v32 = vadd.f32 %v5091_v29, %v5090_v28 }
 0x431   :  { %5538 = vpow2.f32 %v5042_v31  ;;  %v4396_v33 = vadd.f32 %v5092_v32, %v4355_v30 }
 0x433   :  { %v5043_v24 = vmul.f32 -1.442695, %v4396_v33 }
 0x435   :  { %5540 = vpow2.f32 %v5043_v24 }
 0x43e   :  { %v5539_v3 = vpop.eup %5538 }
 0x43f   :  { %v4405_v34 = vadd.f32 1.0, %v5539_v3 }
 0x441   :  { %5542 = vrcp.f32 %v4405_v34 }
 0x442   :  { %v5541_v35 = vpop.eup %5540 }
 0x443   :  { %v4406_v37 = vadd.f32 1.0, %v5541_v35 }
 0x445   :  { %5544 = vrcp.f32 %v4406_v37 }
 0x44e   :  { %v5543_v38 = vpop.eup %5542 }
 0x452   :  { %v5545_v44 = vpop.eup %5544 }
 0x453   :  { %v4411_v46 = vpack.c.bf16 %v5545_v44, %v5543_v38  ;;  %v5044_v48 = vpack.c.bf16 %v5545_v44, %v5545_v44 }
 0x455   :  { %v4420_v12 = vrot.slane %v4411_v46, %v4419_v10  ;;  %v4427_v14 = vrot.slane %v5044_v48, %v4419_v10 }
 0x457   :  { %v4428_v20 = vcombine.high %v4420_v12, %v4420_v12  ;;  %v4429_v51 = vcombine.high %v4427_v14, %v4427_v14  ;;  %v4436_v21 = vrot.slane %v4420_v12, %v4419_v10  ;;  %v4443_v22 = vrot.slane %v4427_v14, %v4419_v10  ;;  %5045 = vst.sshfl [vmem:[#allocation11] sm:$0x1 pattern:$0x73625140] %v4420_v12 }
 0x458   :  { %5047 = vst.sshfl [vmem:[#allocation11 + $0x4] sm:$0x1 pattern:$0x73625140] %v4427_v14 }
 0x459   :  { %v4450_v13 = vrot.slane %v4428_v20, %v4419_v10  ;;  %v4457_v25 = vrot.slane %v4429_v51, %v4419_v10  ;;  %v4458_v41 = vcombine.high %v4436_v21, %v4436_v21  ;;  %v4459_v26 = vcombine.high %v4443_v22, %v4443_v22  ;;  %5046 = vst.sshfl [vmem:[#allocation11 + $0x1] sm:$0x1 pattern:$0x73625140] %v4428_v20 }
 0x45a   :  { %5048 = vst.sshfl [vmem:[#allocation11 + $0x5] sm:$0x1 pattern:$0x73625140] %v4429_v51 }
 0x45b   :  { %v4460_v42 = vcombine.high %v4450_v13, %v4450_v13  ;;  %v4461_v53 = vcombine.high %v4457_v25, %v4457_v25  ;;  %4472 = vst [vmem:[#allocation11 + $0x2] sm:$0x1] %v4458_v41  ;;  %4476 = vst [vmem:[#allocation11 + $0x6] sm:$0x1] %v4459_v26 }
 0x45d   :  { %4473 = vst [vmem:[#allocation11 + $0x3] sm:$0x1] %v4460_v42  ;;  %4477 = vst [vmem:[#allocation11 + $0x7] sm:$0x1] %v4461_v53 }
 0x45e   :  { %4482 = vsyncadd [#allocation4], 112  ;;  %s5689_s6 = smov [#allocation11]  }
 0x45f   :  { %s4483_s10 = sshll.u32 %s5689_s6, 4  ;;  %s4484_s10 = int_to_ptr.vmem [resolvable:$true] %s4483_s10 }
 0x460   :  { %s5646_s11 = scalar_lea.vmem %s4484_s10, 16  ;;  %s5650_s13 = scalar_lea.vmem %s4484_s10, 128 }
 0x461   :  { %p5647_p11 = scmp.ne.s32.totalorder %s4484_s10, %s5646_s11  ;;  %p5651_p12 = scmp.lt.s32.totalorder %s4484_s10, %s4484_s10 }
 0x462   :  { %p5652_p13 = scmp.lt.s32.totalorder %s5650_s13, %s5646_s11 }
 0x464   :  { %p5653_p0 = por %p5652_p13, %p5651_p12 }
 0x466   :  { %p5654_p1 = pnand %p5653_p0, %p5647_p11 }
 0x468   :  { %5657 = shalt.err (!%p5654_p1)
}
 0x469   :  { %s5690_s14 = smov 1  }
 0x46a   :  { %4489 = dma.vmem_to_hbm [thread:$0]  %s4484_s10, 16, %s5903_s7, [#allocation4], %s5679_s12, %s5679_s12, %s5690_s14  }
 0x46b   :  { %5672 = dma.done.wait [#allocation4], 128  }
 0x46c   :  { %5673 = vsyncadd [#allocation4], 4294967168 }
 0x46d   :  { %4493 = vsyncpa [#allocation3], 1 }
 0x46e   :  { %4494 = vsyncpa [#allocation6], 1 }
 0x46f   :  { %4495 = vsyncpa [#allocation9], 1 }
 0x470   :  { %4496 = vsyncpa [#allocation4], 1 }

// kernel: tpu_custom_call.1
= control target key start
LH: loop header
LB: loop body
LE: loop exit
PB: predicated region body
PF: predicated region fallthrough
CT: control target
= control target key end

     0   :  { %12 = vsyncpa [#allocation3], 0  ;;  %s5896_s0 = inlined_call_operand.hbm [shape: f32[2,512], index: 0, kind: input, shape index: {}]   ;;  %s5897_s1 = inlined_call_operand.hbm [shape: bf16[512,1024], index: 1, kind: input, shape index: {}]   ;;  %s5898_s2 = inlined_call_operand.hbm [shape: f32[1,1024], index: 2, kind: input, shape index: {}]   ;;  %s5899_s3 = inlined_call_operand.hbm [shape: bf16[1024,512], index: 3, kind: input, shape index: {}]   ;;  %s5900_s4 = inlined_call_operand.vmem [shape: f32[1,512], index: 4, kind: input, shape index: {}]   ;;  %s5901_s5 = inlined_call_operand.hbm [shape: bf16[512,128], index: 5, kind: input, shape index: {}]   ;;  %s5902_s6 = inlined_call_operand.vmem [shape: f32[1,128], index: 6, kind: input, shape index: {}]   ;;  %s5903_s7 = inlined_call_operand.hbm [shape: bf16[2,128], index: 7, kind: output, shape index: {}]  }
   0x1   :  { %13 = vsyncpa [#allocation6], 0 }
   0x2   :  { %14 = vsyncpa [#allocation9], 0 }
   0x3   :  { %15 = vsyncpa [#allocation4], 0 }
   0x4   :  { %20 = vsyncadd [#allocation3], 896  ;;  %s5674_s24 = smov [#allocation5]  }
   0x5   :  { %s33_s25 = sshll.u32 %s5674_s24, 4  ;;  %s34_s25 = int_to_ptr.vmem [resolvable:$true] %s33_s25 }
   0x6   :  { %s5554_s26 = scalar_lea.vmem %s34_s25, 32768  ;;  %p5559_p1 = scmp.lt.s32.totalorder %s34_s25, %s34_s25 }
   0x7   :  { %p5555_p0 = scmp.ne.s32.totalorder %s34_s25, %s5554_s26  ;;  %p5560_p2 = scmp.lt.s32.totalorder %s5554_s26, %s5554_s26 }
   0x9   :  { %p5561_p3 = por %p5560_p2, %p5559_p1 }
   0xb   :  { %p5562_p4 = pnand %p5561_p3, %p5555_p0 }
   0xd   :  { %5565 = shalt.err (!%p5562_p4)
}
   0xe   :  { %s5675_s27 = smov 512   ;;  %s5676_s28 = smov 32  }
   0xf   :  { %39 = dma.hbm_to_vmem [thread:$0]  %s5897_s1, 32768, %s34_s25, [#allocation6], %s5675_s27, %s5675_s27, %s5676_s28  }
  0x10   :  { %s5677_s8 = smov [#allocation8]  }
  0x11   :  { %s55_s9 = sshll.u32 %s5677_s8, 4  ;;  %s56_s9 = int_to_ptr.vmem [resolvable:$true] %s55_s9 }
  0x12   :  { %s5574_s10 = scalar_lea.vmem %s56_s9, 32768  ;;  %p5579_p6 = scmp.lt.s32.totalorder %s56_s9, %s56_s9 }
  0x13   :  { %p5575_p5 = scmp.ne.s32.totalorder %s56_s9, %s5574_s10  ;;  %p5580_p7 = scmp.lt.s32.totalorder %s5574_s10, %s5574_s10 }
  0x15   :  { %p5581_p8 = por %p5580_p7, %p5579_p6 }
  0x17   :  { %p5582_p9 = pnand %p5581_p8, %p5575_p5 }
  0x19   :  { %5585 = shalt.err (!%p5582_p9)
}
  0x1a   :  { %s5678_s11 = smov 256   ;;  %s5679_s12 = smov 16  }
  0x1b   :  { %61 = dma.hbm_to_vmem [thread:$0]  %s5899_s3, 32768, %s56_s9, [#allocation9], %s5678_s11, %s5678_s11, %s5679_s12  }
  0x1c   :  { %s5680_s15 = smov [#allocation2]  }
  0x1d   :  { %s21_s16 = sshll.u32 %s5680_s15, 4  ;;  %s22_s16 = int_to_ptr.vmem [resolvable:$true] %s21_s16 }
  0x1e   :  { %s5594_s1 = scalar_lea.vmem %s22_s16, 128  ;;  %s5598_s17 = scalar_lea.vmem %s22_s16, 1024 }
  0x1f   :  { %p5595_p10 = scmp.ne.s32.totalorder %s22_s16, %s5594_s1  ;;  %p5599_p11 = scmp.lt.s32.totalorder %s22_s16, %s22_s16 }
  0x20   :  { %p5600_p12 = scmp.lt.s32.totalorder %s5598_s17, %s5594_s1 }
  0x22   :  { %p5601_p13 = por %p5600_p12, %p5599_p11 }
  0x24   :  { %p5602_p0 = pnand %p5601_p13, %p5595_p10 }
  0x26   :  { %5605 = shalt.err (!%p5602_p0)
}
  0x27   :  { %s5681_s18 = smov 128   ;;  %s5682_s19 = smov 8  }
  0x28   :  { %27 = dma.hbm_to_vmem [thread:$0]  %s5896_s0, 128, %s22_s16, [#allocation3], %s5681_s18, %s5681_s18, %s5682_s19  }
  0x29   :  { %s5683_s22 = smov [#allocation7]   ;;  %s5684_s3 = smov [#allocation10]  }
  0x2a   :  { %s46_s23 = sshll.u32 %s5683_s22, 4  ;;  %s69_s24 = sshll.u32 %s5684_s3, 4  ;;  %s47_s23 = int_to_ptr.vmem [resolvable:$true] %s46_s23  ;;  %s70_s24 = int_to_ptr.vmem [resolvable:$true] %s69_s24 }
  0x2b   :  { %s5614_s25 = scalar_lea.vmem %s47_s23, 128  ;;  %p5619_p2 = scmp.lt.s32.totalorder %s47_s23, %s47_s23 }
  0x2c   :  { %p5615_p1 = scmp.ne.s32.totalorder %s47_s23, %s5614_s25  ;;  %p5620_p3 = scmp.lt.s32.totalorder %s5614_s25, %s5614_s25 }
  0x2e   :  { %p5621_p4 = por %p5620_p3, %p5619_p2 }
  0x30   :  { %p5622_p5 = pnand %p5621_p4, %p5615_p1 }
  0x32   :  { %5625 = shalt.err (!%p5622_p5)
}
  0x33   :  { %49 = dma.hbm_to_vmem [thread:$0]  %s5898_s2, 128, %s47_s23, [#allocation6]  }
  0x34   :  { %s5634_s28 = scalar_lea.vmem %s70_s24, 4096  ;;  %p5639_p7 = scmp.lt.s32.totalorder %s70_s24, %s70_s24 }
  0x35   :  { %p5635_p6 = scmp.ne.s32.totalorder %s70_s24, %s5634_s28  ;;  %p5640_p8 = scmp.lt.s32.totalorder %s5634_s28, %s5634_s28 }
  0x37   :  { %p5641_p9 = por %p5640_p8, %p5639_p7 }
  0x39   :  { %p5642_p10 = pnand %p5641_p9, %p5635_p6 }
  0x3b   :  { %5645 = shalt.err (!%p5642_p10)
}
  0x3c   :  { %s5685_s0 = smov 64   ;;  %s5686_s29 = smov 4  }
  0x3d   :  { %75 = dma.hbm_to_vmem [thread:$0]  %s5901_s5, 4096, %s70_s24, [#allocation9], %s5685_s0, %s5685_s0, %s5686_s29  }
  0x3e   :  { %5666 = dma.done.wait [#allocation3], 1024  }
  0x3f   :  { %5667 = vsyncadd [#allocation3], 4294966272 }
  0x40   :  { %5668 = dma.done.wait [#allocation6], 32896  }
  0x41   :  { %5669 = vsyncadd [#allocation6], 4294934400 }
  0x42   :  { %5670 = dma.done.wait [#allocation9], 36864  }
  0x43   :  { %5671 = vsyncadd [#allocation9], 4294930432  ;;  %v250_v0 = vld [vmem:[#allocation5 + $0x1c0] sm:$0xff]  ;;  %v5687_v40 = vmov 1983009808   ;;  %v117_v42 = vlaneseq }
  0x44   :  { %v254_v1 = vld [vmem:[#allocation5 + $0x1e0] sm:$0xff]  ;;  %v115_v41 = vunpack.c.l.s4 %v5687_v40 }
  0x45   :  { %v378_v2 = vld [vmem:[#allocation5 + $0x5c0] sm:$0xff]  ;;  %v4554_v3 = vcombine.high %v250_v0, %v254_v1  ;;  %v4553_v5 = vcombine.low %v250_v0, %v254_v1  ;;  %v5747_v52 = vshrl.u32 %v117_v42, 7 }
  0x46   :  { %v382_v4 = vld [vmem:[#allocation5 + $0x5e0] sm:$0xff]  ;;  %v116_v51 = vunpack.c.0.s8 %v115_v41 }
  0x47   :  { %v242_v6 = vld [vmem:[#allocation5 + $0x180] sm:$0xff]  ;;  %v4682_v8 = vcombine.high %v378_v2, %v382_v4  ;;  %v4681_v9 = vcombine.low %v378_v2, %v382_v4  ;;  %1772 = vmatprep.subr.bf16.mxu0 %v4554_v3  ;;  %v5112_v3 = vld [vmem:[#allocation2 + $0x10] ss:$8 sps:$4 sm:$0xff]  }
  0x48   :  { %v246_v7 = vld [vmem:[#allocation5 + $0x1a0] sm:$0xff]  ;;  %1773 = vmatpush1.bf16.msra.mxu0 %v4553_v5  ;;  %v119_v63 = vsub.s32 %v116_v51, %v5747_v52 }
  0x49   :  { %v4546_v10 = vcombine.high %v242_v6, %v246_v7  ;;  %v370_v11 = vld [vmem:[#allocation5 + $0x580] sm:$0xff]  ;;  %1815 = vmatprep.subr.bf16.mxu1 %v4682_v8  ;;  %v4545_v18 = vcombine.low %v242_v6, %v246_v7  ;;  %v5116_v7 = vld [vmem:[#allocation2 + $0x30] ss:$8 sps:$4 sm:$0xff]  }
  0x4a   :  { %v374_v12 = vld [vmem:[#allocation5 + $0x5a0] sm:$0xff]  ;;  %1816 = vmatpush1.bf16.msra.mxu1 %v4681_v9  ;;  %v5119_v9 = vld [vmem:[#allocation2 + $0x14] ss:$8 sps:$4 sm:$0xff]  }
  0x4b   :  { %v234_v13 = vld [vmem:[#allocation5 + $0x140] sm:$0xff]  ;;  %v4674_v14 = vcombine.high %v370_v11, %v374_v12  ;;  %1774 = vmatprep.subr.bf16.mxu0 %v4546_v10  ;;  %v4673_v19 = vcombine.low %v370_v11, %v374_v12 }
  0x4c   :  { %v238_v15 = vld [vmem:[#allocation5 + $0x160] sm:$0xff]  ;;  %1775 = vmatpush1.bf16.msra.mxu0 %v4545_v18 }
  0x4d   :  { %v362_v16 = vld [vmem:[#allocation5 + $0x540] sm:$0xff]  ;;  %v4538_v20 = vcombine.high %v234_v13, %v238_v15  ;;  %1817 = vmatprep.subr.bf16.mxu1 %v4674_v14  ;;  %v4537_v26 = vcombine.low %v234_v13, %v238_v15  ;;  %v5752_v13 = vrot.slane %v5112_v3, %v119_v63 }
  0x4e   :  { %v366_v17 = vld [vmem:[#allocation5 + $0x560] sm:$0xff]  ;;  %1818 = vmatpush1.bf16.msra.mxu1 %v4673_v19 }
  0x4f   :  { %v4666_v21 = vcombine.high %v362_v16, %v366_v17  ;;  %v226_v22 = vld [vmem:[#allocation5 + $0x100] sm:$0xff]  ;;  %1776 = vmatprep.subr.bf16.mxu0 %v4538_v20  ;;  %v4665_v27 = vcombine.low %v362_v16, %v366_v17  ;;  %v5121_v16 = vld [vmem:[#allocation2 + $0x34] ss:$8 sps:$4 sm:$0xff]   ;;  %v5756_v20 = vrot.slane %v5116_v7, %v119_v63 }
  0x50   :  { %v230_v23 = vld [vmem:[#allocation5 + $0x120] sm:$0xff]  ;;  %1777 = vmatpush1.bf16.msra.mxu0 %v4537_v26  ;;  %v5766_v26 = vrot.slane %v5121_v16, %v119_v63 }
  0x51   :  { %v354_v24 = vld [vmem:[#allocation5 + $0x500] sm:$0xff]  ;;  %v4530_v28 = vcombine.high %v226_v22, %v230_v23  ;;  %1819 = vmatprep.subr.bf16.mxu1 %v4666_v21  ;;  %v4529_v34 = vcombine.low %v226_v22, %v230_v23  ;;  %v5760_v22 = vrot.slane %v5119_v9, %v119_v63 }
  0x52   :  { %v358_v25 = vld [vmem:[#allocation5 + $0x520] sm:$0xff]  ;;  %1820 = vmatpush1.bf16.msra.mxu1 %v4665_v27 }
  0x53   :  { %v4658_v29 = vcombine.high %v354_v24, %v358_v25  ;;  %v218_v30 = vld [vmem:[#allocation5 + $0xc0] sm:$0xff]  ;;  %1778 = vmatprep.subr.bf16.mxu0 %v4530_v28  ;;  %v4657_v35 = vcombine.low %v354_v24, %v358_v25 }
  0x54   :  { %v222_v31 = vld [vmem:[#allocation5 + $0xe0] sm:$0xff]  ;;  %1779 = vmatpush1.bf16.msra.mxu0 %v4529_v34 }
  0x55   :  { %v346_v32 = vld [vmem:[#allocation5 + $0x4c0] sm:$0xff]  ;;  %v4522_v36 = vcombine.high %v218_v30, %v222_v31  ;;  %1821 = vmatprep.subr.bf16.mxu1 %v4658_v29  ;;  %v4521_v45 = vcombine.low %v218_v30, %v222_v31 }
  0x56   :  { %v350_v33 = vld [vmem:[#allocation5 + $0x4e0] sm:$0xff]  ;;  %1822 = vmatpush1.bf16.msra.mxu1 %v4657_v35 }
  0x57   :  { %v4650_v37 = vcombine.high %v346_v32, %v350_v33  ;;  %v210_v38 = vld [vmem:[#allocation5 + $0x80] sm:$0xff]  ;;  %1780 = vmatprep.subr.bf16.mxu0 %v4522_v36  ;;  %v4649_v46 = vcombine.low %v346_v32, %v350_v33 }
  0x58   :  { %v214_v39 = vld [vmem:[#allocation5 + $0xa0] sm:$0xff]  ;;  %1781 = vmatpush1.bf16.msra.mxu0 %v4521_v45 }
  0x59   :  { %v338_v43 = vld [vmem:[#allocation5 + $0x480] sm:$0xff]  ;;  %v4514_v47 = vcombine.high %v210_v38, %v214_v39  ;;  %1823 = vmatprep.subr.bf16.mxu1 %v4650_v37  ;;  %v4513_v55 = vcombine.low %v210_v38, %v214_v39 }
  0x5a   :  { %v342_v44 = vld [vmem:[#allocation5 + $0x4a0] sm:$0xff]  ;;  %1824 = vmatpush1.bf16.msra.mxu1 %v4649_v46 }
  0x5b   :  { %v4642_v48 = vcombine.high %v338_v43, %v342_v44  ;;  %v202_v49 = vld [vmem:[#allocation5 + $0x40] sm:$0xff]  ;;  %1782 = vmatprep.subr.bf16.mxu0 %v4514_v47  ;;  %v4641_v58 = vcombine.low %v338_v43, %v342_v44 }
  0x5c   :  { %v206_v50 = vld [vmem:[#allocation5 + $0x60] sm:$0xff]  ;;  %1783 = vmatpush1.bf16.msra.mxu0 %v4513_v55 }
  0x5d   :  { %v330_v53 = vld [vmem:[#allocation5 + $0x440] sm:$0xff]  ;;  %v4506_v59 = vcombine.high %v202_v49, %v206_v50  ;;  %1825 = vmatprep.subr.bf16.mxu1 %v4642_v48  ;;  %v4505_v0 = vcombine.low %v202_v49, %v206_v50 }
  0x5e   :  { %v334_v54 = vld [vmem:[#allocation5 + $0x460] sm:$0xff]  ;;  %1826 = vmatpush1.bf16.msra.mxu1 %v4641_v58 }
  0x5f   :  { %v194_v56 = vld [vmem:[#allocation5] sm:$0xff]  ;;  %v4634_v62 = vcombine.high %v330_v53, %v334_v54  ;;  %1784 = vmatprep.subr.bf16.mxu0 %v4506_v59  ;;  %v4633_v5 = vcombine.low %v330_v53, %v334_v54 }
  0x60   :  { %v198_v57 = vld [vmem:[#allocation5 + $0x20] sm:$0xff]  ;;  %1785 = vmatpush1.bf16.msra.mxu0 %v4505_v0 }
  0x61   :  { %v322_v60 = vld [vmem:[#allocation5 + $0x400] sm:$0xff]  ;;  %v4498_v6 = vcombine.high %v194_v56, %v198_v57  ;;  %1827 = vmatprep.subr.bf16.mxu1 %v4634_v62  ;;  %v4497_v17 = vcombine.low %v194_v56, %v198_v57 }
  0x62   :  { %v326_v61 = vld [vmem:[#allocation5 + $0x420] sm:$0xff]  ;;  %1828 = vmatpush1.bf16.msra.mxu1 %v4633_v5 }
  0x63   :  { %v314_v1 = vld [vmem:[#allocation5 + $0x3c0] sm:$0xff]  ;;  %v4626_v10 = vcombine.high %v322_v60, %v326_v61  ;;  %v4625_v23 = vcombine.low %v322_v60, %v326_v61  ;;  %1786 = vmatprep.subr.bf16.mxu0 %v4498_v6 }
  0x64   :  { %v5110_v2 = vld [vmem:[#allocation2] ss:$8 sps:$4 sm:$0xff]   ;;  %v5118_v8 = vld [vmem:[#allocation2 + $0x4] ss:$8 sps:$4 sm:$0xff]   ;;  %1787 = vmatpush1.bf16.msra.mxu0 %v4497_v17 }
  0x65   :  { %v5114_v4 = vld [vmem:[#allocation2 + $0x20] ss:$8 sps:$4 sm:$0xff]   ;;  %v5750_v12 = vrot.slane %v5110_v2, %v119_v63  ;;  %v5120_v15 = vld [vmem:[#allocation2 + $0x24] ss:$8 sps:$4 sm:$0xff]   ;;  %v5758_v21 = vrot.slane %v5118_v8, %v119_v63  ;;  %1829 = vmatprep.subr.bf16.mxu1 %v4626_v10 }
  0x66   :  { %v318_v11 = vld [vmem:[#allocation5 + $0x3e0] sm:$0xff]  ;;  %v5754_v14 = vrot.slane %v5114_v4, %v119_v63  ;;  %v5764_v25 = vrot.slane %v5120_v15, %v119_v63  ;;  %1830 = vmatpush1.bf16.msra.mxu1 %v4625_v23 }
  0x67   :  { %v442_v18 = vld [vmem:[#allocation5 + $0x7c0] sm:$0xff]  ;;  %v143_v24 = vcombine.high %v5750_v12, %v5752_v13  ;;  %v4618_v27 = vcombine.high %v314_v1, %v318_v11  ;;  %v145_v29 = vcombine.high %v5758_v21, %v5760_v22  ;;  %v4617_v37 = vcombine.low %v314_v1, %v318_v11 }
  0x68   :  { %v446_v19 = vld [vmem:[#allocation5 + $0x7e0] sm:$0xff]  ;;  %v179_v28 = vcombine.high %v5754_v14, %v5756_v20  ;;  %v181_v33 = vcombine.high %v5764_v25, %v5766_v26 }
  0x69   :  { %v4746_v30 = vcombine.high %v442_v18, %v446_v19  ;;  %v306_v31 = vld [vmem:[#allocation5 + $0x380] sm:$0xff]  ;;  %1788 = vmatprep.subr.bf16.mxu0 %v4618_v27  ;;  %v4745_v39 = vcombine.low %v442_v18, %v446_v19 }
  0x6a   :  { %v310_v32 = vld [vmem:[#allocation5 + $0x3a0] sm:$0xff]  ;;  %v5774_v36 = vpack.c.bf16 %v179_v28, %v143_v24  ;;  %v5776_v38 = vpack.c.bf16 %v181_v33, %v145_v29  ;;  %1789 = vmatpush2.bf16.msra.mxu0 %v4617_v37  ;;  %v255_v37 = vld [vmem:[#allocation5 + $0x1e8] sm:$0xff] }
  0x6b   :  { %v434_v34 = vld [vmem:[#allocation5 + $0x780] sm:$0xff]  ;;  %v4610_v40 = vcombine.high %v306_v31, %v310_v32  ;;  %1831 = vmatprep.subr.bf16.mxu1 %v4746_v30  ;;  %v4609_v46 = vcombine.low %v306_v31, %v310_v32 }
  0x6c   :  { %v438_v35 = vld [vmem:[#allocation5 + $0x7a0] sm:$0xff]  ;;  %1804 = vmatprep.mubr.bf16.mxu0 %v5774_v36  ;;  %1847 = vmatprep.mubr.bf16.mxu1 %v5776_v38 }
  0x6d   :  { %v4738_v41 = vcombine.high %v434_v34, %v438_v35  ;;  %v298_v42 = vld [vmem:[#allocation5 + $0x340] sm:$0xff]  ;;  %1832 = vmatpush2.bf16.msra.mxu1 %v4745_v39  ;;  %1790 = vmatprep.subr.bf16.mxu0 %v4610_v40  ;;  %v4737_v47 = vcombine.low %v434_v34, %v438_v35  ;;  %v251_v35 = vld [vmem:[#allocation5 + $0x1c8] sm:$0xff]  ;;  %v142_v39 = vcombine.low %v5750_v12, %v5752_v13 }
  0x6e   :  { %v302_v43 = vld [vmem:[#allocation5 + $0x360] sm:$0xff]  ;;  %1791 = vmatpush2.bf16.msra.mxu0 %v4609_v46  ;;  %v178_v40 = vcombine.low %v5754_v14, %v5756_v20  ;;  %v243_v12 = vld [vmem:[#allocation5 + $0x188] sm:$0xff] }
  0x6f   :  { %v426_v44 = vld [vmem:[#allocation5 + $0x740] sm:$0xff]  ;;  %v4602_v48 = vcombine.high %v298_v42, %v302_v43  ;;  %1833 = vmatprep.subr.bf16.mxu1 %v4738_v41  ;;  %v4601_v55 = vcombine.low %v298_v42, %v302_v43  ;;  %v379_v41 = vld [vmem:[#allocation5 + $0x5c8] sm:$0xff] }
  0x70   :  { %v430_v45 = vld [vmem:[#allocation5 + $0x760] sm:$0xff]  ;;  %v383_v42 = vld [vmem:[#allocation5 + $0x5e8] sm:$0xff] }
  0x71   :  { %v4730_v49 = vcombine.high %v426_v44, %v430_v45  ;;  %v290_v50 = vld [vmem:[#allocation5 + $0x300] sm:$0xff]  ;;  %1834 = vmatpush2.bf16.msra.mxu1 %v4737_v47  ;;  %1792 = vmatprep.subr.bf16.mxu0 %v4602_v48  ;;  %v4729_v56 = vcombine.low %v426_v44, %v430_v45  ;;  %v144_v44 = vcombine.low %v5758_v21, %v5760_v22  ;;  %v247_v13 = vld [vmem:[#allocation5 + $0x1a8] sm:$0xff] }
  0x72   :  { %v294_v51 = vld [vmem:[#allocation5 + $0x320] sm:$0xff]  ;;  %1793 = vmatpush2.bf16.msra.mxu0 %v4601_v55  ;;  %v180_v45 = vcombine.low %v5764_v25, %v5766_v26  ;;  %v4556_v47 = vcombine.high %v251_v35, %v255_v37  ;;  %v4684_v48 = vcombine.high %v379_v41, %v383_v42  ;;  %v371_v14 = vld [vmem:[#allocation5 + $0x588] sm:$0xff]  ;;  %v4683_v21 = vcombine.low %v379_v41, %v383_v42 }
  0x73   :  { %v418_v53 = vld [vmem:[#allocation5 + $0x700] sm:$0xff]  ;;  %v4594_v57 = vcombine.high %v290_v50, %v294_v51  ;;  %1835 = vmatprep.subr.bf16.mxu1 %v4730_v49  ;;  %v4593_v63 = vcombine.low %v290_v50, %v294_v51  ;;  %v5788_v49 = vpack.c.bf16 %v178_v40, %v142_v39  ;;  %v375_v20 = vld [vmem:[#allocation5 + $0x5a8] sm:$0xff]  ;;  %v4555_v51 = vcombine.low %v251_v35, %v255_v37 }
  0x74   :  { %v422_v54 = vld [vmem:[#allocation5 + $0x720] sm:$0xff]  ;;  %v5790_v50 = vpack.c.bf16 %v180_v45, %v144_v44  ;;  %v4548_v22 = vcombine.high %v243_v12, %v247_v13  ;;  %v4676_v25 = vcombine.high %v371_v14, %v375_v20  ;;  %v235_v26 = vld [vmem:[#allocation5 + $0x148] sm:$0xff] }
  0x75   :  { %v4722_v58 = vcombine.high %v418_v53, %v422_v54  ;;  %v282_v59 = vld [vmem:[#allocation5 + $0x2c0] sm:$0xff]  ;;  %1836 = vmatpush2.bf16.msra.mxu1 %v4729_v56  ;;  %1794 = vmatprep.subr.bf16.mxu0 %v4594_v57  ;;  %v4721_v0 = vcombine.low %v418_v53, %v422_v54  ;;  %v239_v53 = vld [vmem:[#allocation5 + $0x168] sm:$0xff]  ;;  %v4547_v56 = vcombine.low %v243_v12, %v247_v13 }
  0x76   :  { %v286_v60 = vld [vmem:[#allocation5 + $0x2e0] sm:$0xff]  ;;  %1795 = vmatpush2.bf16.msra.mxu0 %v4593_v63  ;;  %v363_v54 = vld [vmem:[#allocation5 + $0x548] sm:$0xff]  ;;  %v4675_v57 = vcombine.low %v371_v14, %v375_v20 }
  0x77   :  { %v410_v61 = vld [vmem:[#allocation5 + $0x6c0] sm:$0xff]  ;;  %v4586_v1 = vcombine.high %v282_v59, %v286_v60  ;;  %1837 = vmatprep.subr.bf16.mxu1 %v4722_v58  ;;  %v4585_v7 = vcombine.low %v282_v59, %v286_v60  ;;  %v367_v55 = vld [vmem:[#allocation5 + $0x568] sm:$0xff]  ;;  %v4540_v58 = vcombine.high %v235_v26, %v239_v53 }
  0x78   :  { %v414_v62 = vld [vmem:[#allocation5 + $0x6e0] sm:$0xff]  ;;  %v4668_v59 = vcombine.high %v363_v54, %v367_v55  ;;  %v227_v60 = vld [vmem:[#allocation5 + $0x108] sm:$0xff] }
  0x79   :  { %v4714_v2 = vcombine.high %v410_v61, %v414_v62  ;;  %v274_v3 = vld [vmem:[#allocation5 + $0x280] sm:$0xff]  ;;  %1838 = vmatpush2.bf16.msra.mxu1 %v4721_v0  ;;  %1796 = vmatprep.subr.bf16.mxu0 %v4586_v1  ;;  %v4713_v8 = vcombine.low %v410_v61, %v414_v62  ;;  %v231_v61 = vld [vmem:[#allocation5 + $0x128] sm:$0xff]  ;;  %v4539_v0 = vcombine.low %v235_v26, %v239_v53 }
  0x7a   :  { %v278_v4 = vld [vmem:[#allocation5 + $0x2a0] sm:$0xff]  ;;  %1797 = vmatpush2.bf16.msra.mxu0 %v4585_v7  ;;  %v355_v62 = vld [vmem:[#allocation5 + $0x508] sm:$0xff]  ;;  %v4667_v1 = vcombine.low %v363_v54, %v367_v55 }
  0x7b   :  { %v402_v5 = vld [vmem:[#allocation5 + $0x680] sm:$0xff]  ;;  %v4578_v9 = vcombine.high %v274_v3, %v278_v4  ;;  %1839 = vmatprep.subr.bf16.mxu1 %v4714_v2  ;;  %v4577_v18 = vcombine.low %v274_v3, %v278_v4  ;;  %v359_v63 = vld [vmem:[#allocation5 + $0x528] sm:$0xff]  ;;  %v4532_v2 = vcombine.high %v227_v60, %v231_v61 }
  0x7c   :  { %v406_v6 = vld [vmem:[#allocation5 + $0x6a0] sm:$0xff]  ;;  %v219_v3 = vld [vmem:[#allocation5 + $0xc8] sm:$0xff] }
  0x7d   :  { %v4706_v10 = vcombine.high %v402_v5, %v406_v6  ;;  %v266_v11 = vld [vmem:[#allocation5 + $0x240] sm:$0xff]  ;;  %1840 = vmatpush2.bf16.msra.mxu1 %v4713_v8  ;;  %1798 = vmatprep.subr.bf16.mxu0 %v4578_v9  ;;  %v4705_v19 = vcombine.low %v402_v5, %v406_v6  ;;  %v223_v4 = vld [vmem:[#allocation5 + $0xe8] sm:$0xff]  ;;  %v4660_v6 = vcombine.high %v355_v62, %v359_v63 }
  0x7e   :  { %v270_v15 = vld [vmem:[#allocation5 + $0x260] sm:$0xff]  ;;  %1799 = vmatpush2.bf16.msra.mxu0 %v4577_v18  ;;  %v347_v5 = vld [vmem:[#allocation5 + $0x4c8] sm:$0xff]  ;;  %v4531_v8 = vcombine.low %v227_v60, %v231_v61  ;;  %v4659_v9 = vcombine.low %v355_v62, %v359_v63 }
  0x7f   :  { %v394_v16 = vld [vmem:[#allocation5 + $0x640] sm:$0xff]  ;;  %v4570_v23 = vcombine.high %v266_v11, %v270_v15  ;;  %1841 = vmatprep.subr.bf16.mxu1 %v4706_v10  ;;  %v4569_v31 = vcombine.low %v266_v11, %v270_v15  ;;  %v351_v7 = vld [vmem:[#allocation5 + $0x4e8] sm:$0xff]  ;;  %v4524_v10 = vcombine.high %v219_v3, %v223_v4 }
  0x80   :  { %v398_v17 = vld [vmem:[#allocation5 + $0x660] sm:$0xff]  ;;  %v211_v11 = vld [vmem:[#allocation5 + $0x88] sm:$0xff] }
  0x81   :  { %v4698_v24 = vcombine.high %v394_v16, %v398_v17  ;;  %v258_v27 = vld [vmem:[#allocation5 + $0x200] sm:$0xff]  ;;  %1842 = vmatpush2.bf16.msra.mxu1 %v4705_v19  ;;  %1800 = vmatprep.subr.bf16.mxu0 %v4570_v23  ;;  %v4697_v32 = vcombine.low %v394_v16, %v398_v17  ;;  %v215_v15 = vld [vmem:[#allocation5 + $0xa8] sm:$0xff]  ;;  %v4652_v17 = vcombine.high %v347_v5, %v351_v7 }
  0x82   :  { %v262_v28 = vld [vmem:[#allocation5 + $0x220] sm:$0xff]  ;;  %1801 = vmatpush2.bf16.msra.mxu0 %v4569_v31  ;;  %v339_v16 = vld [vmem:[#allocation5 + $0x488] sm:$0xff]  ;;  %v4523_v19 = vcombine.low %v219_v3, %v223_v4  ;;  %v4651_v23 = vcombine.low %v347_v5, %v351_v7 }
  0x83   :  { %v386_v29 = vld [vmem:[#allocation5 + $0x600] sm:$0xff]  ;;  %v4562_v33 = vcombine.high %v258_v27, %v262_v28  ;;  %1843 = vmatprep.subr.bf16.mxu1 %v4698_v24  ;;  %v4561_v43 = vcombine.low %v258_v27, %v262_v28  ;;  %v343_v18 = vld [vmem:[#allocation5 + $0x4a8] sm:$0xff]  ;;  %v4516_v24 = vcombine.high %v211_v11, %v215_v15 }
  0x84   :  { %v390_v30 = vld [vmem:[#allocation5 + $0x620] sm:$0xff]  ;;  %v203_v27 = vld [vmem:[#allocation5 + $0x48] sm:$0xff] }
  0x85   :  { %v4690_v34 = vcombine.high %v386_v29, %v390_v30  ;;  %1844 = vmatpush2.bf16.msra.mxu1 %v4697_v32  ;;  %1802 = vmatprep.subr.bf16.mxu0 %v4562_v33  ;;  %v4689_v46 = vcombine.low %v386_v29, %v390_v30  ;;  %v207_v28 = vld [vmem:[#allocation5 + $0x68] sm:$0xff]  ;;  %v4644_v30 = vcombine.high %v339_v16, %v343_v18 }
  0x86   :  { %1803 = vmatpush2.bf16.msra.mxu0 %v4561_v43  ;;  %v331_v29 = vld [vmem:[#allocation5 + $0x448] sm:$0xff]  ;;  %v4515_v32 = vcombine.low %v211_v11, %v215_v15  ;;  %v4643_v33 = vcombine.low %v339_v16, %v343_v18  ;;  %v4507_v42 = vcombine.low %v203_v27, %v207_v28 }
  0x87   :  { %1845 = vmatprep.subr.bf16.mxu1 %v4690_v34  ;;  %1858 = vmatprep.subr.bf16.mxu0 %v4556_v47  ;;  %v335_v31 = vld [vmem:[#allocation5 + $0x468] sm:$0xff]  ;;  %v4508_v34 = vcombine.high %v203_v27, %v207_v28 }
  0x88   :  { %v195_v35 = vld [vmem:[#allocation5 + $0x8] sm:$0xff]  ;;  %v4636_v40 = vcombine.high %v331_v29, %v335_v31  ;;  %v4635_v43 = vcombine.low %v331_v29, %v335_v31 }
  0x89   :  { %1846 = vmatpush2.bf16.msra.mxu1 %v4689_v46  ;;  %1805 = vmatmul.mubr.bf16.vlgmr.msra.gmra.mxu0 %v5788_v49  ;;  %v199_v37 = vld [vmem:[#allocation5 + $0x28] sm:$0xff] }
  0x8a   :  { %1901 = vmatprep.subr.bf16.mxu1 %v4684_v48  ;;  %1859 = vmatpush1.bf16.msra.mxu0 %v4555_v51  ;;  %v323_v39 = vld [vmem:[#allocation5 + $0x408] sm:$0xff]  ;;  %v4500_v44 = vcombine.high %v195_v35, %v199_v37  ;;  %v4499_v13 = vcombine.low %v195_v35, %v199_v37 }
  0x8b   :  { %1860 = vmatprep.subr.bf16.mxu0 %v4548_v22  ;;  %1890 = vmatprep.mubr.bf16.mxu0 %v5774_v36  ;;  %v327_v41 = vld [vmem:[#allocation5 + $0x428] sm:$0xff] }
  0x8c   :  { %1848 = vmatmul.mubr.bf16.vlgmr.msra.gmra.mxu1 %v5790_v50  ;;  %v315_v45 = vld [vmem:[#allocation5 + $0x3c8] sm:$0xff]  ;;  %v4628_v48 = vcombine.high %v323_v39, %v327_v41  ;;  %v4627_v14 = vcombine.low %v323_v39, %v327_v41 }
  0x8d   :  { %1902 = vmatpush1.bf16.msra.mxu1 %v4683_v21  ;;  %1933 = vmatprep.mubr.bf16.mxu1 %v5776_v38  ;;  %v319_v46 = vld [vmem:[#allocation5 + $0x3e8] sm:$0xff] }
  0x8e   :  { %1903 = vmatprep.subr.bf16.mxu1 %v4676_v25  ;;  %1861 = vmatpush1.bf16.msra.mxu0 %v4547_v56  ;;  %v443_v47 = vld [vmem:[#allocation5 + $0x7c8] sm:$0xff]  ;;  %v4620_v20 = vcombine.high %v315_v45, %v319_v46  ;;  %v4619_v53 = vcombine.low %v315_v45, %v319_v46 }
  0x8f   :  { %1862 = vmatprep.subr.bf16.mxu0 %v4540_v58  ;;  %v447_v12 = vld [vmem:[#allocation5 + $0x7e8] sm:$0xff] }
  0x90   :  { %v307_v51 = vld [vmem:[#allocation5 + $0x388] sm:$0xff]  ;;  %v4748_v25 = vcombine.high %v443_v47, %v447_v12  ;;  %v4747_v54 = vcombine.low %v443_v47, %v447_v12 }
  0x91   :  { %1904 = vmatpush1.bf16.msra.mxu1 %v4675_v57  ;;  %v311_v21 = vld [vmem:[#allocation5 + $0x3a8] sm:$0xff] }
  0x92   :  { %1905 = vmatprep.subr.bf16.mxu1 %v4668_v59  ;;  %1863 = vmatpush1.bf16.msra.mxu0 %v4539_v0  ;;  %v435_v22 = vld [vmem:[#allocation5 + $0x788] sm:$0xff]  ;;  %v4612_v55 = vcombine.high %v307_v51, %v311_v21  ;;  %v4611_v61 = vcombine.low %v307_v51, %v311_v21  ;;  %v384_v21 = vld [vmem:[#allocation5 + $0x5f0] sm:$0xff] }
  0x93   :  { %1864 = vmatprep.subr.bf16.mxu0 %v4532_v2  ;;  %v439_v26 = vld [vmem:[#allocation5 + $0x7a8] sm:$0xff] }
  0x94   :  { %v299_v56 = vld [vmem:[#allocation5 + $0x348] sm:$0xff]  ;;  %v4740_v59 = vcombine.high %v435_v22, %v439_v26  ;;  %v4739_v62 = vcombine.low %v435_v22, %v439_v26 }
  0x95   :  { %1906 = vmatpush1.bf16.msra.mxu1 %v4667_v1  ;;  %v303_v57 = vld [vmem:[#allocation5 + $0x368] sm:$0xff] }
  0x96   :  { %1907 = vmatprep.subr.bf16.mxu1 %v4660_v6  ;;  %1865 = vmatpush1.bf16.msra.mxu0 %v4531_v8  ;;  %v427_v58 = vld [vmem:[#allocation5 + $0x748] sm:$0xff]  ;;  %v4604_v63 = vcombine.high %v299_v56, %v303_v57  ;;  %v4603_v5 = vcombine.low %v299_v56, %v303_v57  ;;  %v376_v57 = vld [vmem:[#allocation5 + $0x5b0] sm:$0xff] }
  0x97   :  { %1866 = vmatprep.subr.bf16.mxu0 %v4524_v10  ;;  %v431_v60 = vld [vmem:[#allocation5 + $0x768] sm:$0xff] }
  0x98   :  { %v291_v0 = vld [vmem:[#allocation5 + $0x308] sm:$0xff]  ;;  %v4732_v3 = vcombine.high %v427_v58, %v431_v60  ;;  %v4731_v6 = vcombine.low %v427_v58, %v431_v60 }
  0x99   :  { %1908 = vmatpush1.bf16.msra.mxu1 %v4659_v9  ;;  %v295_v1 = vld [vmem:[#allocation5 + $0x328] sm:$0xff] }
  0x9a   :  { %1909 = vmatprep.subr.bf16.mxu1 %v4652_v17  ;;  %1867 = vmatpush1.bf16.msra.mxu0 %v4523_v19  ;;  %v419_v2 = vld [vmem:[#allocation5 + $0x708] sm:$0xff]  ;;  %v4596_v7 = vcombine.high %v291_v0, %v295_v1  ;;  %v4595_v16 = vcombine.low %v291_v0, %v295_v1  ;;  %v364_v0 = vld [vmem:[#allocation5 + $0x550] sm:$0xff] }
  0x9b   :  { %1868 = vmatprep.subr.bf16.mxu0 %v4516_v24  ;;  %v423_v4 = vld [vmem:[#allocation5 + $0x728] sm:$0xff]  ;;  %v368_v1 = vld [vmem:[#allocation5 + $0x570] sm:$0xff] }
  0x9c   :  { %v283_v8 = vld [vmem:[#allocation5 + $0x2c8] sm:$0xff]  ;;  %v4724_v11 = vcombine.high %v419_v2, %v423_v4  ;;  %v4723_v17 = vcombine.low %v419_v2, %v423_v4  ;;  %v232_v4 = vld [vmem:[#allocation5 + $0x130] sm:$0xff] }
  0x9d   :  { %1910 = vmatpush1.bf16.msra.mxu1 %v4651_v23  ;;  %v287_v9 = vld [vmem:[#allocation5 + $0x2e8] sm:$0xff] }
  0x9e   :  { %1911 = vmatprep.subr.bf16.mxu1 %v4644_v30  ;;  %1869 = vmatpush1.bf16.msra.mxu0 %v4515_v32  ;;  %v411_v10 = vld [vmem:[#allocation5 + $0x6c8] sm:$0xff]  ;;  %v4588_v18 = vcombine.high %v283_v8, %v287_v9  ;;  %v4587_v29 = vcombine.low %v283_v8, %v287_v9  ;;  %v356_v8 = vld [vmem:[#allocation5 + $0x510] sm:$0xff] }
  0x9f   :  { %1870 = vmatprep.subr.bf16.mxu0 %v4508_v34  ;;  %v415_v15 = vld [vmem:[#allocation5 + $0x6e8] sm:$0xff]  ;;  %v360_v9 = vld [vmem:[#allocation5 + $0x530] sm:$0xff] }
  0xa0   :  { %v275_v19 = vld [vmem:[#allocation5 + $0x288] sm:$0xff]  ;;  %v4716_v27 = vcombine.high %v411_v10, %v415_v15  ;;  %v4715_v30 = vcombine.low %v411_v10, %v415_v15  ;;  %v224_v15 = vld [vmem:[#allocation5 + $0xf0] sm:$0xff] }
  0xa1   :  { %1912 = vmatpush1.bf16.msra.mxu1 %v4643_v33  ;;  %v279_v23 = vld [vmem:[#allocation5 + $0x2a8] sm:$0xff] }
  0xa2   :  { %1913 = vmatprep.subr.bf16.mxu1 %v4636_v40  ;;  %1871 = vmatpush1.bf16.msra.mxu0 %v4507_v42  ;;  %v403_v24 = vld [vmem:[#allocation5 + $0x688] sm:$0xff]  ;;  %v4580_v31 = vcombine.high %v275_v19, %v279_v23  ;;  %v4579_v39 = vcombine.low %v275_v19, %v279_v23  ;;  %v348_v19 = vld [vmem:[#allocation5 + $0x4d0] sm:$0xff] }
  0xa3   :  { %1872 = vmatprep.subr.bf16.mxu0 %v4500_v44  ;;  %v407_v28 = vld [vmem:[#allocation5 + $0x6a8] sm:$0xff]  ;;  %v352_v23 = vld [vmem:[#allocation5 + $0x4f0] sm:$0xff] }
  0xa4   :  { %v267_v32 = vld [vmem:[#allocation5 + $0x248] sm:$0xff]  ;;  %v4708_v35 = vcombine.high %v403_v24, %v407_v28  ;;  %v4707_v40 = vcombine.low %v403_v24, %v407_v28  ;;  %v216_v28 = vld [vmem:[#allocation5 + $0xb0] sm:$0xff] }
  0xa5   :  { %1914 = vmatpush1.bf16.msra.mxu1 %v4635_v43  ;;  %v271_v33 = vld [vmem:[#allocation5 + $0x268] sm:$0xff] }
  0xa6   :  { %1915 = vmatprep.subr.bf16.mxu1 %v4628_v48  ;;  %1873 = vmatpush1.bf16.msra.mxu0 %v4499_v13  ;;  %v395_v34 = vld [vmem:[#allocation5 + $0x648] sm:$0xff]  ;;  %v4572_v41 = vcombine.high %v267_v32, %v271_v33  ;;  %v4571_v47 = vcombine.low %v267_v32, %v271_v33  ;;  %v252_v13 = vld [vmem:[#allocation5 + $0x1d0] sm:$0xff] }
  0xa7   :  { %1874 = vmatprep.subr.bf16.mxu0 %v4620_v20  ;;  %v399_v37 = vld [vmem:[#allocation5 + $0x668] sm:$0xff]  ;;  %v380_v20 = vld [vmem:[#allocation5 + $0x5d0] sm:$0xff] }
  0xa8   :  { %v259_v42 = vld [vmem:[#allocation5 + $0x208] sm:$0xff]  ;;  %v4700_v45 = vcombine.high %v395_v34, %v399_v37  ;;  %v4699_v48 = vcombine.low %v395_v34, %v399_v37  ;;  %v4686_v56 = vcombine.high %v380_v20, %v384_v21  ;;  %v4685_v60 = vcombine.low %v380_v20, %v384_v21  ;;  %v340_v32 = vld [vmem:[#allocation5 + $0x490] sm:$0xff] }
  0xa9   :  { %1916 = vmatpush1.bf16.msra.mxu1 %v4627_v14  ;;  %v263_v43 = vld [vmem:[#allocation5 + $0x228] sm:$0xff]  ;;  %v256_v14 = vld [vmem:[#allocation5 + $0x1f0] sm:$0xff] }
  0xaa   :  { %1917 = vmatprep.subr.bf16.mxu1 %v4748_v25  ;;  %1875 = vmatpush2.bf16.msra.mxu0 %v4619_v53  ;;  %v387_v44 = vld [vmem:[#allocation5 + $0x608] sm:$0xff]  ;;  %v4564_v12 = vcombine.high %v259_v42, %v263_v43  ;;  %v4563_v22 = vcombine.low %v259_v42, %v263_v43  ;;  %v4558_v26 = vcombine.high %v252_v13, %v256_v14  ;;  %v244_v53 = vld [vmem:[#allocation5 + $0x190] sm:$0xff] }
  0xab   :  { %1876 = vmatprep.subr.bf16.mxu0 %v4612_v55  ;;  %v391_v46 = vld [vmem:[#allocation5 + $0x628] sm:$0xff]  ;;  %v372_v55 = vld [vmem:[#allocation5 + $0x590] sm:$0xff]  ;;  %v4557_v58 = vcombine.low %v252_v13, %v256_v14 }
  0xac   :  { %v4692_v51 = vcombine.high %v387_v44, %v391_v46  ;;  %v4691_v25 = vcombine.low %v387_v44, %v391_v46  ;;  %v344_v33 = vld [vmem:[#allocation5 + $0x4b0] sm:$0xff] }
  0xad   :  { %1918 = vmatpush2.bf16.msra.mxu1 %v4747_v54  ;;  %v248_v54 = vld [vmem:[#allocation5 + $0x1b0] sm:$0xff] }
  0xae   :  { %1919 = vmatprep.subr.bf16.mxu1 %v4740_v59  ;;  %1877 = vmatpush2.bf16.msra.mxu0 %v4611_v61  ;;  %v236_v59 = vld [vmem:[#allocation5 + $0x150] sm:$0xff]  ;;  %v4550_v61 = vcombine.high %v244_v53, %v248_v54  ;;  %v4549_v2 = vcombine.low %v244_v53, %v248_v54 }
  0xaf   :  { %1878 = vmatprep.subr.bf16.mxu0 %v4604_v63  ;;  %v4678_v63 = vcombine.high %v372_v55, %v376_v57  ;;  %v332_v42 = vld [vmem:[#allocation5 + $0x450] sm:$0xff] }
  0xb0   :  { %v336_v43 = vld [vmem:[#allocation5 + $0x470] sm:$0xff] }
  0xb1   :  { %1920 = vmatpush2.bf16.msra.mxu1 %v4739_v62  ;;  %v240_v62 = vld [vmem:[#allocation5 + $0x170] sm:$0xff]  ;;  %v4638_v14 = vcombine.high %v332_v42, %v336_v43 }
  0xb2   :  { %1921 = vmatprep.subr.bf16.mxu1 %v4732_v3  ;;  %1879 = vmatpush2.bf16.msra.mxu0 %v4603_v5  ;;  %v228_v3 = vld [vmem:[#allocation5 + $0x110] sm:$0xff]  ;;  %v4677_v5 = vcombine.low %v372_v55, %v376_v57  ;;  %v4541_v10 = vcombine.low %v236_v59, %v240_v62 }
  0xb3   :  { %1880 = vmatprep.subr.bf16.mxu0 %v4596_v7  ;;  %v4670_v7 = vcombine.high %v364_v0, %v368_v1  ;;  %v4533_v24 = vcombine.low %v228_v3, %v232_v4  ;;  %v200_v46 = vld [vmem:[#allocation5 + $0x30] sm:$0xff] }
  0xb4   :  { %v328_v13 = vld [vmem:[#allocation5 + $0x430] sm:$0xff] }
  0xb5   :  { %1922 = vmatpush2.bf16.msra.mxu1 %v4731_v6  ;;  %v4542_v6 = vcombine.high %v236_v59, %v240_v62  ;;  %v320_v21 = vld [vmem:[#allocation5 + $0x3f0] sm:$0xff] }
  0xb6   :  { %1923 = vmatprep.subr.bf16.mxu1 %v4724_v11  ;;  %1881 = vmatpush2.bf16.msra.mxu0 %v4595_v16  ;;  %v220_v11 = vld [vmem:[#allocation5 + $0xd0] sm:$0xff]  ;;  %v4669_v16 = vcombine.low %v364_v0, %v368_v1 }
  0xb7   :  { %1882 = vmatprep.subr.bf16.mxu0 %v4588_v18  ;;  %v4662_v18 = vcombine.high %v356_v8, %v360_v9  ;;  %v4525_v34 = vcombine.low %v220_v11, %v224_v15  ;;  %v448_v53 = vld [vmem:[#allocation5 + $0x7f0] sm:$0xff] }
  0xb8   :  { %v312_v57 = vld [vmem:[#allocation5 + $0x3b0] sm:$0xff] }
  0xb9   :  { %1924 = vmatpush2.bf16.msra.mxu1 %v4723_v17  ;;  %v4534_v17 = vcombine.high %v228_v3, %v232_v4  ;;  %v300_v0 = vld [vmem:[#allocation5 + $0x350] sm:$0xff] }
  0xba   :  { %1925 = vmatprep.subr.bf16.mxu1 %v4716_v27  ;;  %1883 = vmatpush2.bf16.msra.mxu0 %v4587_v29  ;;  %v212_v27 = vld [vmem:[#allocation5 + $0x90] sm:$0xff]  ;;  %v4661_v29 = vcombine.low %v356_v8, %v360_v9 }
  0xbb   :  { %1884 = vmatprep.subr.bf16.mxu0 %v4580_v31  ;;  %v4654_v31 = vcombine.high %v348_v19, %v352_v23  ;;  %v4518_v37 = vcombine.high %v212_v27, %v216_v28  ;;  %v4517_v44 = vcombine.low %v212_v27, %v216_v28  ;;  %v304_v1 = vld [vmem:[#allocation5 + $0x370] sm:$0xff] }
  0xbc   :  { %v428_v4 = vld [vmem:[#allocation5 + $0x750] sm:$0xff] }
  0xbd   :  { %1926 = vmatpush2.bf16.msra.mxu1 %v4715_v30  ;;  %v4526_v30 = vcombine.high %v220_v11, %v224_v15  ;;  %v292_v8 = vld [vmem:[#allocation5 + $0x310] sm:$0xff]  ;;  %v4606_v11 = vcombine.high %v300_v0, %v304_v1 }
  0xbe   :  { %1927 = vmatprep.subr.bf16.mxu1 %v4708_v35  ;;  %1885 = vmatpush2.bf16.msra.mxu0 %v4579_v39  ;;  %v4653_v35 = vcombine.low %v348_v19, %v352_v23  ;;  %v4646_v39 = vcombine.high %v340_v32, %v344_v33  ;;  %v296_v9 = vld [vmem:[#allocation5 + $0x330] sm:$0xff] }
  0xbf   :  { %1886 = vmatprep.subr.bf16.mxu0 %v4572_v41  ;;  %v208_v41 = vld [vmem:[#allocation5 + $0x70] sm:$0xff]  ;;  %v4598_v27 = vcombine.high %v292_v8, %v296_v9 }
  0xc0   :  { %v420_v15 = vld [vmem:[#allocation5 + $0x710] sm:$0xff] }
  0xc1   :  { %1928 = vmatpush2.bf16.msra.mxu1 %v4707_v40  ;;  %v204_v40 = vld [vmem:[#allocation5 + $0x50] sm:$0xff] }
  0xc2   :  { %1929 = vmatprep.subr.bf16.mxu1 %v4700_v45  ;;  %1887 = vmatpush2.bf16.msra.mxu0 %v4571_v47  ;;  %v196_v45 = vld [vmem:[#allocation5 + $0x10] sm:$0xff]  ;;  %v4645_v47 = vcombine.low %v340_v32, %v344_v33  ;;  %v4509_v20 = vcombine.low %v204_v40, %v208_v41 }
  0xc3   :  { %1888 = vmatprep.subr.bf16.mxu0 %v4564_v12  ;;  %v324_v12 = vld [vmem:[#allocation5 + $0x410] sm:$0xff]  ;;  %v4501_v55 = vcombine.low %v196_v45, %v200_v46 }
  0xc4   :  { %v4630_v54 = vcombine.high %v324_v12, %v328_v13  ;;  %v284_v19 = vld [vmem:[#allocation5 + $0x2d0] sm:$0xff] }
  0xc5   :  { %1930 = vmatpush2.bf16.msra.mxu1 %v4699_v48  ;;  %v4510_v48 = vcombine.high %v204_v40, %v208_v41  ;;  %v288_v23 = vld [vmem:[#allocation5 + $0x2f0] sm:$0xff] }
  0xc6   :  { %1931 = vmatprep.subr.bf16.mxu1 %v4692_v51  ;;  %1889 = vmatpush2.bf16.msra.mxu0 %v4563_v22  ;;  %v316_v51 = vld [vmem:[#allocation5 + $0x3d0] sm:$0xff]  ;;  %v4637_v22 = vcombine.low %v332_v42, %v336_v43  ;;  %v4589_v41 = vcombine.low %v284_v19, %v288_v23 }
  0xc7   :  { %1944 = vmatprep.subr.bf16.mxu0 %v4558_v26  ;;  %v444_v26 = vld [vmem:[#allocation5 + $0x7d0] sm:$0xff]  ;;  %v4622_v59 = vcombine.high %v316_v51, %v320_v21 }
  0xc8   :  { %v4750_v62 = vcombine.high %v444_v26, %v448_v53  ;;  %v412_v28 = vld [vmem:[#allocation5 + $0x6d0] sm:$0xff] }
  0xc9   :  { %1932 = vmatpush2.bf16.msra.mxu1 %v4691_v25  ;;  %1891 = vmatmul.mubr.bf16.vlgmr.msra.gmra.mxu0 %v5788_v49  ;;  %v4502_v25 = vcombine.high %v196_v45, %v200_v46  ;;  %v276_v32 = vld [vmem:[#allocation5 + $0x290] sm:$0xff] }
  0xca   :  { %1987 = vmatprep.subr.bf16.mxu1 %v4686_v56  ;;  %1945 = vmatpush1.bf16.msra.mxu0 %v4557_v58  ;;  %v308_v56 = vld [vmem:[#allocation5 + $0x390] sm:$0xff]  ;;  %v4629_v58 = vcombine.low %v324_v12, %v328_v13 }
  0xcb   :  { %1946 = vmatprep.subr.bf16.mxu0 %v4550_v61  ;;  %1976 = vmatprep.mubr.bf16.mxu0 %v5774_v36  ;;  %v440_v61 = vld [vmem:[#allocation5 + $0x7b0] sm:$0xff]  ;;  %v4614_v3 = vcombine.high %v308_v56, %v312_v57 }
  0xcc   :  { %1934 = vmatmul.mubr.bf16.vlgmr.msra.gmra.mxu1 %v5790_v50  ;;  %v280_v33 = vld [vmem:[#allocation5 + $0x2b0] sm:$0xff] }
  0xcd   :  { %1988 = vmatpush1.bf16.msra.mxu1 %v4685_v60  ;;  %2019 = vmatprep.mubr.bf16.mxu1 %v5776_v38  ;;  %v436_v60 = vld [vmem:[#allocation5 + $0x790] sm:$0xff]  ;;  %v4582_v45 = vcombine.high %v276_v32, %v280_v33  ;;  %v4581_v12 = vcombine.low %v276_v32, %v280_v33 }
  0xce   :  { %1989 = vmatprep.subr.bf16.mxu1 %v4678_v63  ;;  %1947 = vmatpush1.bf16.msra.mxu0 %v4549_v2  ;;  %v4621_v63 = vcombine.low %v316_v51, %v320_v21  ;;  %v4749_v2 = vcombine.low %v444_v26, %v448_v53  ;;  %v268_v42 = vld [vmem:[#allocation5 + $0x250] sm:$0xff]  ;;  %v253_v53 = vld [vmem:[#allocation5 + $0x1d8] sm:$0xff] }
  0xcf   :  { %1948 = vmatprep.subr.bf16.mxu0 %v4542_v6  ;;  %v4742_v6 = vcombine.high %v436_v60, %v440_v61  ;;  %v272_v43 = vld [vmem:[#allocation5 + $0x270] sm:$0xff] }
  0xd0   :  { %v396_v46 = vld [vmem:[#allocation5 + $0x650] sm:$0xff]  ;;  %v4574_v51 = vcombine.high %v268_v42, %v272_v43  ;;  %v4573_v26 = vcombine.low %v268_v42, %v272_v43  ;;  %v341_v42 = vld [vmem:[#allocation5 + $0x498] sm:$0xff] }
  0xd1   :  { %1990 = vmatpush1.bf16.msra.mxu1 %v4677_v5  ;;  %v432_v5 = vld [vmem:[#allocation5 + $0x770] sm:$0xff]  ;;  %v345_v43 = vld [vmem:[#allocation5 + $0x4b8] sm:$0xff] }
  0xd2   :  { %1991 = vmatprep.subr.bf16.mxu1 %v4670_v7  ;;  %1949 = vmatpush1.bf16.msra.mxu0 %v4541_v10  ;;  %v4613_v7 = vcombine.low %v308_v56, %v312_v57  ;;  %v4741_v10 = vcombine.low %v436_v60, %v440_v61  ;;  %v260_v13 = vld [vmem:[#allocation5 + $0x210] sm:$0xff]  ;;  %v381_v57 = vld [vmem:[#allocation5 + $0x5d8] sm:$0xff] }
  0xd3   :  { %1950 = vmatprep.subr.bf16.mxu0 %v4534_v17  ;;  %v4734_v17 = vcombine.high %v428_v4, %v432_v5  ;;  %v388_v21 = vld [vmem:[#allocation5 + $0x610] sm:$0xff]  ;;  %v245_v61 = vld [vmem:[#allocation5 + $0x198] sm:$0xff] }
  0xd5   :  { %1992 = vmatpush1.bf16.msra.mxu1 %v4669_v16  ;;  %v424_v16 = vld [vmem:[#allocation5 + $0x730] sm:$0xff] }
  0xd6   :  { %1993 = vmatprep.subr.bf16.mxu1 %v4662_v18  ;;  %1951 = vmatpush1.bf16.msra.mxu0 %v4533_v24  ;;  %v4605_v18 = vcombine.low %v300_v0, %v304_v1  ;;  %v4733_v24 = vcombine.low %v428_v4, %v432_v5  ;;  %v373_v1 = vld [vmem:[#allocation5 + $0x598] sm:$0xff] }
  0xd7   :  { %1952 = vmatprep.subr.bf16.mxu0 %v4526_v30  ;;  %v4726_v30 = vcombine.high %v420_v15, %v424_v16  ;;  %v237_v5 = vld [vmem:[#allocation5 + $0x158] sm:$0xff] }
  0xd9   :  { %1994 = vmatpush1.bf16.msra.mxu1 %v4661_v29  ;;  %v416_v29 = vld [vmem:[#allocation5 + $0x6f0] sm:$0xff] }
  0xda   :  { %1995 = vmatprep.subr.bf16.mxu1 %v4654_v31  ;;  %1953 = vmatpush1.bf16.msra.mxu0 %v4525_v34  ;;  %v4597_v31 = vcombine.low %v292_v8, %v296_v9  ;;  %v4725_v34 = vcombine.low %v420_v15, %v424_v16  ;;  %v4718_v40 = vcombine.high %v412_v28, %v416_v29  ;;  %v229_v16 = vld [vmem:[#allocation5 + $0x118] sm:$0xff] }
  0xdb   :  { %1954 = vmatprep.subr.bf16.mxu0 %v4518_v37  ;;  %v404_v37 = vld [vmem:[#allocation5 + $0x690] sm:$0xff] }
  0xdd   :  { %1996 = vmatpush1.bf16.msra.mxu1 %v4653_v35  ;;  %v4590_v35 = vcombine.high %v284_v19, %v288_v23 }
  0xde   :  { %1997 = vmatprep.subr.bf16.mxu1 %v4646_v39  ;;  %1955 = vmatpush1.bf16.msra.mxu0 %v4517_v44  ;;  %v408_v39 = vld [vmem:[#allocation5 + $0x6b0] sm:$0xff]  ;;  %v4717_v44 = vcombine.low %v412_v28, %v416_v29  ;;  %v221_v29 = vld [vmem:[#allocation5 + $0xd8] sm:$0xff] }
  0xdf   :  { %1956 = vmatprep.subr.bf16.mxu0 %v4510_v48  ;;  %v4710_v48 = vcombine.high %v404_v37, %v408_v39 }
  0xe1   :  { %1998 = vmatpush1.bf16.msra.mxu1 %v4645_v47  ;;  %v400_v47 = vld [vmem:[#allocation5 + $0x670] sm:$0xff] }
  0xe2   :  { %1999 = vmatprep.subr.bf16.mxu1 %v4638_v14  ;;  %1957 = vmatpush1.bf16.msra.mxu0 %v4509_v20  ;;  %v264_v14 = vld [vmem:[#allocation5 + $0x230] sm:$0xff]  ;;  %v4709_v20 = vcombine.low %v404_v37, %v408_v39  ;;  %v213_v39 = vld [vmem:[#allocation5 + $0x98] sm:$0xff] }
  0xe3   :  { %1958 = vmatprep.subr.bf16.mxu0 %v4502_v25  ;;  %v4702_v25 = vcombine.high %v396_v46, %v400_v47  ;;  %v4566_v56 = vcombine.high %v260_v13, %v264_v14  ;;  %v4565_v60 = vcombine.low %v260_v13, %v264_v14  ;;  %v333_v13 = vld [vmem:[#allocation5 + $0x458] sm:$0xff] }
  0xe4   :  { %v337_v14 = vld [vmem:[#allocation5 + $0x478] sm:$0xff] }
  0xe5   :  { %2000 = vmatpush1.bf16.msra.mxu1 %v4637_v22  ;;  %v392_v22 = vld [vmem:[#allocation5 + $0x630] sm:$0xff] }
  0xe6   :  { %2001 = vmatprep.subr.bf16.mxu1 %v4630_v54  ;;  %1959 = vmatpush1.bf16.msra.mxu0 %v4501_v55  ;;  %v257_v54 = vld [vmem:[#allocation5 + $0x1f8] sm:$0xff]  ;;  %v4701_v55 = vcombine.low %v396_v46, %v400_v47 }
  0xe7   :  { %1960 = vmatprep.subr.bf16.mxu0 %v4622_v59  ;;  %v4694_v59 = vcombine.high %v388_v21, %v392_v22  ;;  %v4560_v0 = vcombine.high %v253_v53, %v257_v54  ;;  %v4559_v4 = vcombine.low %v253_v53, %v257_v54  ;;  %v205_v47 = vld [vmem:[#allocation5 + $0x58] sm:$0xff]  ;;  %v4640_v53 = vcombine.high %v333_v13, %v337_v14 }
  0xe8   :  { %v329_v54 = vld [vmem:[#allocation5 + $0x438] sm:$0xff] }
  0xe9   :  { %2002 = vmatpush1.bf16.msra.mxu1 %v4629_v58  ;;  %v385_v58 = vld [vmem:[#allocation5 + $0x5f8] sm:$0xff] }
  0xea   :  { %2003 = vmatprep.subr.bf16.mxu1 %v4750_v62  ;;  %1961 = vmatpush2.bf16.msra.mxu0 %v4621_v63  ;;  %v249_v62 = vld [vmem:[#allocation5 + $0x1b8] sm:$0xff]  ;;  %v4693_v63 = vcombine.low %v388_v21, %v392_v22 }
  0xeb   :  { %1962 = vmatprep.subr.bf16.mxu0 %v4614_v3  ;;  %v4688_v3 = vcombine.high %v381_v57, %v385_v58  ;;  %v4552_v8 = vcombine.high %v245_v61, %v249_v62  ;;  %v4551_v15 = vcombine.low %v245_v61, %v249_v62  ;;  %v197_v22 = vld [vmem:[#allocation5 + $0x18] sm:$0xff] }
  0xec   :  { %v449_v61 = vld [vmem:[#allocation5 + $0x7f8] sm:$0xff] }
  0xed   :  { %2004 = vmatpush2.bf16.msra.mxu1 %v4749_v2  ;;  %v377_v2 = vld [vmem:[#allocation5 + $0x5b8] sm:$0xff] }
  0xee   :  { %2005 = vmatprep.subr.bf16.mxu1 %v4742_v6  ;;  %1963 = vmatpush2.bf16.msra.mxu0 %v4613_v7  ;;  %v241_v6 = vld [vmem:[#allocation5 + $0x178] sm:$0xff]  ;;  %v4687_v7 = vcombine.low %v381_v57, %v385_v58  ;;  %v4680_v9 = vcombine.high %v373_v1, %v377_v2  ;;  %v4639_v58 = vcombine.low %v333_v13, %v337_v14 }
  0xef   :  { %1964 = vmatprep.subr.bf16.mxu0 %v4606_v11  ;;  %v369_v11 = vld [vmem:[#allocation5 + $0x578] sm:$0xff]  ;;  %v4544_v19 = vcombine.high %v237_v5, %v241_v6  ;;  %v4543_v28 = vcombine.low %v237_v5, %v241_v6 }
  0xf0   :  { %v321_v57 = vld [vmem:[#allocation5 + $0x3f8] sm:$0xff] }
  0xf1   :  { %2006 = vmatpush2.bf16.msra.mxu1 %v4741_v10  ;;  %v365_v10 = vld [vmem:[#allocation5 + $0x558] sm:$0xff] }
  0xf2   :  { %2007 = vmatprep.subr.bf16.mxu1 %v4734_v17  ;;  %1965 = vmatpush2.bf16.msra.mxu0 %v4605_v18  ;;  %v233_v17 = vld [vmem:[#allocation5 + $0x138] sm:$0xff]  ;;  %v4679_v18 = vcombine.low %v373_v1, %v377_v2  ;;  %v4672_v23 = vcombine.high %v365_v10, %v369_v11 }
  0xf3   :  { %1966 = vmatprep.subr.bf16.mxu0 %v4598_v27  ;;  %v361_v27 = vld [vmem:[#allocation5 + $0x538] sm:$0xff]  ;;  %v4536_v32 = vcombine.high %v229_v16, %v233_v17  ;;  %v4535_v37 = vcombine.low %v229_v16, %v233_v17 }
  0xf4   :  { %v313_v1 = vld [vmem:[#allocation5 + $0x3b8] sm:$0xff] }
  0xf5   :  { %2008 = vmatpush2.bf16.msra.mxu1 %v4733_v24  ;;  %v357_v24 = vld [vmem:[#allocation5 + $0x518] sm:$0xff] }
  0xf6   :  { %2009 = vmatprep.subr.bf16.mxu1 %v4726_v30  ;;  %1967 = vmatpush2.bf16.msra.mxu0 %v4597_v31  ;;  %v225_v30 = vld [vmem:[#allocation5 + $0xf8] sm:$0xff]  ;;  %v4671_v31 = vcombine.low %v365_v10, %v369_v11  ;;  %v4664_v33 = vcombine.high %v357_v24, %v361_v27 }
  0xf7   :  { %1968 = vmatprep.subr.bf16.mxu0 %v4590_v35  ;;  %v353_v35 = vld [vmem:[#allocation5 + $0x4f8] sm:$0xff] }
  0xf8   :  { %v441_v5 = vld [vmem:[#allocation5 + $0x7b8] sm:$0xff] }
  0xf9   :  { %2010 = vmatpush2.bf16.msra.mxu1 %v4725_v34  ;;  %v349_v34 = vld [vmem:[#allocation5 + $0x4d8] sm:$0xff] }
  0xfa   :  { %2011 = vmatprep.subr.bf16.mxu1 %v4718_v40  ;;  %1969 = vmatpush2.bf16.msra.mxu0 %v4589_v41  ;;  %v217_v40 = vld [vmem:[#allocation5 + $0xb8] sm:$0xff]  ;;  %v4656_v41 = vcombine.high %v349_v34, %v353_v35 }
  0xfb   :  { %1970 = vmatprep.subr.bf16.mxu0 %v4582_v45  ;;  %v4655_v45 = vcombine.low %v349_v34, %v353_v35  ;;  %v4520_v46 = vcombine.high %v213_v39, %v217_v40  ;;  %v301_v11 = vld [vmem:[#allocation5 + $0x358] sm:$0xff] }
  0xfc   :  { %v429_v16 = vld [vmem:[#allocation5 + $0x758] sm:$0xff] }
  0xfd   :  { %2012 = vmatpush2.bf16.msra.mxu1 %v4717_v44  ;;  %v4527_v44 = vcombine.low %v221_v29, %v225_v30  ;;  %v433_v17 = vld [vmem:[#allocation5 + $0x778] sm:$0xff] }
  0xfe   :  { %2013 = vmatprep.subr.bf16.mxu1 %v4710_v48  ;;  %1971 = vmatpush2.bf16.msra.mxu0 %v4581_v12  ;;  %v4648_v48 = vcombine.high %v341_v42, %v345_v43  ;;  %v209_v12 = vld [vmem:[#allocation5 + $0x78] sm:$0xff] }
  0xff   :  { %1972 = vmatprep.subr.bf16.mxu0 %v4574_v51  ;;  %v4647_v51 = vcombine.low %v341_v42, %v345_v43  ;;  %v4512_v21 = vcombine.high %v205_v47, %v209_v12  ;;  %v285_v35 = vld [vmem:[#allocation5 + $0x2d8] sm:$0xff] }
 0x100   :  { %v277_v43 = vld [vmem:[#allocation5 + $0x298] sm:$0xff] }
 0x101   :  { %2014 = vmatpush2.bf16.msra.mxu1 %v4709_v20  ;;  %v4519_v20 = vcombine.low %v213_v39, %v217_v40  ;;  %v413_v39 = vld [vmem:[#allocation5 + $0x6d8] sm:$0xff] }
 0x102   :  { %2015 = vmatprep.subr.bf16.mxu1 %v4702_v25  ;;  %1973 = vmatpush2.bf16.msra.mxu0 %v4573_v26  ;;  %v201_v25 = vld [vmem:[#allocation5 + $0x38] sm:$0xff] }
 0x103   :  { %1974 = vmatprep.subr.bf16.mxu0 %v4566_v56  ;;  %v325_v26 = vld [vmem:[#allocation5 + $0x418] sm:$0xff] }
 0x104   :  { %v317_v56 = vld [vmem:[#allocation5 + $0x3d8] sm:$0xff]  ;;  %v4632_v62 = vcombine.high %v325_v26, %v329_v54  ;;  %v4631_v2 = vcombine.low %v325_v26, %v329_v54 }
 0x105   :  { %2016 = vmatpush2.bf16.msra.mxu1 %v4701_v55  ;;  %v4511_v55 = vcombine.low %v205_v47, %v209_v12  ;;  %v417_v40 = vld [vmem:[#allocation5 + $0x6f8] sm:$0xff] }
 0x106   :  { %2017 = vmatprep.subr.bf16.mxu1 %v4694_v59  ;;  %1975 = vmatpush2.bf16.msra.mxu0 %v4565_v60  ;;  %v4504_v59 = vcombine.high %v197_v22, %v201_v25  ;;  %v445_v60 = vld [vmem:[#allocation5 + $0x7d8] sm:$0xff]  ;;  %v4720_v42 = vcombine.high %v413_v39, %v417_v40 }
 0x107   :  { %2030 = vmatprep.subr.bf16.mxu0 %v4560_v0  ;;  %v309_v0 = vld [vmem:[#allocation5 + $0x398] sm:$0xff]  ;;  %v4752_v6 = vcombine.high %v445_v60, %v449_v61 }
 0x108   :  { %v269_v14 = vld [vmem:[#allocation5 + $0x258] sm:$0xff] }
 0x109   :  { %2018 = vmatpush2.bf16.msra.mxu1 %v4693_v63  ;;  %1977 = vmatmul.mubr.bf16.vlgmr.msra.gmra.mxu0 %v5788_v49  ;;  %v4503_v63 = vcombine.low %v197_v22, %v201_v25  ;;  %v261_v54 = vld [vmem:[#allocation5 + $0x218] sm:$0xff] }
 0x10a   :  { %2073 = vmatprep.subr.bf16.mxu1 %v4688_v3  ;;  %2031 = vmatpush1.bf16.msra.mxu0 %v4559_v4  ;;  %v4624_v3 = vcombine.high %v317_v56, %v321_v57  ;;  %v437_v4 = vld [vmem:[#allocation5 + $0x798] sm:$0xff] }
 0x10b   :  { %2032 = vmatprep.subr.bf16.mxu0 %v4552_v8  ;;  %2062 = vmatprep.mubr.bf16.mxu0 %v5774_v36  ;;  %v4663_v36 = vcombine.low %v357_v24, %v361_v27  ;;  %v4751_v8 = vcombine.low %v445_v60, %v449_v61  ;;  %v4744_v10 = vcombine.high %v437_v4, %v441_v5  ;;  %v293_v27 = vld [vmem:[#allocation5 + $0x318] sm:$0xff] }
 0x10c   :  { %2020 = vmatmul.mubr.bf16.vlgmr.msra.gmra.mxu1 %v5790_v50  ;;  %v4736_v24 = vcombine.high %v429_v16, %v433_v17 }
 0x10d   :  { %2074 = vmatpush1.bf16.msra.mxu1 %v4687_v7  ;;  %2105 = vmatprep.mubr.bf16.mxu1 %v5776_v38  ;;  %v4528_v38 = vcombine.high %v221_v29, %v225_v30  ;;  %v4623_v7 = vcombine.low %v317_v56, %v321_v57  ;;  %v421_v29 = vld [vmem:[#allocation5 + $0x718] sm:$0xff] }
 0x10e   :  { %2075 = vmatprep.subr.bf16.mxu1 %v4680_v9  ;;  %2033 = vmatpush1.bf16.msra.mxu0 %v4551_v15  ;;  %v4616_v9 = vcombine.high %v309_v0, %v313_v1  ;;  %v305_v15 = vld [vmem:[#allocation5 + $0x378] sm:$0xff] }
 0x10f   :  { %2034 = vmatprep.subr.bf16.mxu0 %v4544_v19  ;;  %v4743_v19 = vcombine.low %v437_v4, %v441_v5  ;;  %v425_v30 = vld [vmem:[#allocation5 + $0x738] sm:$0xff] }
 0x110   :  { %v4728_v34 = vcombine.high %v421_v29, %v425_v30  ;;  %v389_v56 = vld [vmem:[#allocation5 + $0x618] sm:$0xff] }
 0x111   :  { %2076 = vmatpush1.bf16.msra.mxu1 %v4679_v18  ;;  %v4615_v18 = vcombine.low %v309_v0, %v313_v1  ;;  %v393_v57 = vld [vmem:[#allocation5 + $0x638] sm:$0xff]  ;;  %v458_v1 = vsub.s32 1, %v5747_v52 }
 0x112   :  { %2077 = vmatprep.subr.bf16.mxu1 %v4672_v23  ;;  %2035 = vmatpush1.bf16.msra.mxu0 %v4543_v28  ;;  %v4608_v23 = vcombine.high %v301_v11, %v305_v15  ;;  %v297_v28 = vld [vmem:[#allocation5 + $0x338] sm:$0xff]  ;;  %v4696_v61 = vcombine.high %v389_v56, %v393_v57 }
 0x113   :  { %2036 = vmatprep.subr.bf16.mxu0 %v4536_v32  ;;  %v4735_v32 = vcombine.low %v429_v16, %v433_v17  ;;  %v5124_v0 = vld [vmem:[#allocation8 + $0xe4] ss:$16 sps:$4 sm:$0xff]   ;;  %v5122_v4 = vld [vmem:[#allocation8 + $0xe0] ss:$16 sps:$4 sm:$0xff]  }
 0x114   :  { %v5127_v5 = vld [vmem:[#allocation8 + $0xc4] ss:$16 sps:$4 sm:$0xff]   ;;  %v5143_v17 = vld [vmem:[#allocation8 + $0x2c0] ss:$16 sps:$4 sm:$0xff]  }
 0x115   :  { %2078 = vmatpush1.bf16.msra.mxu1 %v4671_v31  ;;  %v4607_v31 = vcombine.low %v301_v11, %v305_v15  ;;  %v5125_v11 = vld [vmem:[#allocation8 + $0xc0] ss:$16 sps:$4 sm:$0xff]   ;;  %v5130_v16 = vld [vmem:[#allocation8 + $0xa4] ss:$16 sps:$4 sm:$0xff]  }
 0x116   :  { %2079 = vmatprep.subr.bf16.mxu1 %v4664_v33  ;;  %2037 = vmatpush1.bf16.msra.mxu0 %v4535_v37  ;;  %v4600_v33 = vcombine.high %v293_v27, %v297_v28  ;;  %v289_v37 = vld [vmem:[#allocation5 + $0x2f8] sm:$0xff] }
 0x117   :  { %2038 = vmatprep.subr.bf16.mxu0 %v4528_v38  ;;  %v4727_v38 = vcombine.low %v421_v29, %v425_v30  ;;  %v4591_v47 = vcombine.low %v285_v35, %v289_v37  ;;  %v5149_v29 = vld [vmem:[#allocation8 + $0x2a0] ss:$16 sps:$4 sm:$0xff]  }
 0x119   :  { %2080 = vmatpush1.bf16.msra.mxu1 %v4663_v36  ;;  %v4599_v36 = vcombine.low %v293_v27, %v297_v28 }
 0x11a   :  { %2081 = vmatprep.subr.bf16.mxu1 %v4656_v41  ;;  %2039 = vmatpush1.bf16.msra.mxu0 %v4527_v44  ;;  %v4592_v41 = vcombine.high %v285_v35, %v289_v37  ;;  %v281_v44 = vld [vmem:[#allocation5 + $0x2b8] sm:$0xff] }
 0x11b   :  { %2040 = vmatprep.subr.bf16.mxu0 %v4520_v46  ;;  %v409_v46 = vld [vmem:[#allocation5 + $0x6b8] sm:$0xff]  ;;  %v4584_v12 = vcombine.high %v277_v43, %v281_v44  ;;  %v4583_v22 = vcombine.low %v277_v43, %v281_v44 }
 0x11c   :  { %v5131_v35 = vld [vmem:[#allocation8 + $0x80] ss:$16 sps:$4 sm:$0xff]   ;;  %v5136_v37 = vld [vmem:[#allocation8 + $0x64] ss:$16 sps:$4 sm:$0xff]  }
 0x11d   :  { %2082 = vmatpush1.bf16.msra.mxu1 %v4655_v45  ;;  %v405_v45 = vld [vmem:[#allocation5 + $0x698] sm:$0xff] }
 0x11e   :  { %2083 = vmatprep.subr.bf16.mxu1 %v4648_v48  ;;  %2041 = vmatpush1.bf16.msra.mxu0 %v4519_v20  ;;  %v4719_v48 = vcombine.low %v413_v39, %v417_v40  ;;  %v4712_v13 = vcombine.high %v405_v45, %v409_v46  ;;  %v273_v20 = vld [vmem:[#allocation5 + $0x278] sm:$0xff]  ;;  %v4711_v25 = vcombine.low %v405_v45, %v409_v46 }
 0x11f   :  { %2042 = vmatprep.subr.bf16.mxu0 %v4512_v21  ;;  %v401_v21 = vld [vmem:[#allocation5 + $0x678] sm:$0xff]  ;;  %v4576_v26 = vcombine.high %v269_v14, %v273_v20 }
 0x120   :  { %v5155_v39 = vld [vmem:[#allocation8 + $0x280] ss:$16 sps:$4 sm:$0xff]   ;;  %v5142_v43 = vld [vmem:[#allocation8 + $0x44] ss:$16 sps:$4 sm:$0xff]  }
 0x121   :  { %2084 = vmatpush1.bf16.msra.mxu1 %v4647_v51  ;;  %v397_v51 = vld [vmem:[#allocation5 + $0x658] sm:$0xff] }
 0x122   :  { %2085 = vmatprep.subr.bf16.mxu1 %v4640_v53  ;;  %2043 = vmatpush1.bf16.msra.mxu0 %v4511_v55  ;;  %v4704_v53 = vcombine.high %v397_v51, %v401_v21  ;;  %v265_v55 = vld [vmem:[#allocation5 + $0x238] sm:$0xff] }
 0x123   :  { %2044 = vmatprep.subr.bf16.mxu0 %v4504_v59  ;;  %v4703_v59 = vcombine.low %v397_v51, %v401_v21  ;;  %v4568_v60 = vcombine.high %v261_v54, %v265_v55  ;;  %v5161_v44 = vld [vmem:[#allocation8 + $0x260] ss:$16 sps:$4 sm:$0xff]   ;;  %v5169_v45 = vld [vmem:[#allocation8 + $0x244] ss:$16 sps:$4 sm:$0xff]  }
 0x124   :  { %v5140_v46 = vld [vmem:[#allocation8 + $0x40] ss:$16 sps:$4 sm:$0xff]   ;;  %v5181_v51 = vld [vmem:[#allocation8 + $0x204] ss:$16 sps:$4 sm:$0xff]  }
 0x125   :  { %2086 = vmatpush1.bf16.msra.mxu1 %v4639_v58  ;;  %v4575_v58 = vcombine.low %v269_v14, %v273_v20  ;;  %v5154_v14 = vld [vmem:[#allocation8 + $0x4] ss:$16 sps:$4 sm:$0xff]   ;;  %v5173_v20 = vld [vmem:[#allocation8 + $0x220] ss:$16 sps:$4 sm:$0xff]  }
 0x126   :  { %2087 = vmatprep.subr.bf16.mxu1 %v4632_v62  ;;  %2045 = vmatpush1.bf16.msra.mxu0 %v4503_v63  ;;  %v4567_v62 = vcombine.low %v261_v54, %v265_v55  ;;  %v4695_v63 = vcombine.low %v389_v56, %v393_v57  ;;  %v5152_v21 = vld [vmem:[#allocation8] ss:$16 sps:$4 sm:$0xff]   ;;  %v5166_v54 = vld [vmem:[#allocation8 + $0x1c4] ss:$16 sps:$4 sm:$0xff]  }
 0x127   :  { %2046 = vmatprep.subr.bf16.mxu0 %v4624_v3  ;;  %v5805_v3 = vld [vmem:[#allocation7] sm:$0xff]  ;;  %v5185_v55 = vld [vmem:[#allocation8 + $0x3e0] ss:$16 sps:$4 sm:$0xff]   ;;  %v5193_v56 = vld [vmem:[#allocation8 + $0x3c4] ss:$16 sps:$4 sm:$0xff]  }
 0x128   :  { %v5164_v57 = vld [vmem:[#allocation8 + $0x1c0] ss:$16 sps:$4 sm:$0xff]  }
 0x129   :  { %2088 = vmatpush1.bf16.msra.mxu1 %v4631_v2  ;;  %v5139_v2 = vld [vmem:[#allocation8 + $0x2e4] ss:$16 sps:$4 sm:$0xff]  }
 0x12a   :  { %2089 = vmatprep.subr.bf16.mxu1 %v4752_v6  ;;  %2047 = vmatpush2.bf16.msra.mxu0 %v4623_v7  ;;  %v5137_v6 = vld [vmem:[#allocation8 + $0x2e0] ss:$16 sps:$4 sm:$0xff]   ;;  %v459_v7 = vrot.slane %v5805_v3, %v458_v1 }
 0x12b   :  { %2048 = vmatprep.subr.bf16.mxu0 %v4616_v9 }
 0x12d   :  { %2090 = vmatpush2.bf16.msra.mxu1 %v4751_v8  ;;  %v5145_v8 = vld [vmem:[#allocation8 + $0x2c4] ss:$16 sps:$4 sm:$0xff]  }
 0x12e   :  { %2091 = vmatprep.subr.bf16.mxu1 %v4744_v10  ;;  %2049 = vmatpush2.bf16.msra.mxu0 %v4615_v18 }
 0x12f   :  { %2050 = vmatprep.subr.bf16.mxu0 %v4608_v23  ;;  %v5151_v23 = vld [vmem:[#allocation8 + $0x2a4] ss:$16 sps:$4 sm:$0xff]  }
 0x131   :  { %2092 = vmatpush2.bf16.msra.mxu1 %v4743_v19 }
 0x132   :  { %2093 = vmatprep.subr.bf16.mxu1 %v4736_v24  ;;  %2051 = vmatpush2.bf16.msra.mxu0 %v4607_v31 }
 0x133   :  { %2052 = vmatprep.subr.bf16.mxu0 %v4600_v33 }
 0x135   :  { %2094 = vmatpush2.bf16.msra.mxu1 %v4735_v32  ;;  %v5157_v32 = vld [vmem:[#allocation8 + $0x284] ss:$16 sps:$4 sm:$0xff]  }
 0x136   :  { %2095 = vmatprep.subr.bf16.mxu1 %v4728_v34  ;;  %2053 = vmatpush2.bf16.msra.mxu0 %v4599_v36 }
 0x137   :  { %2054 = vmatprep.subr.bf16.mxu0 %v4592_v41 }
 0x139   :  { %2096 = vmatpush2.bf16.msra.mxu1 %v4727_v38  ;;  %v5163_v38 = vld [vmem:[#allocation8 + $0x264] ss:$16 sps:$4 sm:$0xff]  }
 0x13a   :  { %2097 = vmatprep.subr.bf16.mxu1 %v4720_v42  ;;  %2055 = vmatpush2.bf16.msra.mxu0 %v4591_v47  ;;  %v5134_v42 = vld [vmem:[#allocation8 + $0x60] ss:$16 sps:$4 sm:$0xff]   ;;  %v5148_v47 = vld [vmem:[#allocation8 + $0x24] ss:$16 sps:$4 sm:$0xff]  }
 0x13b   :  { %2056 = vmatprep.subr.bf16.mxu0 %v4584_v12  ;;  %v5175_v12 = vld [vmem:[#allocation8 + $0x224] ss:$16 sps:$4 sm:$0xff]  }
 0x13d   :  { %2098 = vmatpush2.bf16.msra.mxu1 %v4719_v48  ;;  %v5167_v48 = vld [vmem:[#allocation8 + $0x240] ss:$16 sps:$4 sm:$0xff]  }
 0x13e   :  { %2099 = vmatprep.subr.bf16.mxu1 %v4712_v13  ;;  %2057 = vmatpush2.bf16.msra.mxu0 %v4583_v22  ;;  %v5146_v13 = vld [vmem:[#allocation8 + $0x20] ss:$16 sps:$4 sm:$0xff]   ;;  %v5160_v22 = vld [vmem:[#allocation8 + $0x1e4] ss:$16 sps:$4 sm:$0xff]  }
 0x13f   :  { %2058 = vmatprep.subr.bf16.mxu0 %v4576_v26  ;;  %v5187_v26 = vld [vmem:[#allocation8 + $0x3e4] ss:$16 sps:$4 sm:$0xff]  }
 0x141   :  { %2100 = vmatpush2.bf16.msra.mxu1 %v4711_v25  ;;  %v5179_v25 = vld [vmem:[#allocation8 + $0x200] ss:$16 sps:$4 sm:$0xff]  }
 0x142   :  { %2101 = vmatprep.subr.bf16.mxu1 %v4704_v53  ;;  %2059 = vmatpush2.bf16.msra.mxu0 %v4575_v58  ;;  %v5158_v53 = vld [vmem:[#allocation8 + $0x1e0] ss:$16 sps:$4 sm:$0xff]   ;;  %v5172_v58 = vld [vmem:[#allocation8 + $0x1a4] ss:$16 sps:$4 sm:$0xff]  }
 0x143   :  { %2060 = vmatprep.subr.bf16.mxu0 %v4568_v60  ;;  %v5199_v60 = vld [vmem:[#allocation8 + $0x3a4] ss:$16 sps:$4 sm:$0xff]  }
 0x145   :  { %2102 = vmatpush2.bf16.msra.mxu1 %v4703_v59  ;;  %v5191_v59 = vld [vmem:[#allocation8 + $0x3c0] ss:$16 sps:$4 sm:$0xff]  }
 0x146   :  { %2103 = vmatprep.subr.bf16.mxu1 %v4696_v61  ;;  %2061 = vmatpush2.bf16.msra.mxu0 %v4567_v62  ;;  %v5170_v61 = vld [vmem:[#allocation8 + $0x1a0] ss:$16 sps:$4 sm:$0xff]   ;;  %v5178_v62 = vld [vmem:[#allocation8 + $0x184] ss:$16 sps:$4 sm:$0xff]  }
 0x147   :  { %3698 = vmatprep.subr.bf16.mxu0 %v5124_v0  ;;  %v5205_v0 = vld [vmem:[#allocation8 + $0x384] ss:$16 sps:$4 sm:$0xff]  }
 0x149   :  { %2104 = vmatpush2.bf16.msra.mxu1 %v4695_v63  ;;  %v5810_v9 = vpop.f32.mrf.mxu0  ;;  %2063 = vmatmul.mubr.bf16.vlgmr.msra.gmra.mxu0 %v5788_v49  ;;  %v5128_v49 = vld [vmem:[#allocation8 + $0xa0] ss:$16 sps:$4 sm:$0xff]  }
 0x14a   :  { %3741 = vmatprep.subr.bf16.mxu1 %v5139_v2  ;;  %3699 = vmatpush1.bf16.msra.mxu0 %v5122_v4  ;;  %v5197_v63 = vld [vmem:[#allocation8 + $0x3a0] ss:$16 sps:$4 sm:$0xff]   ;;  %v5184_v4 = vld [vmem:[#allocation8 + $0x164] ss:$16 sps:$4 sm:$0xff]  }
 0x14b   :  { %v1808_v15 = vpop.f32.mrf.mxu0  ;;  %3700 = vmatprep.subr.bf16.mxu0 %v5127_v5  ;;  %v5176_v2 = vld [vmem:[#allocation8 + $0x180] ss:$16 sps:$4 sm:$0xff]  }
 0x14c   :  { %v5813_v10 = vpop.f32.mrf.mxu1  ;;  %2106 = vmatmul.mubr.bf16.vlgmr.msra.gmra.mxu1 %v5790_v50  ;;  %v1809_v18 = vadd.f32 %v1808_v15, %v459_v7  ;;  %v5133_v50 = vld [vmem:[#allocation8 + $0x84] ss:$16 sps:$4 sm:$0xff]   ;;  %v5203_v5 = vld [vmem:[#allocation8 + $0x380] ss:$16 sps:$4 sm:$0xff]  }
 0x14d   :  { %3742 = vmatpush1.bf16.msra.mxu1 %v5137_v6  ;;  %v5816_v24 = vpop.f32.mrf.mxu0  ;;  %v5208_v6 = vld [vmem:[#allocation8 + $0x364] ss:$16 sps:$4 sm:$0xff]   ;;  %v5206_v15 = vld [vmem:[#allocation8 + $0x360] ss:$16 sps:$4 sm:$0xff]  }
 0x14e   :  { %v1851_v19 = vpop.f32.mrf.mxu1  ;;  %3743 = vmatprep.subr.bf16.mxu1 %v5145_v8  ;;  %3701 = vmatpush1.bf16.msra.mxu0 %v5125_v11  ;;  %v5182_v8 = vld [vmem:[#allocation8 + $0x160] ss:$16 sps:$4 sm:$0xff]   ;;  %v5190_v11 = vld [vmem:[#allocation8 + $0x144] ss:$16 sps:$4 sm:$0xff]  }
 0x14f   :  { %v1812_v28 = vpop.f32.mrf.mxu0  ;;  %3702 = vmatprep.subr.bf16.mxu0 %v5130_v16  ;;  %v1852_v30 = vadd.f32 %v1851_v19, %v1809_v18  ;;  %v5211_v16 = vld [vmem:[#allocation8 + $0x344] ss:$16 sps:$4 sm:$0xff]   ;;  %v5188_v18 = vld [vmem:[#allocation8 + $0x140] ss:$16 sps:$4 sm:$0xff]  }
 0x150   :  { %v5818_v27 = vpop.f32.mrf.mxu1  ;;  %v1813_v31 = vadd.f32 %v1812_v28, %v459_v7  ;;  %v454_v7 = vsub.s32 0, %v5747_v52  ;;  %v5214_v28 = vld [vmem:[#allocation8 + $0x324] ss:$16 sps:$4 sm:$0xff]  }
 0x151   :  { %3744 = vmatpush1.bf16.msra.mxu1 %v5143_v17  ;;  %v2117_v40 = vmax.f32 %v1852_v30, 0.0 }
 0x152   :  { %3745 = vmatprep.subr.bf16.mxu1 %v5151_v23  ;;  %v1855_v33 = vpop.f32.mrf.mxu1  ;;  %3703 = vmatpush1.bf16.msra.mxu0 %v5128_v49  ;;  %v455_v17 = vrot.slane %v5805_v3, %v454_v7  ;;  %v5196_v23 = vld [vmem:[#allocation8 + $0x124] ss:$16 sps:$4 sm:$0xff]   ;;  %v5209_v49 = vld [vmem:[#allocation8 + $0x340] ss:$16 sps:$4 sm:$0xff]  }
 0x153   :  { %v1856_v34 = vadd.f32 %v1855_v33, %v1813_v31  ;;  %3704 = vmatprep.subr.bf16.mxu0 %v5133_v50  ;;  %v5202_v31 = vld [vmem:[#allocation8 + $0x104] ss:$16 sps:$4 sm:$0xff]  }
 0x154   :  { %v1811_v19 = vadd.f32 %v5816_v24, %v455_v17  ;;  %v1807_v50 = vadd.f32 %v5810_v9, %v455_v17  ;;  %v5217_v33 = vld [vmem:[#allocation8 + $0x304] ss:$16 sps:$4 sm:$0xff]   ;;  %v466_v9 = vsub.s32 3, %v5747_v52  ;;  %v5272_v17 = vld [vmem:[#allocation8 + $0x6c0] ss:$16 sps:$4 sm:$0xff]  }
 0x155   :  { %3746 = vmatpush1.bf16.msra.mxu1 %v5149_v29  ;;  %v2125_v36 = vmax.f32 %v1856_v34, 0.0  ;;  %v5194_v29 = vld [vmem:[#allocation8 + $0x120] ss:$16 sps:$4 sm:$0xff]  }
 0x156   :  { %3747 = vmatprep.subr.bf16.mxu1 %v5157_v32  ;;  %3705 = vmatpush1.bf16.msra.mxu0 %v5131_v35  ;;  %v1854_v30 = vadd.f32 %v5818_v27, %v1811_v19  ;;  %v5212_v32 = vld [vmem:[#allocation8 + $0x320] ss:$16 sps:$4 sm:$0xff]   ;;  %v1850_v24 = vadd.f32 %v5813_v10, %v1807_v50  ;;  %v5223_v10 = vld [vmem:[#allocation8 + $0x4c4] ss:$16 sps:$4 sm:$0xff]  }
 0x157   :  { %v5820_v41 = vpack.c.bf16 %v2125_v36, %v2117_v40  ;;  %3706 = vmatprep.subr.bf16.mxu0 %v5136_v37  ;;  %v5200_v34 = vld [vmem:[#allocation8 + $0x100] ss:$16 sps:$4 sm:$0xff]   ;;  %v5268_v40 = vld [vmem:[#allocation8 + $0x6e4] ss:$16 sps:$4 sm:$0xff]   ;;  %v462_v36 = vsub.s32 2, %v5747_v52 }
 0x158   :  { %v2124_v35 = vmax.f32 %v1854_v30, 0.0  ;;  %v5215_v37 = vld [vmem:[#allocation8 + $0x300] ss:$16 sps:$4 sm:$0xff]   ;;  %v2116_v27 = vmax.f32 %v1850_v24, 0.0  ;;  %v5280_v19 = vld [vmem:[#allocation8 + $0x6a4] ss:$16 sps:$4 sm:$0xff]  }
 0x159   :  { %3748 = vmatpush1.bf16.msra.mxu1 %v5155_v39  ;;  %3730 = vmatprep.mubr.bf16.mxu0 %v5820_v41  ;;  %v5220_v39 = vld [vmem:[#allocation8 + $0x4e4] ss:$16 sps:$4 sm:$0xff]   ;;  %v5284_v30 = vld [vmem:[#allocation8 + $0x680] ss:$16 sps:$4 sm:$0xff]  }
 0x15a   :  { %3749 = vmatprep.subr.bf16.mxu1 %v5163_v38  ;;  %3707 = vmatpush1.bf16.msra.mxu0 %v5134_v42  ;;  %v5218_v38 = vld [vmem:[#allocation8 + $0x4e0] ss:$16 sps:$4 sm:$0xff]   ;;  %v5833_v42 = vpack.c.bf16 %v2124_v35, %v2116_v27  ;;  %v5286_v50 = vld [vmem:[#allocation8 + $0x684] ss:$16 sps:$4 sm:$0xff]  }
 0x15b   :  { %3708 = vmatprep.subr.bf16.mxu0 %v5142_v43  ;;  %v467_v43 = vrot.slane %v5805_v3, %v466_v9  ;;  %v5290_v24 = vld [vmem:[#allocation8 + $0x660] ss:$16 sps:$4 sm:$0xff]   ;;  %v5298_v35 = vld [vmem:[#allocation8 + $0x644] ss:$16 sps:$4 sm:$0xff]  }
 0x15c   :  { %v5304_v27 = vld [vmem:[#allocation8 + $0x624] ss:$16 sps:$4 sm:$0xff]  }
 0x15d   :  { %3750 = vmatpush1.bf16.msra.mxu1 %v5161_v44  ;;  %v463_v44 = vrot.slane %v5805_v3, %v462_v36 }
 0x15e   :  { %3751 = vmatprep.subr.bf16.mxu1 %v5169_v45  ;;  %3709 = vmatpush1.bf16.msra.mxu0 %v5140_v46 }
 0x15f   :  { %3710 = vmatprep.subr.bf16.mxu0 %v5148_v47  ;;  %v5221_v47 = vld [vmem:[#allocation8 + $0x4c0] ss:$16 sps:$4 sm:$0xff]  }
 0x161   :  { %3752 = vmatpush1.bf16.msra.mxu1 %v5167_v48 }
 0x162   :  { %3753 = vmatprep.subr.bf16.mxu1 %v5175_v12  ;;  %3711 = vmatpush1.bf16.msra.mxu0 %v5146_v13  ;;  %v5226_v12 = vld [vmem:[#allocation8 + $0x4a4] ss:$16 sps:$4 sm:$0xff]  }
 0x163   :  { %3712 = vmatprep.subr.bf16.mxu0 %v5154_v14 }
 0x165   :  { %3754 = vmatpush1.bf16.msra.mxu1 %v5173_v20 }
 0x166   :  { %3755 = vmatprep.subr.bf16.mxu1 %v5181_v51  ;;  %3713 = vmatpush1.bf16.msra.mxu0 %v5152_v21 }
 0x167   :  { %3714 = vmatprep.subr.bf16.mxu0 %v5160_v22 }
 0x169   :  { %3756 = vmatpush1.bf16.msra.mxu1 %v5179_v25  ;;  %v5224_v25 = vld [vmem:[#allocation8 + $0x4a0] ss:$16 sps:$4 sm:$0xff]  }
 0x16a   :  { %3757 = vmatprep.subr.bf16.mxu1 %v5187_v26  ;;  %3715 = vmatpush2.bf16.msra.mxu0 %v5158_v53  ;;  %v5229_v53 = vld [vmem:[#allocation8 + $0x484] ss:$16 sps:$4 sm:$0xff]  }
 0x16b   :  { %3716 = vmatprep.subr.bf16.mxu0 %v5166_v54 }
 0x16d   :  { %3758 = vmatpush2.bf16.msra.mxu1 %v5185_v55 }
 0x16e   :  { %3759 = vmatprep.subr.bf16.mxu1 %v5193_v56  ;;  %3717 = vmatpush2.bf16.msra.mxu0 %v5164_v57 }
 0x16f   :  { %3718 = vmatprep.subr.bf16.mxu0 %v5172_v58 }
 0x171   :  { %3760 = vmatpush2.bf16.msra.mxu1 %v5191_v59 }
 0x172   :  { %3761 = vmatprep.subr.bf16.mxu1 %v5199_v60  ;;  %3719 = vmatpush2.bf16.msra.mxu0 %v5170_v61  ;;  %v5227_v60 = vld [vmem:[#allocation8 + $0x480] ss:$16 sps:$4 sm:$0xff]  }
 0x173   :  { %3720 = vmatprep.subr.bf16.mxu0 %v5178_v62  ;;  %v5232_v62 = vld [vmem:[#allocation8 + $0x464] ss:$16 sps:$4 sm:$0xff]  }
 0x175   :  { %3762 = vmatpush2.bf16.msra.mxu1 %v5197_v63 }
 0x176   :  { %3763 = vmatprep.subr.bf16.mxu1 %v5205_v0  ;;  %3721 = vmatpush2.bf16.msra.mxu0 %v5176_v2 }
 0x177   :  { %3722 = vmatprep.subr.bf16.mxu0 %v5184_v4 }
 0x179   :  { %3764 = vmatpush2.bf16.msra.mxu1 %v5203_v5  ;;  %v5230_v5 = vld [vmem:[#allocation8 + $0x460] ss:$16 sps:$4 sm:$0xff]  }
 0x17a   :  { %3765 = vmatprep.subr.bf16.mxu1 %v5208_v6  ;;  %3723 = vmatpush2.bf16.msra.mxu0 %v5182_v8  ;;  %v5266_v6 = vld [vmem:[#allocation8 + $0x6e0] ss:$16 sps:$4 sm:$0xff]  }
 0x17b   :  { %3724 = vmatprep.subr.bf16.mxu0 %v5190_v11  ;;  %v5235_v11 = vld [vmem:[#allocation8 + $0x444] ss:$16 sps:$4 sm:$0xff]  }
 0x17d   :  { %3766 = vmatpush2.bf16.msra.mxu1 %v5206_v15  ;;  %v5274_v15 = vld [vmem:[#allocation8 + $0x6c4] ss:$16 sps:$4 sm:$0xff]  }
 0x17e   :  { %3767 = vmatprep.subr.bf16.mxu1 %v5211_v16  ;;  %3725 = vmatpush2.bf16.msra.mxu0 %v5188_v18  ;;  %v5233_v16 = vld [vmem:[#allocation8 + $0x440] ss:$16 sps:$4 sm:$0xff]   ;;  %v5238_v18 = vld [vmem:[#allocation8 + $0x424] ss:$16 sps:$4 sm:$0xff]  }
 0x17f   :  { %3726 = vmatprep.subr.bf16.mxu0 %v5196_v23  ;;  %v5236_v23 = vld [vmem:[#allocation8 + $0x420] ss:$16 sps:$4 sm:$0xff]  }
 0x181   :  { %3768 = vmatpush2.bf16.msra.mxu1 %v5209_v49  ;;  %v5278_v49 = vld [vmem:[#allocation8 + $0x6a0] ss:$16 sps:$4 sm:$0xff]  }
 0x182   :  { %3769 = vmatprep.subr.bf16.mxu1 %v5214_v28  ;;  %3727 = vmatpush2.bf16.msra.mxu0 %v5194_v29  ;;  %v5241_v28 = vld [vmem:[#allocation8 + $0x404] ss:$16 sps:$4 sm:$0xff]   ;;  %v5239_v29 = vld [vmem:[#allocation8 + $0x400] ss:$16 sps:$4 sm:$0xff]  }
 0x183   :  { %3728 = vmatprep.subr.bf16.mxu0 %v5202_v31  ;;  %v5244_v31 = vld [vmem:[#allocation8 + $0x5e4] ss:$16 sps:$4 sm:$0xff]  }
 0x185   :  { %3770 = vmatpush2.bf16.msra.mxu1 %v5212_v32  ;;  %v5292_v32 = vld [vmem:[#allocation8 + $0x664] ss:$16 sps:$4 sm:$0xff]  }
 0x186   :  { %3771 = vmatprep.subr.bf16.mxu1 %v5217_v33  ;;  %3729 = vmatpush2.bf16.msra.mxu0 %v5200_v34  ;;  %v5242_v33 = vld [vmem:[#allocation8 + $0x5e0] ss:$16 sps:$4 sm:$0xff]   ;;  %v5247_v34 = vld [vmem:[#allocation8 + $0x5c4] ss:$16 sps:$4 sm:$0xff]  }
 0x187   :  { %3784 = vmatprep.subr.bf16.mxu0 %v5220_v39  ;;  %v5296_v39 = vld [vmem:[#allocation8 + $0x640] ss:$16 sps:$4 sm:$0xff]  }
 0x189   :  { %3772 = vmatpush2.bf16.msra.mxu1 %v5215_v37  ;;  %v1892_v45 = vpop.f32.mrf.mxu0  ;;  %3731 = vmatmul.mubr.bf16.vlgmr.msra.gmra.mxu0 %v5833_v42  ;;  %v5245_v37 = vld [vmem:[#allocation8 + $0x5c0] ss:$16 sps:$4 sm:$0xff]  }
 0x18a   :  { %3827 = vmatprep.subr.bf16.mxu1 %v5268_v40  ;;  %3785 = vmatpush1.bf16.msra.mxu0 %v5218_v38  ;;  %v1893_v20 = vadd.f32 %v1892_v45, %v463_v44  ;;  %v5250_v40 = vld [vmem:[#allocation8 + $0x5a4] ss:$16 sps:$4 sm:$0xff]   ;;  %v5248_v38 = vld [vmem:[#allocation8 + $0x5a0] ss:$16 sps:$4 sm:$0xff]  }
 0x18b   :  { %v1894_v48 = vpop.f32.mrf.mxu0  ;;  %3786 = vmatprep.subr.bf16.mxu0 %v5223_v10  ;;  %v5302_v10 = vld [vmem:[#allocation8 + $0x620] ss:$16 sps:$4 sm:$0xff]  }
 0x18c   :  { %v1935_v46 = vpop.f32.mrf.mxu1  ;;  %v1895_v13 = vadd.f32 %v1894_v48, %v467_v43  ;;  %v5251_v45 = vld [vmem:[#allocation8 + $0x580] ss:$16 sps:$4 sm:$0xff]   ;;  %v5316_v48 = vld [vmem:[#allocation8 + $0x7e4] ss:$16 sps:$4 sm:$0xff]  }
 0x18d   :  { %v1896_v51 = vpop.f32.mrf.mxu0  ;;  %v1936_v57 = vadd.f32 %v1935_v46, %v1893_v20  ;;  %v5308_v46 = vld [vmem:[#allocation8 + $0x600] ss:$16 sps:$4 sm:$0xff]   ;;  %v5322_v20 = vld [vmem:[#allocation8 + $0x7c4] ss:$16 sps:$4 sm:$0xff]  }
 0x18e   :  { %v1937_v14 = vpop.f32.mrf.mxu1  ;;  %v1897_v21 = vadd.f32 %v1896_v51, %v463_v44  ;;  %3787 = vmatpush1.bf16.msra.mxu0 %v5221_v47  ;;  %v5310_v44 = vld [vmem:[#allocation8 + $0x604] ss:$16 sps:$4 sm:$0xff]   ;;  %v5257_v51 = vld [vmem:[#allocation8 + $0x540] ss:$16 sps:$4 sm:$0xff]  }
 0x18f   :  { %v1898_v26 = vpop.f32.mrf.mxu0  ;;  %3788 = vmatprep.subr.bf16.mxu0 %v5226_v12  ;;  %v1938_v54 = vadd.f32 %v1937_v14, %v1895_v13  ;;  %v2118_v2 = vmax.f32 %v1936_v57, 0.0  ;;  %v5256_v47 = vld [vmem:[#allocation8 + $0x564] ss:$16 sps:$4 sm:$0xff]   ;;  %v5254_v12 = vld [vmem:[#allocation8 + $0x560] ss:$16 sps:$4 sm:$0xff]  }
 0x190   :  { %v1939_v22 = vpop.f32.mrf.mxu1  ;;  %v1899_v56 = vadd.f32 %v1898_v26, %v467_v43  ;;  %v5253_v43 = vld [vmem:[#allocation8 + $0x584] ss:$16 sps:$4 sm:$0xff]   ;;  %v5314_v13 = vld [vmem:[#allocation8 + $0x7e0] ss:$16 sps:$4 sm:$0xff]  }
 0x191   :  { %v1940_v55 = vadd.f32 %v1939_v22, %v1897_v21  ;;  %v2119_v63 = vmax.f32 %v1938_v54, 0.0  ;;  %v5259_v14 = vld [vmem:[#allocation8 + $0x544] ss:$16 sps:$4 sm:$0xff]   ;;  %v5320_v21 = vld [vmem:[#allocation8 + $0x7c0] ss:$16 sps:$4 sm:$0xff]  }
 0x192   :  { %v1941_v58 = vpop.f32.mrf.mxu1  ;;  %3789 = vmatpush1.bf16.msra.mxu0 %v5224_v25  ;;  %v5262_v22 = vld [vmem:[#allocation8 + $0x524] ss:$16 sps:$4 sm:$0xff]   ;;  %v5260_v26 = vld [vmem:[#allocation8 + $0x520] ss:$16 sps:$4 sm:$0xff]  }
 0x193   :  { %v1942_v59 = vadd.f32 %v1941_v58, %v1899_v56  ;;  %v2126_v61 = vmax.f32 %v1940_v55, 0.0  ;;  %3790 = vmatprep.subr.bf16.mxu0 %v5229_v53  ;;  %v5328_v25 = vld [vmem:[#allocation8 + $0x7a4] ss:$16 sps:$4 sm:$0xff]   ;;  %v5326_v53 = vld [vmem:[#allocation8 + $0x7a0] ss:$16 sps:$4 sm:$0xff]  }
 0x194   :  { %v5265_v54 = vld [vmem:[#allocation8 + $0x504] ss:$16 sps:$4 sm:$0xff]   ;;  %v5263_v56 = vld [vmem:[#allocation8 + $0x500] ss:$16 sps:$4 sm:$0xff]   ;;  %v5271_v58 = vld [vmem:[#allocation8 + $0xec] ss:$16 sps:$4 sm:$0xff]  }
 0x195   :  { %v2127_v0 = vmax.f32 %v1942_v59, 0.0  ;;  %v5844_v8 = vpack.c.bf16 %v2126_v61, %v2118_v2  ;;  %v5334_v55 = vld [vmem:[#allocation8 + $0x784] ss:$16 sps:$4 sm:$0xff]   ;;  %v5332_v57 = vld [vmem:[#allocation8 + $0x780] ss:$16 sps:$4 sm:$0xff]   ;;  %v470_v61 = vsub.s32 4, %v5747_v52 }
 0x196   :  { %3791 = vmatpush1.bf16.msra.mxu0 %v5227_v60  ;;  %v5340_v59 = vld [vmem:[#allocation8 + $0x764] ss:$16 sps:$4 sm:$0xff]   ;;  %v474_v60 = vsub.s32 5, %v5747_v52 }
 0x197   :  { %v5842_v4 = vpack.c.bf16 %v2127_v0, %v2119_v63  ;;  %3792 = vmatprep.subr.bf16.mxu0 %v5232_v62  ;;  %v5338_v62 = vld [vmem:[#allocation8 + $0x760] ss:$16 sps:$4 sm:$0xff]   ;;  %v5346_v63 = vld [vmem:[#allocation8 + $0x744] ss:$16 sps:$4 sm:$0xff]   ;;  %v471_v2 = vrot.slane %v5805_v3, %v470_v61  ;;  %v5335_v61 = vld [vmem:[#allocation8 + $0x188] ss:$16 sps:$4 sm:$0xff]  }
 0x198   :  { %v475_v0 = vrot.slane %v5805_v3, %v474_v60  ;;  %v5337_v60 = vld [vmem:[#allocation8 + $0x18c] ss:$16 sps:$4 sm:$0xff]  }
 0x199   :  { %3773 = vmatprep.mubr.bf16.mxu1 %v5842_v4 }
 0x19a   :  { %3774 = vmatmul.mubr.bf16.vlgmr.msra.gmra.mxu1 %v5844_v8  ;;  %3793 = vmatpush1.bf16.msra.mxu0 %v5230_v5 }
 0x19b   :  { %3828 = vmatpush1.bf16.msra.mxu1 %v5266_v6  ;;  %3794 = vmatprep.subr.bf16.mxu0 %v5235_v11  ;;  %v5344_v11 = vld [vmem:[#allocation8 + $0x740] ss:$16 sps:$4 sm:$0xff]  }
 0x19c   :  { %3829 = vmatprep.subr.bf16.mxu1 %v5274_v15 }
 0x19e   :  { %3795 = vmatpush1.bf16.msra.mxu0 %v5233_v16  ;;  %v5352_v16 = vld [vmem:[#allocation8 + $0x724] ss:$16 sps:$4 sm:$0xff]  }
 0x19f   :  { %3830 = vmatpush1.bf16.msra.mxu1 %v5272_v17  ;;  %3796 = vmatprep.subr.bf16.mxu0 %v5238_v18 }
 0x1a0   :  { %3831 = vmatprep.subr.bf16.mxu1 %v5280_v19 }
 0x1a2   :  { %3797 = vmatpush1.bf16.msra.mxu0 %v5236_v23 }
 0x1a3   :  { %3832 = vmatpush1.bf16.msra.mxu1 %v5278_v49  ;;  %3798 = vmatprep.subr.bf16.mxu0 %v5241_v28 }
 0x1a4   :  { %3833 = vmatprep.subr.bf16.mxu1 %v5286_v50  ;;  %v5350_v50 = vld [vmem:[#allocation8 + $0x720] ss:$16 sps:$4 sm:$0xff]  }
 0x1a6   :  { %3799 = vmatpush1.bf16.msra.mxu0 %v5239_v29 }
 0x1a7   :  { %3834 = vmatpush1.bf16.msra.mxu1 %v5284_v30  ;;  %3800 = vmatprep.subr.bf16.mxu0 %v5244_v31  ;;  %v5358_v30 = vld [vmem:[#allocation8 + $0x704] ss:$16 sps:$4 sm:$0xff]  }
 0x1a8   :  { %3835 = vmatprep.subr.bf16.mxu1 %v5292_v32 }
 0x1aa   :  { %3801 = vmatpush2.bf16.msra.mxu0 %v5242_v33 }
 0x1ab   :  { %3836 = vmatpush1.bf16.msra.mxu1 %v5290_v24  ;;  %3802 = vmatprep.subr.bf16.mxu0 %v5247_v34 }
 0x1ac   :  { %3837 = vmatprep.subr.bf16.mxu1 %v5298_v35 }
 0x1ae   :  { %3803 = vmatpush2.bf16.msra.mxu0 %v5245_v37  ;;  %v5356_v37 = vld [vmem:[#allocation8 + $0x700] ss:$16 sps:$4 sm:$0xff]  }
 0x1af   :  { %3838 = vmatpush1.bf16.msra.mxu1 %v5296_v39  ;;  %3804 = vmatprep.subr.bf16.mxu0 %v5250_v40  ;;  %v5364_v40 = vld [vmem:[#allocation8 + $0x2ec] ss:$16 sps:$4 sm:$0xff]  }
 0x1b0   :  { %3839 = vmatprep.subr.bf16.mxu1 %v5304_v27 }
 0x1b2   :  { %3805 = vmatpush2.bf16.msra.mxu0 %v5248_v38 }
 0x1b3   :  { %3840 = vmatpush1.bf16.msra.mxu1 %v5302_v10  ;;  %3806 = vmatprep.subr.bf16.mxu0 %v5253_v43 }
 0x1b4   :  { %3841 = vmatprep.subr.bf16.mxu1 %v5310_v44  ;;  %v5269_v44 = vld [vmem:[#allocation8 + $0xe8] ss:$16 sps:$4 sm:$0xff]  }
 0x1b6   :  { %3807 = vmatpush2.bf16.msra.mxu0 %v5251_v45 }
 0x1b7   :  { %3842 = vmatpush1.bf16.msra.mxu1 %v5308_v46  ;;  %3808 = vmatprep.subr.bf16.mxu0 %v5256_v47  ;;  %v5277_v46 = vld [vmem:[#allocation8 + $0xcc] ss:$16 sps:$4 sm:$0xff]   ;;  %v5275_v47 = vld [vmem:[#allocation8 + $0xc8] ss:$16 sps:$4 sm:$0xff]  }
 0x1b8   :  { %3843 = vmatprep.subr.bf16.mxu1 %v5316_v48  ;;  %v5283_v48 = vld [vmem:[#allocation8 + $0xac] ss:$16 sps:$4 sm:$0xff]  }
 0x1ba   :  { %3809 = vmatpush2.bf16.msra.mxu0 %v5254_v12  ;;  %v5281_v12 = vld [vmem:[#allocation8 + $0xa8] ss:$16 sps:$4 sm:$0xff]  }
 0x1bb   :  { %3844 = vmatpush2.bf16.msra.mxu1 %v5314_v13  ;;  %3810 = vmatprep.subr.bf16.mxu0 %v5259_v14  ;;  %v5289_v13 = vld [vmem:[#allocation8 + $0x8c] ss:$16 sps:$4 sm:$0xff]   ;;  %v5287_v14 = vld [vmem:[#allocation8 + $0x88] ss:$16 sps:$4 sm:$0xff]  }
 0x1bc   :  { %3845 = vmatprep.subr.bf16.mxu1 %v5322_v20  ;;  %v5295_v20 = vld [vmem:[#allocation8 + $0x6c] ss:$16 sps:$4 sm:$0xff]  }
 0x1be   :  { %3811 = vmatpush2.bf16.msra.mxu0 %v5257_v51  ;;  %v5293_v51 = vld [vmem:[#allocation8 + $0x68] ss:$16 sps:$4 sm:$0xff]  }
 0x1bf   :  { %3846 = vmatpush2.bf16.msra.mxu1 %v5320_v21  ;;  %3812 = vmatprep.subr.bf16.mxu0 %v5262_v22  ;;  %v5301_v21 = vld [vmem:[#allocation8 + $0x4c] ss:$16 sps:$4 sm:$0xff]   ;;  %v5299_v22 = vld [vmem:[#allocation8 + $0x48] ss:$16 sps:$4 sm:$0xff]  }
 0x1c0   :  { %3847 = vmatprep.subr.bf16.mxu1 %v5328_v25  ;;  %v5307_v25 = vld [vmem:[#allocation8 + $0x2c] ss:$16 sps:$4 sm:$0xff]  }
 0x1c2   :  { %3813 = vmatpush2.bf16.msra.mxu0 %v5260_v26  ;;  %v5313_v26 = vld [vmem:[#allocation8 + $0xc] ss:$16 sps:$4 sm:$0xff]  }
 0x1c3   :  { %3848 = vmatpush2.bf16.msra.mxu1 %v5326_v53  ;;  %3814 = vmatprep.subr.bf16.mxu0 %v5265_v54  ;;  %v5311_v53 = vld [vmem:[#allocation8 + $0x8] ss:$16 sps:$4 sm:$0xff]   ;;  %v5319_v54 = vld [vmem:[#allocation8 + $0x1ec] ss:$16 sps:$4 sm:$0xff]  }
 0x1c4   :  { %3849 = vmatprep.subr.bf16.mxu1 %v5334_v55  ;;  %v5317_v55 = vld [vmem:[#allocation8 + $0x1e8] ss:$16 sps:$4 sm:$0xff]  }
 0x1c6   :  { %3815 = vmatpush2.bf16.msra.mxu0 %v5263_v56  ;;  %v5325_v56 = vld [vmem:[#allocation8 + $0x1cc] ss:$16 sps:$4 sm:$0xff]  }
 0x1c7   :  { %3850 = vmatpush2.bf16.msra.mxu1 %v5332_v57  ;;  %3870 = vmatprep.subr.bf16.mxu0 %v5271_v58  ;;  %v5323_v57 = vld [vmem:[#allocation8 + $0x1c8] ss:$16 sps:$4 sm:$0xff]   ;;  %v5331_v58 = vld [vmem:[#allocation8 + $0x1ac] ss:$16 sps:$4 sm:$0xff]  }
 0x1c8   :  { %3851 = vmatprep.subr.bf16.mxu1 %v5340_v59  ;;  %v5329_v59 = vld [vmem:[#allocation8 + $0x1a8] ss:$16 sps:$4 sm:$0xff]  }
 0x1c9   :  { %v1978_v5 = vpop.f32.mrf.mxu0 }
 0x1ca   :  { %v1979_v19 = vadd.f32 %v1978_v5, %v471_v2  ;;  %v5349_v5 = vld [vmem:[#allocation8 + $0x14c] ss:$16 sps:$4 sm:$0xff]  }
 0x1cb   :  { %3852 = vmatpush2.bf16.msra.mxu1 %v5338_v62  ;;  %v1980_v15 = vpop.f32.mrf.mxu0  ;;  %v5343_v62 = vld [vmem:[#allocation8 + $0x16c] ss:$16 sps:$4 sm:$0xff]  }
 0x1cc   :  { %v2021_v6 = vpop.f32.mrf.mxu1  ;;  %3853 = vmatprep.subr.bf16.mxu1 %v5346_v63  ;;  %v1981_v17 = vadd.f32 %v1980_v15, %v475_v0  ;;  %v482_v63 = vsub.s32 7, %v5747_v52 }
 0x1cd   :  { %v1982_v23 = vpop.f32.mrf.mxu0  ;;  %v2022_v24 = vadd.f32 %v2021_v6, %v1979_v19  ;;  %v5355_v19 = vld [vmem:[#allocation8 + $0x12c] ss:$16 sps:$4 sm:$0xff]  }
 0x1ce   :  { %v2023_v18 = vpop.f32.mrf.mxu1  ;;  %v1983_v49 = vadd.f32 %v1982_v23, %v471_v2  ;;  %v5341_v2 = vld [vmem:[#allocation8 + $0x168] ss:$16 sps:$4 sm:$0xff]   ;;  %v483_v6 = vrot.slane %v5805_v3, %v482_v63  ;;  %v5403_v63 = vld [vmem:[#allocation8 + $0x42c] ss:$16 sps:$4 sm:$0xff]  }
 0x1cf   :  { %3854 = vmatpush2.bf16.msra.mxu1 %v5344_v11  ;;  %v1984_v29 = vpop.f32.mrf.mxu0  ;;  %v2024_v31 = vadd.f32 %v2023_v18, %v1981_v17  ;;  %v2120_v10 = vmax.f32 %v2022_v24, 0.0  ;;  %v5347_v17 = vld [vmem:[#allocation8 + $0x148] ss:$16 sps:$4 sm:$0xff]  }
 0x1d0   :  { %v2025_v28 = vpop.f32.mrf.mxu1  ;;  %3855 = vmatprep.subr.bf16.mxu1 %v5352_v16  ;;  %v1985_v33 = vadd.f32 %v1984_v29, %v475_v0  ;;  %v478_v0 = vsub.s32 6, %v5747_v52 }
 0x1d1   :  { %v2026_v32 = vadd.f32 %v2025_v28, %v1983_v49  ;;  %v2121_v27 = vmax.f32 %v2024_v31, 0.0  ;;  %v5353_v31 = vld [vmem:[#allocation8 + $0x128] ss:$16 sps:$4 sm:$0xff]  }
 0x1d2   :  { %v2027_v34 = vpop.f32.mrf.mxu1  ;;  %v479_v11 = vrot.slane %v5805_v3, %v478_v0  ;;  %v5398_v0 = vld [vmem:[#allocation8 + $0x228] ss:$16 sps:$4 sm:$0xff]  }
 0x1d3   :  { %v2028_v35 = vadd.f32 %v2027_v34, %v1985_v33  ;;  %3856 = vmatpush2.bf16.msra.mxu1 %v5350_v50  ;;  %v2128_v39 = vmax.f32 %v2026_v32, 0.0  ;;  %v5361_v33 = vld [vmem:[#allocation8 + $0x10c] ss:$16 sps:$4 sm:$0xff]  }
 0x1d4   :  { %3857 = vmatprep.subr.bf16.mxu1 %v5358_v30 }
 0x1d5   :  { %v2129_v38 = vmax.f32 %v2028_v35, 0.0  ;;  %v5854_v45 = vpack.c.bf16 %v2128_v39, %v2120_v10 }
 0x1d7   :  { %v5852_v43 = vpack.c.bf16 %v2129_v38, %v2121_v27  ;;  %3858 = vmatpush2.bf16.msra.mxu1 %v5356_v37  ;;  %v5367_v38 = vld [vmem:[#allocation8 + $0x4ec] ss:$16 sps:$4 sm:$0xff]  }
 0x1d8   :  { %3913 = vmatprep.subr.bf16.mxu1 %v5364_v40  ;;  %v5359_v40 = vld [vmem:[#allocation8 + $0x108] ss:$16 sps:$4 sm:$0xff]  }
 0x1d9   :  { %3816 = vmatprep.mubr.bf16.mxu0 %v5852_v43 }
 0x1da   :  { %3817 = vmatmul.mubr.bf16.vlgmr.msra.gmra.mxu0 %v5854_v45 }
 0x1db   :  { %3871 = vmatpush1.bf16.msra.mxu0 %v5269_v44  ;;  %3902 = vmatprep.mubr.bf16.mxu0 %v5820_v41  ;;  %v5305_v41 = vld [vmem:[#allocation8 + $0x28] ss:$16 sps:$4 sm:$0xff]  }
 0x1dc   :  { %3872 = vmatprep.subr.bf16.mxu0 %v5277_v46 }
 0x1df   :  { %3873 = vmatpush1.bf16.msra.mxu0 %v5275_v47 }
 0x1e0   :  { %3874 = vmatprep.subr.bf16.mxu0 %v5283_v48  ;;  %v5362_v48 = vld [vmem:[#allocation8 + $0x2e8] ss:$16 sps:$4 sm:$0xff]  }
 0x1e3   :  { %3875 = vmatpush1.bf16.msra.mxu0 %v5281_v12  ;;  %v5365_v12 = vld [vmem:[#allocation8 + $0x4e8] ss:$16 sps:$4 sm:$0xff]  }
 0x1e4   :  { %3876 = vmatprep.subr.bf16.mxu0 %v5289_v13 }
 0x1e7   :  { %3877 = vmatpush1.bf16.msra.mxu0 %v5287_v14  ;;  %v5370_v14 = vld [vmem:[#allocation8 + $0x2cc] ss:$16 sps:$4 sm:$0xff]  }
 0x1e8   :  { %3878 = vmatprep.subr.bf16.mxu0 %v5295_v20  ;;  %v5373_v20 = vld [vmem:[#allocation8 + $0x4cc] ss:$16 sps:$4 sm:$0xff]  }
 0x1eb   :  { %3879 = vmatpush1.bf16.msra.mxu0 %v5293_v51  ;;  %v5368_v51 = vld [vmem:[#allocation8 + $0x2c8] ss:$16 sps:$4 sm:$0xff]  }
 0x1ec   :  { %3880 = vmatprep.subr.bf16.mxu0 %v5301_v21  ;;  %v5371_v21 = vld [vmem:[#allocation8 + $0x4c8] ss:$16 sps:$4 sm:$0xff]  }
 0x1ef   :  { %3881 = vmatpush1.bf16.msra.mxu0 %v5299_v22  ;;  %v5376_v22 = vld [vmem:[#allocation8 + $0x2ac] ss:$16 sps:$4 sm:$0xff]  }
 0x1f0   :  { %3882 = vmatprep.subr.bf16.mxu0 %v5307_v25  ;;  %v5379_v25 = vld [vmem:[#allocation8 + $0x4ac] ss:$16 sps:$4 sm:$0xff]  }
 0x1f3   :  { %3883 = vmatpush1.bf16.msra.mxu0 %v5305_v41  ;;  %v5374_v41 = vld [vmem:[#allocation8 + $0x2a8] ss:$16 sps:$4 sm:$0xff]  }
 0x1f4   :  { %3884 = vmatprep.subr.bf16.mxu0 %v5313_v26  ;;  %v5377_v26 = vld [vmem:[#allocation8 + $0x4a8] ss:$16 sps:$4 sm:$0xff]  }
 0x1f7   :  { %3885 = vmatpush1.bf16.msra.mxu0 %v5311_v53  ;;  %v5385_v53 = vld [vmem:[#allocation8 + $0x48c] ss:$16 sps:$4 sm:$0xff]  }
 0x1f8   :  { %3886 = vmatprep.subr.bf16.mxu0 %v5319_v54  ;;  %v5380_v54 = vld [vmem:[#allocation8 + $0x288] ss:$16 sps:$4 sm:$0xff]  }
 0x1fb   :  { %3887 = vmatpush2.bf16.msra.mxu0 %v5317_v55  ;;  %v5383_v55 = vld [vmem:[#allocation8 + $0x488] ss:$16 sps:$4 sm:$0xff]  }
 0x1fc   :  { %3888 = vmatprep.subr.bf16.mxu0 %v5325_v56  ;;  %v5386_v56 = vld [vmem:[#allocation8 + $0x268] ss:$16 sps:$4 sm:$0xff]  }
 0x1ff   :  { %3889 = vmatpush2.bf16.msra.mxu0 %v5323_v57  ;;  %v5389_v57 = vld [vmem:[#allocation8 + $0x468] ss:$16 sps:$4 sm:$0xff]  }
 0x200   :  { %3890 = vmatprep.subr.bf16.mxu0 %v5331_v58  ;;  %v5394_v58 = vld [vmem:[#allocation8 + $0x24c] ss:$16 sps:$4 sm:$0xff]  }
 0x203   :  { %3891 = vmatpush2.bf16.msra.mxu0 %v5329_v59  ;;  %v5397_v59 = vld [vmem:[#allocation8 + $0x44c] ss:$16 sps:$4 sm:$0xff]  }
 0x204   :  { %3892 = vmatprep.subr.bf16.mxu0 %v5337_v60  ;;  %v5392_v60 = vld [vmem:[#allocation8 + $0x248] ss:$16 sps:$4 sm:$0xff]  }
 0x207   :  { %3893 = vmatpush2.bf16.msra.mxu0 %v5335_v61  ;;  %v5395_v61 = vld [vmem:[#allocation8 + $0x448] ss:$16 sps:$4 sm:$0xff]  }
 0x208   :  { %3894 = vmatprep.subr.bf16.mxu0 %v5343_v62  ;;  %v5400_v62 = vld [vmem:[#allocation8 + $0x22c] ss:$16 sps:$4 sm:$0xff]  }
 0x209   :  { %v2064_v15 = vpop.f32.mrf.mxu0 }
 0x20a   :  { %v2065_v28 = vadd.f32 %v2064_v15, %v479_v11  ;;  %v5407_v15 = vld [vmem:[#allocation8 + $0x408] ss:$16 sps:$4 sm:$0xff]  }
 0x20b   :  { %3895 = vmatpush2.bf16.msra.mxu0 %v5341_v2  ;;  %v2066_v18 = vpop.f32.mrf.mxu0  ;;  %v5401_v2 = vld [vmem:[#allocation8 + $0x428] ss:$16 sps:$4 sm:$0xff]  }
 0x20c   :  { %v2107_v16 = vpop.f32.mrf.mxu1  ;;  %3896 = vmatprep.subr.bf16.mxu0 %v5349_v5  ;;  %v2067_v23 = vadd.f32 %v2066_v18, %v483_v6  ;;  %v5406_v5 = vld [vmem:[#allocation8 + $0x20c] ss:$16 sps:$4 sm:$0xff]   ;;  %v5410_v18 = vld [vmem:[#allocation8 + $0x3e8] ss:$16 sps:$4 sm:$0xff]  }
 0x20d   :  { %v2068_v50 = vpop.f32.mrf.mxu0  ;;  %v2108_v35 = vadd.f32 %v2107_v16, %v2065_v28  ;;  %v5412_v16 = vld [vmem:[#allocation8 + $0x3ec] ss:$16 sps:$4 sm:$0xff]   ;;  %v5416_v28 = vld [vmem:[#allocation8 + $0x3c8] ss:$16 sps:$4 sm:$0xff]  }
 0x20e   :  { %v2109_v49 = vpop.f32.mrf.mxu1  ;;  %v2069_v29 = vadd.f32 %v2068_v50, %v479_v11  ;;  %v5404_v11 = vld [vmem:[#allocation8 + $0x208] ss:$16 sps:$4 sm:$0xff]  }
 0x20f   :  { %3897 = vmatpush2.bf16.msra.mxu0 %v5347_v17  ;;  %v2070_v32 = vpop.f32.mrf.mxu0  ;;  %v2110_v24 = vadd.f32 %v2109_v49, %v2067_v23  ;;  %v2122_v46 = vmax.f32 %v2108_v35, 0.0  ;;  %v5415_v17 = vld [vmem:[#allocation8 + $0x5ec] ss:$16 sps:$4 sm:$0xff]   ;;  %v5419_v50 = vld [vmem:[#allocation8 + $0x5c8] ss:$16 sps:$4 sm:$0xff]  }
 0x210   :  { %v2111_v30 = vpop.f32.mrf.mxu1  ;;  %3898 = vmatprep.subr.bf16.mxu0 %v5355_v19  ;;  %v2071_v34 = vadd.f32 %v2070_v32, %v483_v6  ;;  %v5409_v6 = vld [vmem:[#allocation8 + $0x40c] ss:$16 sps:$4 sm:$0xff]   ;;  %v5413_v19 = vld [vmem:[#allocation8 + $0x5e8] ss:$16 sps:$4 sm:$0xff]  }
 0x211   :  { %v2112_v3 = vadd.f32 %v2111_v30, %v2069_v29  ;;  %v2123_v10 = vmax.f32 %v2110_v24, 0.0  ;;  %v5418_v23 = vld [vmem:[#allocation8 + $0x3cc] ss:$16 sps:$4 sm:$0xff]   ;;  %v5425_v32 = vld [vmem:[#allocation8 + $0x5a8] ss:$16 sps:$4 sm:$0xff]  }
 0x212   :  { %v2113_v37 = vpop.f32.mrf.mxu1  ;;  %v5421_v49 = vld [vmem:[#allocation8 + $0x5cc] ss:$16 sps:$4 sm:$0xff]  }
 0x213   :  { %v2114_v39 = vadd.f32 %v2113_v37, %v2071_v34  ;;  %3899 = vmatpush2.bf16.msra.mxu0 %v5353_v31  ;;  %v2130_v27 = vmax.f32 %v2112_v3, 0.0  ;;  %v5424_v29 = vld [vmem:[#allocation8 + $0x3ac] ss:$16 sps:$4 sm:$0xff]   ;;  %v5422_v31 = vld [vmem:[#allocation8 + $0x3a8] ss:$16 sps:$4 sm:$0xff]  }
 0x214   :  { %3900 = vmatprep.subr.bf16.mxu0 %v5361_v33  ;;  %v5427_v30 = vld [vmem:[#allocation8 + $0x5ac] ss:$16 sps:$4 sm:$0xff]   ;;  %v5428_v3 = vld [vmem:[#allocation8 + $0x388] ss:$16 sps:$4 sm:$0xff]  }
 0x215   :  { %v2131_v44 = vmax.f32 %v2114_v39, 0.0  ;;  %v5865_v13 = vpack.c.bf16 %v2130_v27, %v2122_v46  ;;  %v5430_v33 = vld [vmem:[#allocation8 + $0x38c] ss:$16 sps:$4 sm:$0xff]   ;;  %v5431_v34 = vld [vmem:[#allocation8 + $0x588] ss:$16 sps:$4 sm:$0xff]  }
 0x216   :  { %v5433_v24 = vld [vmem:[#allocation8 + $0x58c] ss:$16 sps:$4 sm:$0xff]   ;;  %v5434_v39 = vld [vmem:[#allocation8 + $0x368] ss:$16 sps:$4 sm:$0xff]  }
 0x217   :  { %v5863_v47 = vpack.c.bf16 %v2131_v44, %v2123_v10  ;;  %3901 = vmatpush2.bf16.msra.mxu0 %v5359_v40  ;;  %v5436_v35 = vld [vmem:[#allocation8 + $0x36c] ss:$16 sps:$4 sm:$0xff]   ;;  %v5437_v40 = vld [vmem:[#allocation8 + $0x568] ss:$16 sps:$4 sm:$0xff]  }
 0x218   :  { %3956 = vmatprep.subr.bf16.mxu0 %v5367_v38  ;;  %v5439_v37 = vld [vmem:[#allocation8 + $0x56c] ss:$16 sps:$4 sm:$0xff]   ;;  %v5440_v10 = vld [vmem:[#allocation8 + $0x348] ss:$16 sps:$4 sm:$0xff]  }
 0x219   :  { %3859 = vmatprep.mubr.bf16.mxu1 %v5863_v47  ;;  %v5442_v27 = vld [vmem:[#allocation8 + $0x34c] ss:$16 sps:$4 sm:$0xff]   ;;  %v5443_v44 = vld [vmem:[#allocation8 + $0x548] ss:$16 sps:$4 sm:$0xff]  }
 0x21a   :  { %3903 = vmatmul.mubr.bf16.vlgmr.msra.gmra.mxu0 %v5833_v42  ;;  %3860 = vmatmul.mubr.bf16.vlgmr.msra.gmra.mxu1 %v5865_v13  ;;  %v5382_v42 = vld [vmem:[#allocation8 + $0x28c] ss:$16 sps:$4 sm:$0xff]  }
 0x21b   :  { %3914 = vmatpush1.bf16.msra.mxu1 %v5362_v48  ;;  %3957 = vmatpush1.bf16.msra.mxu0 %v5365_v12  ;;  %v5445_v38 = vld [vmem:[#allocation8 + $0x54c] ss:$16 sps:$4 sm:$0xff]   ;;  %v5446_v12 = vld [vmem:[#allocation8 + $0x328] ss:$16 sps:$4 sm:$0xff]  }
 0x21c   :  { %3988 = vmatprep.mubr.bf16.mxu0 %v5852_v43  ;;  %3945 = vmatprep.mubr.bf16.mxu1 %v5842_v4  ;;  %v5388_v43 = vld [vmem:[#allocation8 + $0x26c] ss:$16 sps:$4 sm:$0xff]  }
 0x21d   :  { %3915 = vmatprep.subr.bf16.mxu1 %v5370_v14  ;;  %3958 = vmatprep.subr.bf16.mxu0 %v5373_v20  ;;  %v5391_v4 = vld [vmem:[#allocation8 + $0x46c] ss:$16 sps:$4 sm:$0xff]   ;;  %v5449_v14 = vld [vmem:[#allocation8 + $0x528] ss:$16 sps:$4 sm:$0xff]  }
 0x21e   :  { %v5448_v46 = vld [vmem:[#allocation8 + $0x32c] ss:$16 sps:$4 sm:$0xff]  }
 0x21f   :  { %3916 = vmatpush1.bf16.msra.mxu1 %v5368_v51  ;;  %3959 = vmatpush1.bf16.msra.mxu0 %v5371_v21  ;;  %v5451_v48 = vld [vmem:[#allocation8 + $0x52c] ss:$16 sps:$4 sm:$0xff]   ;;  %v5452_v21 = vld [vmem:[#allocation8 + $0x308] ss:$16 sps:$4 sm:$0xff]  }
 0x220   :  { %3917 = vmatprep.subr.bf16.mxu1 %v5376_v22  ;;  %3960 = vmatprep.subr.bf16.mxu0 %v5379_v25  ;;  %v5454_v20 = vld [vmem:[#allocation8 + $0x30c] ss:$16 sps:$4 sm:$0xff]   ;;  %v5455_v22 = vld [vmem:[#allocation8 + $0x508] ss:$16 sps:$4 sm:$0xff]  }
 0x221   :  { %v5457_v51 = vld [vmem:[#allocation8 + $0x50c] ss:$16 sps:$4 sm:$0xff]  }
 0x222   :  { %v5460_v25 = vld [vmem:[#allocation8 + $0x6ec] ss:$16 sps:$4 sm:$0xff]  }
 0x223   :  { %3918 = vmatpush1.bf16.msra.mxu1 %v5374_v41  ;;  %3961 = vmatpush1.bf16.msra.mxu0 %v5377_v26  ;;  %v5506_v41 = vld [vmem:[#allocation10 + $0x78] sm:$0xff]  }
 0x224   :  { %3919 = vmatprep.subr.bf16.mxu1 %v5382_v42  ;;  %3962 = vmatprep.subr.bf16.mxu0 %v5385_v53  ;;  %v5458_v26 = vld [vmem:[#allocation8 + $0x6e8] ss:$16 sps:$4 sm:$0xff]   ;;  %v5463_v42 = vld [vmem:[#allocation8 + $0x6cc] ss:$16 sps:$4 sm:$0xff]  }
 0x225   :  { %v5507_v53 = vld [vmem:[#allocation10 + $0x38] sm:$0xff]  }
 0x227   :  { %3920 = vmatpush1.bf16.msra.mxu1 %v5380_v54  ;;  %3963 = vmatpush1.bf16.msra.mxu0 %v5383_v55  ;;  %v5508_v54 = vld [vmem:[#allocation10 + $0x70] sm:$0xff]   ;;  %v5461_v55 = vld [vmem:[#allocation8 + $0x6c8] ss:$16 sps:$4 sm:$0xff]  }
 0x228   :  { %3921 = vmatprep.subr.bf16.mxu1 %v5388_v43  ;;  %3964 = vmatprep.subr.bf16.mxu0 %v5391_v4  ;;  %v5466_v43 = vld [vmem:[#allocation8 + $0x6ac] ss:$16 sps:$4 sm:$0xff]   ;;  %v5509_v4 = vld [vmem:[#allocation10 + $0x30] sm:$0xff]  }
 0x22b   :  { %3922 = vmatpush1.bf16.msra.mxu1 %v5386_v56  ;;  %3965 = vmatpush1.bf16.msra.mxu0 %v5389_v57  ;;  %v5510_v56 = vld [vmem:[#allocation10 + $0x68] sm:$0xff]  }
 0x22c   :  { %3923 = vmatprep.subr.bf16.mxu1 %v5394_v58  ;;  %3966 = vmatprep.subr.bf16.mxu0 %v5397_v59  ;;  %v5464_v57 = vld [vmem:[#allocation8 + $0x6a8] ss:$16 sps:$4 sm:$0xff]   ;;  %v5469_v58 = vld [vmem:[#allocation8 + $0x68c] ss:$16 sps:$4 sm:$0xff]  }
 0x22d   :  { %v5511_v59 = vld [vmem:[#allocation10 + $0x28] sm:$0xff]  }
 0x22f   :  { %3924 = vmatpush1.bf16.msra.mxu1 %v5392_v60  ;;  %3967 = vmatpush1.bf16.msra.mxu0 %v5395_v61  ;;  %v5472_v60 = vld [vmem:[#allocation8 + $0x66c] ss:$16 sps:$4 sm:$0xff]  }
 0x230   :  { %3925 = vmatprep.subr.bf16.mxu1 %v5400_v62  ;;  %3968 = vmatprep.subr.bf16.mxu0 %v5403_v63  ;;  %v5514_v61 = vld [vmem:[#allocation10 + $0x58] sm:$0xff]  }
 0x231   :  { %v5470_v62 = vld [vmem:[#allocation8 + $0x668] ss:$16 sps:$4 sm:$0xff]   ;;  %v5475_v63 = vld [vmem:[#allocation8 + $0x64c] ss:$16 sps:$4 sm:$0xff]  }
 0x233   :  { %3926 = vmatpush1.bf16.msra.mxu1 %v5398_v0  ;;  %3969 = vmatpush1.bf16.msra.mxu0 %v5401_v2  ;;  %v5515_v0 = vld [vmem:[#allocation10 + $0x18] sm:$0xff]   ;;  %v5516_v2 = vld [vmem:[#allocation10 + $0x50] sm:$0xff]  }
 0x234   :  { %3927 = vmatprep.subr.bf16.mxu1 %v5406_v5  ;;  %3970 = vmatprep.subr.bf16.mxu0 %v5409_v6  ;;  %v5473_v5 = vld [vmem:[#allocation8 + $0x648] ss:$16 sps:$4 sm:$0xff]   ;;  %v5478_v6 = vld [vmem:[#allocation8 + $0x62c] ss:$16 sps:$4 sm:$0xff]  }
 0x237   :  { %3928 = vmatpush1.bf16.msra.mxu1 %v5404_v11  ;;  %3971 = vmatpush1.bf16.msra.mxu0 %v5407_v15  ;;  %v5517_v11 = vld [vmem:[#allocation10 + $0x10] sm:$0xff]   ;;  %v5518_v15 = vld [vmem:[#allocation10 + $0x48] sm:$0xff]  }
 0x238   :  { %3929 = vmatprep.subr.bf16.mxu1 %v5412_v16  ;;  %3972 = vmatprep.subr.bf16.mxu0 %v5415_v17  ;;  %v5476_v16 = vld [vmem:[#allocation8 + $0x628] ss:$16 sps:$4 sm:$0xff]   ;;  %v5481_v17 = vld [vmem:[#allocation8 + $0x60c] ss:$16 sps:$4 sm:$0xff]  }
 0x23b   :  { %3930 = vmatpush2.bf16.msra.mxu1 %v5410_v18  ;;  %3973 = vmatpush2.bf16.msra.mxu0 %v5413_v19  ;;  %v5519_v18 = vld [vmem:[#allocation10 + $0x8] sm:$0xff]   ;;  %v5520_v19 = vld [vmem:[#allocation10 + $0x40] sm:$0xff]  }
 0x23c   :  { %3931 = vmatprep.subr.bf16.mxu1 %v5418_v23  ;;  %3974 = vmatprep.subr.bf16.mxu0 %v5421_v49  ;;  %v5479_v23 = vld [vmem:[#allocation8 + $0x608] ss:$16 sps:$4 sm:$0xff]   ;;  %v5484_v49 = vld [vmem:[#allocation8 + $0x7ec] ss:$16 sps:$4 sm:$0xff]  }
 0x23f   :  { %3932 = vmatpush2.bf16.msra.mxu1 %v5416_v28  ;;  %3975 = vmatpush2.bf16.msra.mxu0 %v5419_v50  ;;  %v5521_v28 = vld [vmem:[#allocation10] sm:$0xff]   ;;  %v5482_v50 = vld [vmem:[#allocation8 + $0x7e8] ss:$16 sps:$4 sm:$0xff]  }
 0x240   :  { %3933 = vmatprep.subr.bf16.mxu1 %v5424_v29  ;;  %3976 = vmatprep.subr.bf16.mxu0 %v5427_v30  ;;  %v5487_v29 = vld [vmem:[#allocation8 + $0x7cc] ss:$16 sps:$4 sm:$0xff]   ;;  %v5485_v30 = vld [vmem:[#allocation8 + $0x7c8] ss:$16 sps:$4 sm:$0xff]  }
 0x243   :  { %3934 = vmatpush2.bf16.msra.mxu1 %v5422_v31  ;;  %3977 = vmatpush2.bf16.msra.mxu0 %v5425_v32  ;;  %v5490_v31 = vld [vmem:[#allocation8 + $0x7ac] ss:$16 sps:$4 sm:$0xff]   ;;  %v5488_v32 = vld [vmem:[#allocation8 + $0x7a8] ss:$16 sps:$4 sm:$0xff]  }
 0x244   :  { %3935 = vmatprep.subr.bf16.mxu1 %v5430_v33  ;;  %3978 = vmatprep.subr.bf16.mxu0 %v5433_v24  ;;  %v5493_v33 = vld [vmem:[#allocation8 + $0x78c] ss:$16 sps:$4 sm:$0xff]   ;;  %v5491_v24 = vld [vmem:[#allocation8 + $0x788] ss:$16 sps:$4 sm:$0xff]  }
 0x247   :  { %3936 = vmatpush2.bf16.msra.mxu1 %v5428_v3  ;;  %3979 = vmatpush2.bf16.msra.mxu0 %v5431_v34  ;;  %v5496_v3 = vld [vmem:[#allocation8 + $0x76c] ss:$16 sps:$4 sm:$0xff]   ;;  %v5494_v34 = vld [vmem:[#allocation8 + $0x768] ss:$16 sps:$4 sm:$0xff]  }
 0x248   :  { %3937 = vmatprep.subr.bf16.mxu1 %v5436_v35  ;;  %3980 = vmatprep.subr.bf16.mxu0 %v5439_v37  ;;  %v5499_v35 = vld [vmem:[#allocation8 + $0x74c] ss:$16 sps:$4 sm:$0xff]   ;;  %v5497_v37 = vld [vmem:[#allocation8 + $0x748] ss:$16 sps:$4 sm:$0xff]  }
 0x24b   :  { %3938 = vmatpush2.bf16.msra.mxu1 %v5434_v39  ;;  %3981 = vmatpush2.bf16.msra.mxu0 %v5437_v40  ;;  %v5502_v39 = vld [vmem:[#allocation8 + $0x72c] ss:$16 sps:$4 sm:$0xff]   ;;  %v5500_v40 = vld [vmem:[#allocation8 + $0x728] ss:$16 sps:$4 sm:$0xff]  }
 0x24c   :  { %3939 = vmatprep.subr.bf16.mxu1 %v5442_v27  ;;  %3982 = vmatprep.subr.bf16.mxu0 %v5445_v38  ;;  %v5505_v27 = vld [vmem:[#allocation8 + $0x70c] ss:$16 sps:$4 sm:$0xff]   ;;  %v5503_v38 = vld [vmem:[#allocation8 + $0x708] ss:$16 sps:$4 sm:$0xff]  }
 0x24f   :  { %3940 = vmatpush2.bf16.msra.mxu1 %v5440_v10  ;;  %3983 = vmatpush2.bf16.msra.mxu0 %v5443_v44  ;;  %v5522_v10 = vld [vmem:[#allocation10 + $0xf8] sm:$0xff]  }
 0x250   :  { %3941 = vmatprep.subr.bf16.mxu1 %v5448_v46  ;;  %3984 = vmatprep.subr.bf16.mxu0 %v5451_v48  ;;  %v5523_v44 = vld [vmem:[#allocation10 + $0xb8] sm:$0xff]   ;;  %v5524_v46 = vld [vmem:[#allocation10 + $0xf0] sm:$0xff]  }
 0x251   :  { %v5525_v48 = vld [vmem:[#allocation10 + $0xb0] sm:$0xff]  }
 0x253   :  { %3942 = vmatpush2.bf16.msra.mxu1 %v5446_v12  ;;  %3985 = vmatpush2.bf16.msra.mxu0 %v5449_v14  ;;  %v5526_v12 = vld [vmem:[#allocation10 + $0xe8] sm:$0xff]  }
 0x254   :  { %3943 = vmatprep.subr.bf16.mxu1 %v5454_v20  ;;  %3986 = vmatprep.subr.bf16.mxu0 %v5457_v51  ;;  %v5527_v14 = vld [vmem:[#allocation10 + $0xa8] sm:$0xff]   ;;  %v5528_v20 = vld [vmem:[#allocation10 + $0xe0] sm:$0xff]  }
 0x255   :  { %v5529_v51 = vld [vmem:[#allocation10 + $0xa0] sm:$0xff]  }
 0x257   :  { %3944 = vmatpush2.bf16.msra.mxu1 %v5452_v21  ;;  %3987 = vmatpush2.bf16.msra.mxu0 %v5455_v22  ;;  %v5530_v21 = vld [vmem:[#allocation10 + $0xd8] sm:$0xff]  }
 0x258   :  { %3999 = vmatprep.subr.bf16.mxu1 %v5460_v25  ;;  %5049 = vmatprep.subr.bf16.mxu0 %v5506_v41  ;;  %v5531_v22 = vld [vmem:[#allocation10 + $0x98] sm:$0xff]  }
 0x25a   :  { %3946 = vmatmul.mubr.bf16.vlgmr.msra.gmra.mxu1 %v5844_v8  ;;  %3989 = vmatmul.mubr.bf16.vlgmr.msra.gmra.mxu0 %v5854_v45  ;;  %v5512_v8 = vld [vmem:[#allocation10 + $0x60] sm:$0xff]   ;;  %v5467_v45 = vld [vmem:[#allocation8 + $0x688] ss:$16 sps:$4 sm:$0xff]  }
 0x25b   :  { %4000 = vmatpush1.bf16.msra.mxu1 %v5458_v26  ;;  %4031 = vmatprep.mubr.bf16.mxu1 %v5863_v47  ;;  %v5513_v47 = vld [vmem:[#allocation10 + $0x20] sm:$0xff]   ;;  %v3775_v26 = vpop.f32.mrf.mxu1 }
 0x25c   :  { %4001 = vmatprep.subr.bf16.mxu1 %v5463_v42  ;;  %5050 = vmatpush3.bf16.msra.mxu0 %v5507_v53 }
 0x25d   :  { %5051 = vmatprep.subr.bf16.mxu0 %v5508_v54  ;;  %v3777_v53 = vpop.f32.mrf.mxu1 }
 0x25f   :  { %4002 = vmatpush1.bf16.msra.mxu1 %v5461_v55  ;;  %v2396_v55 = vld [vmem:[%s5900_s4] sm:$0xf] }
 0x260   :  { %4003 = vmatprep.subr.bf16.mxu1 %v5466_v43  ;;  %5052 = vmatpush3.bf16.msra.mxu0 %v5509_v4  ;;  %v3779_v43 = vpop.f32.mrf.mxu1 }
 0x261   :  { %5053 = vmatprep.subr.bf16.mxu0 %v5510_v56  ;;  %v2405_v56 = vrot.slane %v2396_v55, %v458_v1 }
 0x263   :  { %4004 = vmatpush1.bf16.msra.mxu1 %v5464_v57  ;;  %v2401_v57 = vrot.slane %v2396_v55, %v454_v7 }
 0x264   :  { %4005 = vmatprep.subr.bf16.mxu1 %v5469_v58  ;;  %5054 = vmatpush3.bf16.msra.mxu0 %v5511_v59  ;;  %v3781_v58 = vpop.f32.mrf.mxu1 }
 0x265   :  { %5055 = vmatprep.subr.bf16.mxu0 %v5512_v8 }
 0x267   :  { %4006 = vmatpush1.bf16.msra.mxu1 %v5467_v45 }
 0x268   :  { %4007 = vmatprep.subr.bf16.mxu1 %v5472_v60  ;;  %5056 = vmatpush3.bf16.msra.mxu0 %v5513_v47 }
 0x269   :  { %5057 = vmatprep.subr.bf16.mxu0 %v5514_v61 }
 0x26b   :  { %4008 = vmatpush1.bf16.msra.mxu1 %v5470_v62 }
 0x26c   :  { %4009 = vmatprep.subr.bf16.mxu1 %v5475_v63  ;;  %5058 = vmatpush3.bf16.msra.mxu0 %v5515_v0  ;;  %v5532_v0 = vld [vmem:[#allocation10 + $0xd0] sm:$0xff]  }
 0x26d   :  { %5059 = vmatprep.subr.bf16.mxu0 %v5516_v2 }
 0x26f   :  { %4010 = vmatpush1.bf16.msra.mxu1 %v5473_v5 }
 0x270   :  { %4011 = vmatprep.subr.bf16.mxu1 %v5478_v6  ;;  %5060 = vmatpush3.bf16.msra.mxu0 %v5517_v11  ;;  %v5533_v11 = vld [vmem:[#allocation10 + $0x90] sm:$0xff]  }
 0x271   :  { %5061 = vmatprep.subr.bf16.mxu0 %v5518_v15 }
 0x273   :  { %4012 = vmatpush1.bf16.msra.mxu1 %v5476_v16 }
 0x274   :  { %4013 = vmatprep.subr.bf16.mxu1 %v5481_v17  ;;  %5062 = vmatpush3.bf16.msra.mxu0 %v5519_v18 }
 0x275   :  { %5063 = vmatprep.subr.bf16.mxu0 %v5520_v19 }
 0x277   :  { %4014 = vmatpush1.bf16.msra.mxu1 %v5479_v23 }
 0x278   :  { %4015 = vmatprep.subr.bf16.mxu1 %v5484_v49  ;;  %5064 = vmatpush3.bf16.msra.mxu0 %v5521_v28  ;;  %v5534_v49 = vld [vmem:[#allocation10 + $0xc8] sm:$0xff]  }
 0x27b   :  { %4016 = vmatpush2.bf16.msra.mxu1 %v5482_v50 }
 0x27c   :  { %4017 = vmatprep.subr.bf16.mxu1 %v5487_v29  ;;  %v5535_v29 = vld [vmem:[#allocation10 + $0x88] sm:$0xff]  }
 0x27f   :  { %4018 = vmatpush2.bf16.msra.mxu1 %v5485_v30 }
 0x280   :  { %4019 = vmatprep.subr.bf16.mxu1 %v5490_v31 }
 0x283   :  { %4020 = vmatpush2.bf16.msra.mxu1 %v5488_v32 }
 0x284   :  { %4021 = vmatprep.subr.bf16.mxu1 %v5493_v33 }
 0x287   :  { %4022 = vmatpush2.bf16.msra.mxu1 %v5491_v24  ;;  %v5536_v24 = vld [vmem:[#allocation10 + $0xc0] sm:$0xff]  }
 0x288   :  { %4023 = vmatprep.subr.bf16.mxu1 %v5496_v3 }
 0x28b   :  { %4024 = vmatpush2.bf16.msra.mxu1 %v5494_v34  ;;  %v5537_v34 = vld [vmem:[#allocation10 + $0x80] sm:$0xff]  }
 0x28c   :  { %4025 = vmatprep.subr.bf16.mxu1 %v5499_v35 }
 0x28f   :  { %4026 = vmatpush2.bf16.msra.mxu1 %v5497_v37 }
 0x290   :  { %4027 = vmatprep.subr.bf16.mxu1 %v5502_v39 }
 0x293   :  { %4028 = vmatpush2.bf16.msra.mxu1 %v5500_v40 }
 0x294   :  { %4029 = vmatprep.subr.bf16.mxu1 %v5505_v27 }
 0x297   :  { %4030 = vmatpush2.bf16.msra.mxu1 %v5503_v38 }
 0x298   :  { %5071 = vmatprep.subr.bf16.mxu1 %v5522_v10 }
 0x29a   :  { %4032 = vmatmul.mubr.bf16.vlgmr.msra.gmra.mxu1 %v5865_v13  ;;  %v3732_v13 = vpop.f32.mrf.mxu0 }
 0x29b   :  { %5072 = vmatpush3.bf16.msra.mxu1 %v5523_v44  ;;  %v3733_v60 = vadd.f32 %v3732_v13, %v2401_v57 }
 0x29c   :  { %5073 = vmatprep.subr.bf16.mxu1 %v5524_v46  ;;  %v3734_v25 = vpop.f32.mrf.mxu0 }
 0x29d   :  { %v3735_v8 = vadd.f32 %v3734_v25, %v2405_v56  ;;  %v3776_v2 = vadd.f32 %v3775_v26, %v3733_v60 }
 0x29e   :  { %v3736_v41 = vpop.f32.mrf.mxu0 }
 0x29f   :  { %5074 = vmatpush3.bf16.msra.mxu1 %v5525_v48  ;;  %v3737_v45 = vadd.f32 %v3736_v41, %v2401_v57  ;;  %v3778_v62 = vadd.f32 %v3777_v53, %v3735_v8  ;;  %v2413_v48 = vrot.slane %v2396_v55, %v466_v9 }
 0x2a0   :  { %5075 = vmatprep.subr.bf16.mxu1 %v5526_v12  ;;  %v3738_v42 = vpop.f32.mrf.mxu0  ;;  %v2409_v12 = vrot.slane %v2396_v55, %v462_v36 }
 0x2a1   :  { %v3739_v61 = vadd.f32 %v3738_v42, %v2405_v56  ;;  %v3780_v63 = vadd.f32 %v3779_v43, %v3737_v45 }
 0x2a2   :  { %v3818_v54 = vpop.f32.mrf.mxu0 }
 0x2a3   :  { %5076 = vmatpush3.bf16.msra.mxu1 %v5527_v14  ;;  %v3782_v15 = vadd.f32 %v3781_v58, %v3739_v61  ;;  %v3819_v17 = vadd.f32 %v3818_v54, %v3776_v2 }
 0x2a4   :  { %5077 = vmatprep.subr.bf16.mxu1 %v5528_v20  ;;  %v3820_v4 = vpop.f32.mrf.mxu0 }
 0x2a5   :  { %v3821_v16 = vadd.f32 %v3820_v4, %v3778_v62 }
 0x2a6   :  { %v3822_v59 = vpop.f32.mrf.mxu0 }
 0x2a7   :  { %5078 = vmatpush3.bf16.msra.mxu1 %v5529_v51  ;;  %v3823_v1 = vadd.f32 %v3822_v59, %v3780_v63 }
 0x2a8   :  { %5079 = vmatprep.subr.bf16.mxu1 %v5530_v21  ;;  %v3824_v5 = vpop.f32.mrf.mxu0 }
 0x2a9   :  { %v3825_v18 = vadd.f32 %v3824_v5, %v3782_v15 }
 0x2ab   :  { %5080 = vmatpush3.bf16.msra.mxu1 %v5531_v22 }
 0x2ac   :  { %5081 = vmatprep.subr.bf16.mxu1 %v5532_v0 }
 0x2af   :  { %5082 = vmatpush3.bf16.msra.mxu1 %v5533_v11 }
 0x2b0   :  { %5083 = vmatprep.subr.bf16.mxu1 %v5534_v49 }
 0x2b3   :  { %5084 = vmatpush3.bf16.msra.mxu1 %v5535_v29 }
 0x2b4   :  { %5085 = vmatprep.subr.bf16.mxu1 %v5536_v24 }
 0x2b7   :  { %5086 = vmatpush3.bf16.msra.mxu1 %v5537_v34 }
 0x2da   :  { %v3861_v47 = vpop.f32.mrf.mxu1  ;;  %v3904_v39 = vpop.f32.mrf.mxu0 }
 0x2db   :  { %v3862_v28 = vadd.f32 %v3861_v47, %v3819_v17  ;;  %v3905_v22 = vadd.f32 %v3904_v39, %v2409_v12  ;;  %v5688_v39 = vmov 1966171168  }
 0x2dc   :  { %v3863_v6 = vpop.f32.mrf.mxu1  ;;  %v3906_v40 = vpop.f32.mrf.mxu0 }
 0x2dd   :  { %v3864_v19 = vadd.f32 %v3863_v6, %v3821_v16  ;;  %v4042_v3 = vmax.f32 %v3862_v28, 0.0  ;;  %v3907_v51 = vadd.f32 %v3906_v40, %v2413_v48  ;;  %v4415_v40 = vunpack.c.l.s4 %v5688_v39 }
 0x2de   :  { %v3865_v7 = vpop.f32.mrf.mxu1  ;;  %v3908_v27 = vpop.f32.mrf.mxu0 }
 0x2df   :  { %v3866_v23 = vadd.f32 %v3865_v7, %v3823_v1  ;;  %v4043_v32 = vmax.f32 %v3864_v19, 0.0  ;;  %v3909_v21 = vadd.f32 %v3908_v27, %v2409_v12  ;;  %v5009_v1 = vld [vmem:[%s5902_s6] ss:$0 sm:$0xff]  ;;  %v4416_v27 = vunpack.c.0.s8 %v4415_v40 }
 0x2e0   :  { %v3867_v50 = vpop.f32.mrf.mxu1  ;;  %v3910_v10 = vpop.f32.mrf.mxu0 }
 0x2e1   :  { %v3868_v30 = vadd.f32 %v3867_v50, %v3825_v18  ;;  %v4046_v31 = vmax.f32 %v3866_v23, 0.0  ;;  %v3911_v25 = vadd.f32 %v3910_v10, %v2413_v48  ;;  %v4419_v10 = vsub.s32 %v4416_v27, %v5747_v52 }
 0x2e3   :  { %v4047_v33 = vmax.f32 %v3868_v30, 0.0  ;;  %v4050_v37 = vpack.c.bf16 %v4046_v31, %v4042_v3 }
 0x2e5   :  { %v4051_v35 = vpack.c.bf16 %v4047_v33, %v4043_v32 }
 0x2e7   :  { %4349 = vmatprep.mubr.bf16.mxu0 %v4051_v35 }
 0x2e8   :  { %4350 = vmatmul.mubr.bf16.vlgmr.msra.gmra.mxu0 %v4050_v37 }
 0x31a   :  { %v3947_v38 = vpop.f32.mrf.mxu1  ;;  %v3990_v46 = vpop.f32.mrf.mxu0 }
 0x31b   :  { %v3948_v42 = vadd.f32 %v3947_v38, %v3905_v22 }
 0x31c   :  { %v3949_v44 = vpop.f32.mrf.mxu1  ;;  %v3992_v20 = vpop.f32.mrf.mxu0 }
 0x31d   :  { %v3950_v41 = vadd.f32 %v3949_v44, %v3907_v51  ;;  %v3991_v9 = vadd.f32 %v3990_v46, %v3948_v42 }
 0x31e   :  { %v3951_v14 = vpop.f32.mrf.mxu1  ;;  %v3994_v53 = vpop.f32.mrf.mxu0 }
 0x31f   :  { %v3952_v26 = vadd.f32 %v3951_v14, %v3909_v21  ;;  %v3993_v56 = vadd.f32 %v3992_v20, %v3950_v41 }
 0x320   :  { %v3953_v13 = vpop.f32.mrf.mxu1  ;;  %v3996_v58 = vpop.f32.mrf.mxu0 }
 0x321   :  { %v3954_v43 = vadd.f32 %v3953_v13, %v3911_v25  ;;  %v3995_v57 = vadd.f32 %v3994_v53, %v3952_v26 }
 0x323   :  { %v3997_v36 = vadd.f32 %v3996_v58, %v3954_v43 }
 0x35a   :  { %v4033_v54 = vpop.f32.mrf.mxu1 }
 0x35b   :  { %v4034_v45 = vadd.f32 %v4033_v54, %v3991_v9 }
 0x35c   :  { %v4035_v4 = vpop.f32.mrf.mxu1 }
 0x35d   :  { %v4036_v55 = vadd.f32 %v4035_v4, %v3993_v56  ;;  %v4044_v0 = vmax.f32 %v4034_v45, 0.0 }
 0x35e   :  { %v4037_v59 = vpop.f32.mrf.mxu1 }
 0x35f   :  { %v4038_v8 = vadd.f32 %v4037_v59, %v3995_v57  ;;  %v4045_v62 = vmax.f32 %v4036_v55, 0.0 }
 0x360   :  { %v4039_v60 = vpop.f32.mrf.mxu1 }
 0x361   :  { %v4040_v47 = vadd.f32 %v4039_v60, %v3997_v36  ;;  %v4048_v61 = vmax.f32 %v4038_v8, 0.0 }
 0x363   :  { %v4049_v63 = vmax.f32 %v4040_v47, 0.0  ;;  %v4052_v5 = vpack.c.bf16 %v4048_v61, %v4044_v0 }
 0x365   :  { %v4053_v2 = vpack.c.bf16 %v4049_v63, %v4045_v62 }
 0x367   :  { %4390 = vmatprep.mubr.bf16.mxu1 %v4053_v2 }
 0x368   :  { %4391 = vmatmul.mubr.bf16.vlgmr.msra.gmra.mxu1 %v4052_v5 }
 0x3a8   :  { %v5065_v6 = vpop.f32.mrf.mxu0 }
 0x3aa   :  { %v5066_v11 = vpop.f32.mrf.mxu0 }
 0x3ab   :  { %v5067_v16 = vadd.f32 %v5066_v11, %v5065_v6 }
 0x3ac   :  { %v5068_v15 = vpop.f32.mrf.mxu0 }
 0x3ad   :  { %v4352_v19 = vadd.f32 %v5067_v16, %v5009_v1 }
 0x3ae   :  { %v5069_v17 = vpop.f32.mrf.mxu0 }
 0x3af   :  { %v5070_v23 = vadd.f32 %v5069_v17, %v5068_v15 }
 0x3b1   :  { %v4355_v30 = vadd.f32 %v5070_v23, %v5009_v1 }
 0x428   :  { %v5087_v7 = vpop.f32.mrf.mxu1 }
 0x42a   :  { %v5088_v18 = vpop.f32.mrf.mxu1 }
 0x42b   :  { %v5089_v49 = vadd.f32 %v5088_v18, %v5087_v7 }
 0x42c   :  { %v5090_v28 = vpop.f32.mrf.mxu1 }
 0x42d   :  { %v4393_v50 = vadd.f32 %v5089_v49, %v4352_v19 }
 0x42e   :  { %v5091_v29 = vpop.f32.mrf.mxu1 }
 0x42f   :  { %v5042_v31 = vmul.f32 -1.442695, %v4393_v50  ;;  %v5092_v32 = vadd.f32 %v5091_v29, %v5090_v28 }
 0x431   :  { %5538 = vpow2.f32 %v5042_v31  ;;  %v4396_v33 = vadd.f32 %v5092_v32, %v4355_v30 }
 0x433   :  { %v5043_v24 = vmul.f32 -1.442695, %v4396_v33 }
 0x435   :  { %5540 = vpow2.f32 %v5043_v24 }
 0x43e   :  { %v5539_v3 = vpop.eup %5538 }
 0x43f   :  { %v4405_v34 = vadd.f32 1.0, %v5539_v3 }
 0x441   :  { %5542 = vrcp.f32 %v4405_v34 }
 0x442   :  { %v5541_v35 = vpop.eup %5540 }
 0x443   :  { %v4406_v37 = vadd.f32 1.0, %v5541_v35 }
 0x445   :  { %5544 = vrcp.f32 %v4406_v37 }
 0x44e   :  { %v5543_v38 = vpop.eup %5542 }
 0x452   :  { %v5545_v44 = vpop.eup %5544 }
 0x453   :  { %v4411_v46 = vpack.c.bf16 %v5545_v44, %v5543_v38  ;;  %v5044_v48 = vpack.c.bf16 %v5545_v44, %v5545_v44 }
 0x455   :  { %v4420_v12 = vrot.slane %v4411_v46, %v4419_v10  ;;  %v4427_v14 = vrot.slane %v5044_v48, %v4419_v10 }
 0x457   :  { %v4428_v20 = vcombine.high %v4420_v12, %v4420_v12  ;;  %v4429_v51 = vcombine.high %v4427_v14, %v4427_v14  ;;  %v4436_v21 = vrot.slane %v4420_v12, %v4419_v10  ;;  %v4443_v22 = vrot.slane %v4427_v14, %v4419_v10  ;;  %5045 = vst.sshfl [vmem:[#allocation11] sm:$0x1 pattern:$0x73625140] %v4420_v12 }
 0x458   :  { %5047 = vst.sshfl [vmem:[#allocation11 + $0x4] sm:$0x1 pattern:$0x73625140] %v4427_v14 }
 0x459   :  { %v4450_v13 = vrot.slane %v4428_v20, %v4419_v10  ;;  %v4457_v25 = vrot.slane %v4429_v51, %v4419_v10  ;;  %v4458_v41 = vcombine.high %v4436_v21, %v4436_v21  ;;  %v4459_v26 = vcombine.high %v4443_v22, %v4443_v22  ;;  %5046 = vst.sshfl [vmem:[#allocation11 + $0x1] sm:$0x1 pattern:$0x73625140] %v4428_v20 }
 0x45a   :  { %5048 = vst.sshfl [vmem:[#allocation11 + $0x5] sm:$0x1 pattern:$0x73625140] %v4429_v51 }
 0x45b   :  { %v4460_v42 = vcombine.high %v4450_v13, %v4450_v13  ;;  %v4461_v53 = vcombine.high %v4457_v25, %v4457_v25  ;;  %4472 = vst [vmem:[#allocation11 + $0x2] sm:$0x1] %v4458_v41  ;;  %4476 = vst [vmem:[#allocation11 + $0x6] sm:$0x1] %v4459_v26 }
 0x45d   :  { %4473 = vst [vmem:[#allocation11 + $0x3] sm:$0x1] %v4460_v42  ;;  %4477 = vst [vmem:[#allocation11 + $0x7] sm:$0x1] %v4461_v53 }
 0x45e   :  { %4482 = vsyncadd [#allocation4], 112  ;;  %s5689_s6 = smov [#allocation11]  }
 0x45f   :  { %s4483_s10 = sshll.u32 %s5689_s6, 4  ;;  %s4484_s10 = int_to_ptr.vmem [resolvable:$true] %s4483_s10 }
 0x460   :  { %s5646_s11 = scalar_lea.vmem %s4484_s10, 16  ;;  %s5650_s13 = scalar_lea.vmem %s4484_s10, 128 }
 0x461   :  { %p5647_p11 = scmp.ne.s32.totalorder %s4484_s10, %s5646_s11  ;;  %p5651_p12 = scmp.lt.s32.totalorder %s4484_s10, %s4484_s10 }
 0x462   :  { %p5652_p13 = scmp.lt.s32.totalorder %s5650_s13, %s5646_s11 }
 0x464   :  { %p5653_p0 = por %p5652_p13, %p5651_p12 }
 0x466   :  { %p5654_p1 = pnand %p5653_p0, %p5647_p11 }
 0x468   :  { %5657 = shalt.err (!%p5654_p1)
}
 0x469   :  { %s5690_s14 = smov 1  }
 0x46a   :  { %4489 = dma.vmem_to_hbm [thread:$0]  %s4484_s10, 16, %s5903_s7, [#allocation4], %s5679_s12, %s5679_s12, %s5690_s14  }
 0x46b   :  { %5672 = dma.done.wait [#allocation4], 128  }
 0x46c   :  { %5673 = vsyncadd [#allocation4], 4294967168 }
 0x46d   :  { %4493 = vsyncpa [#allocation3], 1 }
 0x46e   :  { %4494 = vsyncpa [#allocation6], 1 }
 0x46f   :  { %4495 = vsyncpa [#allocation9], 1 }
 0x470   :  { %4496 = vsyncpa [#allocation4], 1 }

</bundles_post_ra>
